<compile_context>
chip_gen: v6e
topology: v6e:2x2x1
jax: 0.10.0
libtpu: 0.0.40
codegen_flags: <defaults>
</compile_context>

<pallas_src>
import functools

import jax
import jax.numpy as jnp
from jax.experimental import pallas as pl
from jax.experimental.pallas import tpu as pltpu


def _head_kernel(x_ref, wqkv_ref, o_ref, *, head_size, compute_dtype):
    # x_ref   : (Bb, T, C)     a few batch rows (compute_dtype)
    # wqkv_ref: (C, 3*hs)      fused [Wq*scale | Wk | Wv] (compute_dtype, resident)
    # o_ref   : (Bb, T, hs)
    cd = compute_dtype
    hs = head_size
    Bb, T, C = x_ref.shape

    # Fused QKV projection on the MXU, f32 accumulation.
    x2d = x_ref[...].reshape(Bb * T, C)                                  # (Bb*T, C)
    qkv = jnp.dot(x2d, wqkv_ref[...],
                  preferred_element_type=jnp.float32)                    # (Bb*T, 3*hs) f32
    qkv = qkv.astype(cd).reshape(Bb, T, 3 * hs)                          # one cast pass
    q = qkv[..., 0 * hs:1 * hs]      # scale already folded into the weight
    k = qkv[..., 1 * hs:2 * hs]
    v = qkv[..., 2 * hs:3 * hs]

    # Attention scores q @ k^T per batch row (MXU, f32 accumulation).
    s = jnp.einsum('bqd,bkd->bqk', q, k,
                   preferred_element_type=jnp.float32)                   # (Bb, T, T)

    # Causal mask == masked_fill(tril[:T, :T] == 0, -inf). Use a large finite
    # negative so a fully-masked row could never yield NaN (inf - inf).
    row = jax.lax.broadcasted_iota(jnp.int32, (Bb, T, T), 1)
    col = jax.lax.broadcasted_iota(jnp.int32, (Bb, T, T), 2)
    s = jnp.where(col <= row, s, -1e30)

    # Softmax in f32; approx reciprocal runs on the (idle) EUP slot.
    m = jnp.max(s, axis=-1, keepdims=True)
    e = jnp.exp(s - m)
    l = jnp.sum(e, axis=-1, keepdims=True)
    p = e * pl.reciprocal(l, approx=True)

    # Dropout on the attention weights: eval/inference mode == identity.
    # TODO(synk): training-mode dropout would need pltpu.prng_* and cannot
    # bit-match torch's RNG anyway.

    out = jnp.einsum('bqk,bkd->bqd', p.astype(cd), v,
                     preferred_element_type=jnp.float32)                 # (Bb, T, hs)
    o_ref[...] = out.astype(o_ref.dtype)


def _pick_block_batch(B, max_bb=4):
    """Largest divisor of B (<= max_bb) that keeps the grid length >= 2."""
    min_grid = 2 if B >= 2 else 1
    for bb in range(min(max_bb, B), 0, -1):
        if B % bb == 0 and (B // bb) >= min_grid:
            return bb
    return 1


def head_forward(x, wq, wk, wv, *, compute_dtype=jnp.bfloat16,
                 out_dtype=jnp.bfloat16, block_batch=None):
    """Single-head causal self-attention (eval-mode Head.forward).

    x:  (B, T, C) float32
    wq, wk, wv: (C, head_size) float32
    Returns (B, T, head_size) in `out_dtype` (bf16 by default; pass
    jnp.float32 for exact dtype parity with the PyTorch module).
    """
    B, T, C = x.shape
    hs = wq.shape[1]
    assert wq.shape == (C, hs) and wk.shape == (C, hs) and wv.shape == (C, hs)
    scale = float(hs) ** -0.5

    cd = jnp.dtype(compute_dtype)
    od = jnp.dtype(out_dtype) if out_dtype is not None else x.dtype

    # Fold the attention scale into Wq (free), fuse the three weights into one.
    wqkv = jnp.concatenate([wq * scale, wk, wv], axis=1).astype(cd)      # (C, 3*hs)
    x_c = x.astype(cd)

    Bb = block_batch if block_batch is not None else _pick_block_batch(B)
    assert B % Bb == 0, f"block_batch {Bb} must divide B {B}"
    grid = (B // Bb,)

    kernel = functools.partial(_head_kernel, head_size=hs, compute_dtype=cd)

    flops = 2 * B * T * C * (3 * hs) + 2 * 2 * B * T * T * hs
    bytes_accessed = ((B * T * C + 3 * C * hs) * cd.itemsize
                      + B * T * hs * od.itemsize)
    cost = pl.CostEstimate(flops=flops, transcendentals=B * T * T,
                           bytes_accessed=bytes_accessed)

    return pl.pallas_call(
        kernel,
        out_shape=jax.ShapeDtypeStruct((B, T, hs), od),
        grid_spec=pltpu.PrefetchScalarGridSpec(
            num_scalar_prefetch=0,
            grid=grid,
            in_specs=[
                pl.BlockSpec((Bb, T, C), lambda b: (b, 0, 0)),   # x, Bb batch rows
                pl.BlockSpec((C, 3 * hs), lambda b: (0, 0)),     # fused QKV weight (resident)
            ],
            out_specs=pl.BlockSpec((Bb, T, hs), lambda b: (b, 0, 0)),
        ),
        compiler_params=pltpu.CompilerParams(
            dimension_semantics=("parallel",)),
        cost_estimate=cost,
    )(x_c, wqkv)


if __name__ == "__main__":
    # Module-consistent shapes: n_embd=384, T=block_size=256, head_size=64,
    # small batch (B=4 -> Bb=2, grid of 2 parallel steps).
    block_size = 256
    n_embd = 384
    head_size = 64
    B, T = 4, block_size

    key = jax.random.PRNGKey(0)
    kx, kq, kk, kv = jax.random.split(key, 4)
    x = jax.random.normal(kx, (B, T, n_embd), dtype=jnp.float32)
    bound = 1.0 / (n_embd ** 0.5)   # torch.nn.Linear default init bound
    wq = jax.random.uniform(kq, (n_embd, head_size), jnp.float32, -bound, bound)
    wk = jax.random.uniform(kk, (n_embd, head_size), jnp.float32, -bound, bound)
    wv = jax.random.uniform(kv, (n_embd, head_size), jnp.float32, -bound, bound)

    out = head_forward(x, wq, wk, wv)
    out = jax.block_until_ready(out)

    # Plain-JAX f32 reference (eval-mode dropout == identity).
    q = x @ wq
    k = x @ wk
    v = x @ wv
    s = (q @ jnp.swapaxes(k, -1, -2)) * (head_size ** -0.5)
    mask = jnp.tril(jnp.ones((T, T), dtype=bool))
    s = jnp.where(mask[None], s, -jnp.inf)
    ref = jax.nn.softmax(s, axis=-1) @ v

    out_f32 = out.astype(jnp.float32)
    max_err = float(jnp.max(jnp.abs(out_f32 - ref)))
    # bf16 MXU matmuls (f32 accumulation) + bf16 output vs f32 reference.
    assert jnp.allclose(out_f32, ref, atol=3e-2, rtol=3e-2), \
        f"mismatch vs reference (max err {max_err})"
    print("KERNEL_OK")
</pallas_src>

<mosaic_0001>
module attributes {stable_mosaic.version = 11 : i64} {
  func.func @_head_kernel(%arg0: i32, %arg1: memref<2x256x384xbf16, #tpu.memory_space<vmem>>, %arg2: memref<384x192xbf16, #tpu.memory_space<vmem>>, %arg3: memref<2x256x64xbf16, #tpu.memory_space<vmem>>) attributes {dimension_semantics = [#tpu.dimension_semantics<parallel>], iteration_bounds = array<i64: 2>, scalar_prefetch = 0 : i64, scratch_operands = 0 : i64, tpu.core_type = #tpu.core_type<tc>, window_params = [{transform_indices = @transform_0, window_bounds = array<i64: 2, 256, 384>}, {pipeline_mode = #tpu.pipeline_mode<synchronous>, transform_indices = @transform_1, window_bounds = array<i64: 384, 192>}, {transform_indices = @transform_2, window_bounds = array<i64: 2, 256, 64>}]} {
    %c0 = arith.constant 0 : index
    %c0_0 = arith.constant 0 : index
    %c0_1 = arith.constant 0 : index
    %0 = vector.load %arg1[%c0, %c0_0, %c0_1] : memref<2x256x384xbf16, #tpu.memory_space<vmem>>, vector<2x256x384xbf16>
    %1 = vector.shape_cast %0 : vector<2x256x384xbf16> to vector<512x384xbf16>
    %c0_2 = arith.constant 0 : index
    %c0_3 = arith.constant 0 : index
    %2 = vector.load %arg2[%c0_2, %c0_3] : memref<384x192xbf16, #tpu.memory_space<vmem>>, vector<384x192xbf16>
    %cst = arith.constant dense<0.000000e+00> : vector<512x192xf32>
    %3 = tpu.matmul %1, %2, %cst {dimension_numbers = #tpu.dot_dimension_numbers<[1], [0], [0], [1], [0, 0, 1, 1], [], []>} : vector<512x384xbf16>, vector<384x192xbf16>, vector<512x192xf32> -> vector<512x192xf32>
    %4 = arith.truncf %3 : vector<512x192xf32> to vector<512x192xbf16>
    %5 = vector.shape_cast %4 : vector<512x192xbf16> to vector<2x256x192xbf16>
    %6 = vector.extract_strided_slice %5 {offsets = [0, 0, 0], sizes = [2, 256, 64], strides = [1, 1, 1]} : vector<2x256x192xbf16> to vector<2x256x64xbf16>
    %7 = vector.extract_strided_slice %5 {offsets = [0, 0, 64], sizes = [2, 256, 64], strides = [1, 1, 1]} : vector<2x256x192xbf16> to vector<2x256x64xbf16>
    %8 = vector.extract_strided_slice %5 {offsets = [0, 0, 128], sizes = [2, 256, 64], strides = [1, 1, 1]} : vector<2x256x192xbf16> to vector<2x256x64xbf16>
    "tpu.trace_start"() <{level = 10 : i32, message = "bqd,bkd->bqk"}> : () -> ()
    %cst_4 = arith.constant dense<0.000000e+00> : vector<2x256x256xf32>
    %9 = tpu.matmul %6, %7, %cst_4 {dimension_numbers = #tpu.dot_dimension_numbers<[2], [2], [1], [1], [0, 0, 0, 1, 1, 1], [0], [0]>} : vector<2x256x64xbf16>, vector<2x256x64xbf16>, vector<2x256x256xf32> -> vector<2x256x256xf32>
    "tpu.trace_stop"() : () -> ()
    %10 = tpu.iota {dimensions = array<i32: 1>} : vector<2x256x256xi32>
    %11 = tpu.iota {dimensions = array<i32: 2>} : vector<2x256x256xi32>
    %12 = arith.cmpi sle, %11, %10 : vector<2x256x256xi32>
    %cst_5 = arith.constant -1.000000e+30 : f32
    %13 = vector.broadcast %cst_5 : f32 to vector<2x256x256xf32>
    %14 = arith.select %12, %9, %13 : vector<2x256x256xi1>, vector<2x256x256xf32>
    %cst_6 = arith.constant dense<0xFF800000> : vector<2x256xf32>
    %15 = vector.multi_reduction <maximumf>, %14, %cst_6 [2] : vector<2x256x256xf32> to vector<2x256xf32>
    %16 = vector.shape_cast %15 : vector<2x256xf32> to vector<2x256x1xf32>
    %17 = vector.broadcast %16 : vector<2x256x1xf32> to vector<2x256x256xf32>
    %18 = arith.subf %14, %17 : vector<2x256x256xf32>
    %19 = math.exp %18 : vector<2x256x256xf32>
    %cst_7 = arith.constant dense<0.000000e+00> : vector<2x256xf32>
    %20 = vector.multi_reduction <add>, %19, %cst_7 [2] : vector<2x256x256xf32> to vector<2x256xf32>
    %21 = vector.shape_cast %20 : vector<2x256xf32> to vector<2x256x1xf32>
    %22 = tpu.reciprocal %21 {approx = true} : vector<2x256x1xf32> -> vector<2x256x1xf32>
    %23 = vector.broadcast %22 : vector<2x256x1xf32> to vector<2x256x256xf32>
    %24 = arith.mulf %19, %23 : vector<2x256x256xf32>
    %25 = arith.truncf %24 : vector<2x256x256xf32> to vector<2x256x256xbf16>
    "tpu.trace_start"() <{level = 10 : i32, message = "bqk,bkd->bqd"}> : () -> ()
    %cst_8 = arith.constant dense<0.000000e+00> : vector<2x256x64xf32>
    %26 = tpu.matmul %25, %8, %cst_8 {dimension_numbers = #tpu.dot_dimension_numbers<[2], [1], [1], [2], [0, 0, 0, 1, 1, 2], [0], [0]>} : vector<2x256x256xbf16>, vector<2x256x64xbf16>, vector<2x256x64xf32> -> vector<2x256x64xf32>
    "tpu.trace_stop"() : () -> ()
    %27 = arith.truncf %26 : vector<2x256x64xf32> to vector<2x256x64xbf16>
    %c0_9 = arith.constant 0 : index
    %c0_10 = arith.constant 0 : index
    %c0_11 = arith.constant 0 : index
    %28 = vector.load %arg3[%c0_9, %c0_10, %c0_11] : memref<2x256x64xbf16, #tpu.memory_space<vmem>>, vector<2x256x64xbf16>
    tpu.vector_store %arg3[%c0_9, %c0_10, %c0_11], %27 {strides = array<i32>} : memref<2x256x64xbf16, #tpu.memory_space<vmem>>, vector<2x256x64xbf16>,
    return
  }
  func.func @transform_0(%arg0: i32) -> (i32, i32, i32) {
    %c0_i32 = arith.constant 0 : i32
    %c0_i32_0 = arith.constant 0 : i32
    %c0_i32_1 = arith.constant 0 : i32
    return %arg0, %c0_i32, %c0_i32_0 : i32, i32, i32
  }
  func.func @transform_1(%arg0: i32) -> (i32, i32) {
    %c0_i32 = arith.constant 0 : i32
    %c0_i32_0 = arith.constant 0 : i32
    %c0_i32_1 = arith.constant 0 : i32
    return %c0_i32, %c0_i32_0 : i32, i32
  }
  func.func @transform_2(%arg0: i32) -> (i32, i32, i32) {
    %c0_i32 = arith.constant 0 : i32
    %c0_i32_0 = arith.constant 0 : i32
    %c0_i32_1 = arith.constant 0 : i32
    return %arg0, %c0_i32, %c0_i32_0 : i32, i32, i32
  }
}

</mosaic_0001>

<bundles_post_ra>
// kernel: tpu_custom_call.1
= control target key start
LH: loop header
LB: loop body
LE: loop exit
PB: predicated region body
PF: predicated region fallthrough
CT: control target
= control target key end

     0   :  { %7 = vsyncpa [#allocation3], 0  ;;  %s8463_s0 = inlined_call_operand.hbm [shape: bf16[4,256,384], index: 0, kind: input, shape index: {}]   ;;  %s8464_s1 = inlined_call_operand.vmem [shape: bf16[384,192], index: 1, kind: input, shape index: {}]   ;;  %s8465_s2 = inlined_call_operand.vmem [shape: bf16[4,256,64], index: 2, kind: output, shape index: {}]  }
   0x1   :  { %9 = vsyncpa [#allocation3 + $0x1], 0  ;;  %s5891_s9 = smov 0   ;;  %s5893_s10 = smov 0  }
   0x2   :  { %s5895_s11 = smov 0   ;;  %s5897_s12 = smov 0  }
   0x3 LB: > { %s4507_s13 = sadd.s32 4294967295, %s5869_s12   ;;  %s5911_s14 = sadd.s32 1, %s5869_s12   ;;  %s5869_s12 = sphi %s5897_s12, %s9144_s12   ;;  %s5865_s11 = sphi %s5895_s11, %s9143_s11   ;;  %s5861_s10 = sphi %s5893_s10, %s9142_s10   ;;  %s5857_s9 = sphi %s5891_s9, %s9141_s9  }
   0x4   : > { %s19_s15 = ssub.s32 %s5869_s12, %s5911_s14  ;;  %s22_s16 = sadd.s32 1, %s5865_s11 }
   0x5   : > { %p20_p0 = scmp.eq.s32.totalorder %s19_s15, 0  ;;  %p29_p1 = scmp.ne.s32.totalorder %s5865_s11, %s5861_s10 }
   0x6   : > { %p30_p2 = scmp.eq.s32.totalorder %s5869_s12, 0  ;;  %p35_p3 = scmp.ne.s32.totalorder %s5861_s10, %s5857_s9 }
   0x7   : > { %s5921_s17 = scalar_select %p20_p0, %s5865_s11, %s22_s16  }
   0x8   : > { %p31_p4 = por %p30_p2, %p29_p1  ;;  %p36_p5 = scmp.eq.s32.totalorder %s4507_s13, 0 }
   0x9   : > { %p5186_p6 = scmp.lt.s32.totalorder %s5869_s12, 2  ;;  %s109_s19 = sand.u32 1, %s5865_s11  }
   0xa   : > { %p5926_p7 = por %p36_p5, %p35_p3  ;;  %s5177_s20 = smul.u32 768, %s109_s19 }
   0xb   : > { %s5178_s21 = smul.u32 12288, %s5869_s12  ;;  %p5932_p8 = pnand %p5186_p6, %p31_p4 }
   0xc   : > { %s8657_s18 = scalar_select %p5926_p7, 1, 0 }
   0xd   : > { %s5939_s25 = scalar_lea.hbm %s8463_s0, %s5178_s21  ;;  %s113_s26 = scalar_lea.vmem [#allocation2], %s5177_s20 }
   0xe   : > { %s121_s27 = sshll.u32 %s113_s26, 4  ;;  %s5944_s28 = scalar_lea.sflag [#allocation3], %s109_s19  ;;  %s5941_s27 = int_to_ptr.vmem [resolvable:$true] %s121_s27 }
   0xf   : > { %s5807_s29 = scalar_lea.hbm %s5939_s25, 12288  ;;  %p5809_p11 = pneg %p5932_p8 }
  0x10   : > { %p5808_p10 = scmp.ne.s32.totalorder %s5939_s25, %s5807_s29  ;;  %s5812_s4 = scalar_lea.hbm %s8463_s0, 24576 }
  0x11   : > { %p5813_p0 = scmp.lt.s32.totalorder %s5939_s25, %s8463_s0  ;;  %p5814_p1 = scmp.lt.s32.totalorder %s5812_s4, %s5807_s29 }
  0x12   : > { %p5810_p12 = pnand %p5809_p11, %p5808_p10 }
  0x13   : > { %p5815_p2 = por %p5814_p1, %p5813_p0 }
  0x14   : > { %p5811_p13 = pneg %p5810_p12 }
  0x16   : > { %p5816_p3 = pnand %p5815_p2, %p5811_p13 }
  0x18   : > { %5819 = shalt.err (!%p5816_p3)
}
  0x19   : > { %s5820_s7 = scalar_lea.vmem %s5941_s27, 12288  ;;  %s5871_s8 = smov [#allocation2]  }
  0x1a   : > { %p5821_p4 = scmp.ne.s32.totalorder %s5941_s27, %s5820_s7  ;;  %s5825_s9 = sshll.u32 %s5871_s8, 4  ;;  %s5826_s9 = int_to_ptr.vmem [resolvable:$false] %s5825_s9 }
  0x1b   : > { %s5827_s15 = scalar_lea.vmem %s5826_s9, 24576  ;;  %p5828_p10 = scmp.lt.s32.totalorder %s5941_s27, %s5826_s9 }
  0x1c   : > { %p5823_p5 = pnand %p5821_p4, %p5809_p11  ;;  %p5829_p12 = scmp.lt.s32.totalorder %s5827_s15, %s5820_s7 }
  0x1e   : > { %p5824_p6 = pneg %p5823_p5  ;;  %p5830_p9 = por %p5829_p12, %p5828_p10 }
  0x20   : > { %p5831_p7 = pnand %p5830_p9, %p5824_p6 }
  0x22   : > { %5834 = shalt.err (!%p5831_p7)
}
  0x23   : > { %s5872_s16 = smov 192   ;;  %s5873_s19 = smov 12  }
  0x24   : > { %5185 = dma.hbm_to_vmem [thread:$0]  (!%p5932_p8), %s5939_s25, 12288, %s5941_s27, %s5944_s28, %s5872_s16, %s5872_s16, %s5873_s19  }
  0x25   : > { %p129_p11 = scmp.lt.s32.totalorder %s5869_s12, 3  ;;  %p8659_p13 = scmp.ge.s32.totalorder %s5869_s12, 1 }
  0x27   : > { %p130_p0 = pnand %p8659_p13, %p129_p11 }
  0x29   : > { %133 = sbr.rel (%p130_p0) target bundleno = 1717 (0x6b5), region = 28 }
  0x2e   : > { %s135_s20 = sand.u32 1, %s5861_s10   ;;  %p8660_p7 = scmp.ne.s32.totalorder %s8657_s18, 0 }
  0x2f   : > { %s5179_s21 = smul.u32 768, %s135_s20  ;;  %s136_s23 = scalar_lea.sflag [#allocation3], %s135_s20 }
  0x31   : > { %s5969_s24 = scalar_lea.vmem [#allocation2], %s5179_s21 }
  0x32   : > { %5852 = dma.done.wait (%p8660_p7), %s136_s23, 12288  }
  0x33   : > { %5854 = vsyncadd (%p8660_p7), %s136_s23, 4294955008  ;;  %v5874_v0 = vmov 0   ;;  %v5223_v1 = vld [vmem:[%s8464_s1 + $0x74] ss:$8 sps:$4 sm:$0xff]   ;;  %v5227_v3 = vld [vmem:[%s8464_s1 + $0x70] ss:$8 sps:$4 sm:$0xff]  }
  0x34   : > { %1483 = vmatprep.mubr.bf16.mxu1 %v5874_v0  ;;  %v5225_v2 = vld [vmem:[%s8464_s1 + $0x174] ss:$8 sps:$4 sm:$0xff]   ;;  %1098 = vmatprep.subr.bf16.mxu0 %v5223_v1  ;;  %v5228_v4 = vld [vmem:[%s8464_s1 + $0x170] ss:$8 sps:$4 sm:$0xff]   ;;  %v5229_v5 = vld [vmem:[%s8464_s1 + $0x64] ss:$8 sps:$4 sm:$0xff]  }
  0x35   : > { %1451 = vmatprep.subr.bf16.mxu1 %v5225_v2  ;;  %1099 = vmatpush1.bf16.msra.mxu0 %v5227_v3  ;;  %v5231_v6 = vld [vmem:[%s8464_s1 + $0x164] ss:$8 sps:$4 sm:$0xff]   ;;  %v5233_v7 = vld [vmem:[%s8464_s1 + $0x60] ss:$8 sps:$4 sm:$0xff]   ;;  %v5235_v9 = vld [vmem:[%s8464_s1 + $0x54] ss:$8 sps:$4 sm:$0xff]  }
  0x36   : > { %1452 = vmatpush1.bf16.msra.mxu1 %v5228_v4  ;;  %1100 = vmatprep.subr.bf16.mxu0 %v5229_v5  ;;  %v5234_v8 = vld [vmem:[%s8464_s1 + $0x160] ss:$8 sps:$4 sm:$0xff]   ;;  %v5237_v10 = vld [vmem:[%s8464_s1 + $0x154] ss:$8 sps:$4 sm:$0xff]   ;;  %v5239_v11 = vld [vmem:[%s8464_s1 + $0x50] ss:$8 sps:$4 sm:$0xff]  }
  0x37   : > { %1453 = vmatprep.subr.bf16.mxu1 %v5231_v6  ;;  %v5240_v12 = vld [vmem:[%s8464_s1 + $0x150] ss:$8 sps:$4 sm:$0xff]   ;;  %v5241_v13 = vld [vmem:[%s8464_s1 + $0x44] ss:$8 sps:$4 sm:$0xff]   ;;  %v5245_v15 = vld [vmem:[%s8464_s1 + $0x40] ss:$8 sps:$4 sm:$0xff]  }
  0x38   : > { %v5243_v14 = vld [vmem:[%s8464_s1 + $0x144] ss:$8 sps:$4 sm:$0xff]   ;;  %v5246_v16 = vld [vmem:[%s8464_s1 + $0x140] ss:$8 sps:$4 sm:$0xff]   ;;  %v5247_v17 = vld [vmem:[%s8464_s1 + $0x34] ss:$8 sps:$4 sm:$0xff]  }
  0x39   : > { %1101 = vmatpush1.bf16.msra.mxu0 %v5233_v7  ;;  %v5249_v18 = vld [vmem:[%s8464_s1 + $0x134] ss:$8 sps:$4 sm:$0xff]   ;;  %v5251_v19 = vld [vmem:[%s8464_s1 + $0x30] ss:$8 sps:$4 sm:$0xff]   ;;  %v5253_v21 = vld [vmem:[%s8464_s1 + $0x24] ss:$8 sps:$4 sm:$0xff]  }
  0x3a   : > { %1454 = vmatpush1.bf16.msra.mxu1 %v5234_v8  ;;  %1102 = vmatprep.subr.bf16.mxu0 %v5235_v9  ;;  %v5252_v20 = vld [vmem:[%s8464_s1 + $0x130] ss:$8 sps:$4 sm:$0xff]   ;;  %v5255_v22 = vld [vmem:[%s8464_s1 + $0x124] ss:$8 sps:$4 sm:$0xff]   ;;  %v5257_v23 = vld [vmem:[%s8464_s1 + $0x20] ss:$8 sps:$4 sm:$0xff]  }
  0x3b   : > { %1455 = vmatprep.subr.bf16.mxu1 %v5237_v10  ;;  %v5258_v24 = vld [vmem:[%s8464_s1 + $0x120] ss:$8 sps:$4 sm:$0xff]   ;;  %v5259_v25 = vld [vmem:[%s8464_s1 + $0x14] ss:$8 sps:$4 sm:$0xff]   ;;  %v5263_v27 = vld [vmem:[%s8464_s1 + $0x10] ss:$8 sps:$4 sm:$0xff]  }
  0x3c   : > { %v5261_v26 = vld [vmem:[%s8464_s1 + $0x114] ss:$8 sps:$4 sm:$0xff]   ;;  %v5264_v28 = vld [vmem:[%s8464_s1 + $0x110] ss:$8 sps:$4 sm:$0xff]   ;;  %v5265_v29 = vld [vmem:[%s8464_s1 + $0x4] ss:$8 sps:$4 sm:$0xff]  }
  0x3d   : > { %1103 = vmatpush1.bf16.msra.mxu0 %v5239_v11  ;;  %v5267_v30 = vld [vmem:[%s8464_s1 + $0x104] ss:$8 sps:$4 sm:$0xff]   ;;  %v5269_v31 = vld [vmem:[%s8464_s1] ss:$8 sps:$4 sm:$0xff]   ;;  %v5271_v33 = vld [vmem:[%s8464_s1 + $0xf4] ss:$8 sps:$4 sm:$0xff]  }
  0x3e   : > { %1456 = vmatpush1.bf16.msra.mxu1 %v5240_v12  ;;  %1104 = vmatprep.subr.bf16.mxu0 %v5241_v13  ;;  %v5270_v32 = vld [vmem:[%s8464_s1 + $0x100] ss:$8 sps:$4 sm:$0xff]   ;;  %v5274_v35 = vld [vmem:[%s8464_s1 + $0xf0] ss:$8 sps:$4 sm:$0xff]   ;;  %v5275_v36 = vld [vmem:[%s8464_s1 + $0xe4] ss:$8 sps:$4 sm:$0xff]  }
  0x3f   : > { %1457 = vmatprep.subr.bf16.mxu1 %v5243_v14  ;;  %v5273_v34 = vld [vmem:[%s5969_s24 + $0x8] ss:$12 sps:$4 sm:$0xff]   ;;  %v5301_v39 = vld [vmem:[%s5969_s24 + $0x4] ss:$12 sps:$4 sm:$0xff]   ;;  %v5280_v40 = vld [vmem:[%s5969_s24 + $0x20] ss:$12 sps:$4 sm:$0xff]  }
  0x40   : > { %v5277_v37 = vld [vmem:[%s8464_s1 + $0xe0] ss:$8 sps:$4 sm:$0xff]   ;;  %v5278_v38 = vld [vmem:[%s8464_s1 + $0xd4] ss:$8 sps:$4 sm:$0xff]   ;;  %1130 = vmatprep.mubr.bf16.mxu0 %v5301_v39  ;;  %v5281_v41 = vld [vmem:[%s8464_s1 + $0xd0] ss:$8 sps:$4 sm:$0xff]  }
  0x41   : > { %1105 = vmatpush1.bf16.msra.mxu0 %v5245_v15  ;;  %v5282_v42 = vld [vmem:[%s8464_s1 + $0xc4] ss:$8 sps:$4 sm:$0xff]   ;;  %v5284_v43 = vld [vmem:[%s8464_s1 + $0xc0] ss:$8 sps:$4 sm:$0xff]   ;;  %v5285_v44 = vld [vmem:[%s8464_s1 + $0xb4] ss:$8 sps:$4 sm:$0xff]  }
  0x42   : > { %1458 = vmatpush1.bf16.msra.mxu1 %v5246_v16  ;;  %1106 = vmatprep.subr.bf16.mxu0 %v5247_v17  ;;  %v5287_v45 = vld [vmem:[%s5969_s24 + $0x38] ss:$12 sps:$4 sm:$0xff]   ;;  %v5291_v48 = vld [vmem:[%s8464_s1 + $0xa0] ss:$8 sps:$4 sm:$0xff]   ;;  %v5292_v49 = vld [vmem:[%s8464_s1 + $0x94] ss:$8 sps:$4 sm:$0xff]  }
  0x43   : > { %1459 = vmatprep.subr.bf16.mxu1 %v5249_v18  ;;  %v5288_v46 = vld [vmem:[%s8464_s1 + $0xb0] ss:$8 sps:$4 sm:$0xff]   ;;  %v5289_v47 = vld [vmem:[%s8464_s1 + $0xa4] ss:$8 sps:$4 sm:$0xff]   ;;  %v5298_v53 = vld [vmem:[%s8464_s1 + $0x80] ss:$8 sps:$4 sm:$0xff]  }
  0x44   : > { %v5294_v50 = vld [vmem:[%s5969_s24 + $0x50] ss:$12 sps:$4 sm:$0xff]   ;;  %v5296_v52 = vld [vmem:[%s8464_s1 + $0x84] ss:$8 sps:$4 sm:$0xff]   ;;  %v5302_v55 = vld [vmem:[%s5969_s24 + $0x68] ss:$12 sps:$4 sm:$0xff]  }
  0x45   : > { %1107 = vmatpush1.bf16.msra.mxu0 %v5251_v19  ;;  %v5295_v51 = vld [vmem:[%s8464_s1 + $0x90] ss:$8 sps:$4 sm:$0xff]   ;;  %v5299_v54 = vld [vmem:[%s5969_s24] ss:$12 sps:$4 sm:$0xff]   ;;  %v5303_v56 = vld [vmem:[%s5969_s24 + $0x1c] ss:$12 sps:$4 sm:$0xff]  }
  0x46   : > { %1460 = vmatpush1.bf16.msra.mxu1 %v5252_v20  ;;  %1108 = vmatprep.subr.bf16.mxu0 %v5253_v21  ;;  %v5305_v57 = vld [vmem:[%s5969_s24 + $0x18] ss:$12 sps:$4 sm:$0xff]   ;;  %v5306_v58 = vld [vmem:[%s5969_s24 + $0x80] ss:$12 sps:$4 sm:$0xff]   ;;  %v5309_v60 = vld [vmem:[%s5969_s24 + $0x30] ss:$12 sps:$4 sm:$0xff]  }
  0x47   : > { %1461 = vmatprep.subr.bf16.mxu1 %v5255_v22  ;;  %v5307_v59 = vld [vmem:[%s5969_s24 + $0x34] ss:$12 sps:$4 sm:$0xff]   ;;  %v5310_v61 = vld [vmem:[%s5969_s24 + $0x98] ss:$12 sps:$4 sm:$0xff]   ;;  %v5314_v1 = vld [vmem:[%s5969_s24 + $0xb0] ss:$12 sps:$4 sm:$0xff]  }
  0x48   : > { %v5311_v62 = vld [vmem:[%s5969_s24 + $0x4c] ss:$12 sps:$4 sm:$0xff]   ;;  %v5313_v63 = vld [vmem:[%s5969_s24 + $0x48] ss:$12 sps:$4 sm:$0xff]   ;;  %v5315_v2 = vld [vmem:[%s5969_s24 + $0x64] ss:$12 sps:$4 sm:$0xff]  }
  0x49   : > { %1109 = vmatpush1.bf16.msra.mxu0 %v5257_v23  ;;  %v5317_v3 = vld [vmem:[%s5969_s24 + $0x60] ss:$12 sps:$4 sm:$0xff]   ;;  %v5318_v4 = vld [vmem:[%s5969_s24 + $0xc8] ss:$12 sps:$4 sm:$0xff]   ;;  %v5321_v6 = vld [vmem:[%s5969_s24 + $0x78] ss:$12 sps:$4 sm:$0xff]  }
  0x4a   : > { %1462 = vmatpush1.bf16.msra.mxu1 %v5258_v24  ;;  %1110 = vmatprep.subr.bf16.mxu0 %v5259_v25  ;;  %v5319_v5 = vld [vmem:[%s5969_s24 + $0x7c] ss:$12 sps:$4 sm:$0xff]   ;;  %v5322_v7 = vld [vmem:[%s5969_s24 + $0xe0] ss:$12 sps:$4 sm:$0xff]   ;;  %v5326_v10 = vld [vmem:[%s5969_s24 + $0xf8] ss:$12 sps:$4 sm:$0xff]  }
  0x4b   : > { %1463 = vmatprep.subr.bf16.mxu1 %v5261_v26  ;;  %v5323_v8 = vld [vmem:[%s5969_s24 + $0x94] ss:$12 sps:$4 sm:$0xff]   ;;  %v5325_v9 = vld [vmem:[%s5969_s24 + $0x90] ss:$12 sps:$4 sm:$0xff]   ;;  %v5327_v11 = vld [vmem:[%s5969_s24 + $0xac] ss:$12 sps:$4 sm:$0xff]  }
  0x4c   : > { %v5329_v12 = vld [vmem:[%s5969_s24 + $0xa8] ss:$12 sps:$4 sm:$0xff]   ;;  %v5330_v13 = vld [vmem:[%s5969_s24 + $0x110] ss:$12 sps:$4 sm:$0xff]   ;;  %v5333_v15 = vld [vmem:[%s5969_s24 + $0xc0] ss:$12 sps:$4 sm:$0xff]  }
  0x4d   : > { %1111 = vmatpush1.bf16.msra.mxu0 %v5263_v27  ;;  %v5331_v14 = vld [vmem:[%s5969_s24 + $0xc4] ss:$12 sps:$4 sm:$0xff]   ;;  %v5334_v16 = vld [vmem:[%s5969_s24 + $0x128] ss:$12 sps:$4 sm:$0xff]   ;;  %v5338_v19 = vld [vmem:[%s5969_s24 + $0x140] ss:$12 sps:$4 sm:$0xff]  }
  0x4e   : > { %1464 = vmatpush1.bf16.msra.mxu1 %v5264_v28  ;;  %1112 = vmatprep.subr.bf16.mxu0 %v5265_v29  ;;  %v5335_v17 = vld [vmem:[%s5969_s24 + $0xdc] ss:$12 sps:$4 sm:$0xff]   ;;  %v5337_v18 = vld [vmem:[%s5969_s24 + $0xd8] ss:$12 sps:$4 sm:$0xff]   ;;  %v5339_v20 = vld [vmem:[%s5969_s24 + $0xf4] ss:$12 sps:$4 sm:$0xff]  }
  0x4f   : > { %1465 = vmatprep.subr.bf16.mxu1 %v5267_v30  ;;  %v5341_v21 = vld [vmem:[%s5969_s24 + $0xf0] ss:$12 sps:$4 sm:$0xff]   ;;  %v5342_v22 = vld [vmem:[%s5969_s24 + $0x158] ss:$12 sps:$4 sm:$0xff]   ;;  %v5345_v24 = vld [vmem:[%s5969_s24 + $0x108] ss:$12 sps:$4 sm:$0xff]  }
  0x50   : > { %v5343_v23 = vld [vmem:[%s5969_s24 + $0x10c] ss:$12 sps:$4 sm:$0xff]   ;;  %v5346_v25 = vld [vmem:[%s5969_s24 + $0x170] ss:$12 sps:$4 sm:$0xff]   ;;  %v5350_v28 = vld [vmem:[%s5969_s24 + $0x188] ss:$12 sps:$4 sm:$0xff]  }
  0x51   : > { %1113 = vmatpush1.bf16.msra.mxu0 %v5269_v31  ;;  %v5347_v26 = vld [vmem:[%s5969_s24 + $0x124] ss:$12 sps:$4 sm:$0xff]   ;;  %v5349_v27 = vld [vmem:[%s5969_s24 + $0x120] ss:$12 sps:$4 sm:$0xff]   ;;  %v5351_v29 = vld [vmem:[%s5969_s24 + $0x13c] ss:$12 sps:$4 sm:$0xff]  }
  0x52   : > { %1466 = vmatpush1.bf16.msra.mxu1 %v5270_v32  ;;  %1114 = vmatprep.subr.bf16.mxu0 %v5271_v33  ;;  %v5353_v30 = vld [vmem:[%s5969_s24 + $0x138] ss:$12 sps:$4 sm:$0xff]   ;;  %v5354_v31 = vld [vmem:[%s5969_s24 + $0x1a0] ss:$12 sps:$4 sm:$0xff]   ;;  %v5357_v33 = vld [vmem:[%s5969_s24 + $0x150] ss:$12 sps:$4 sm:$0xff]  }
  0x53   : > { %v5355_v32 = vld [vmem:[%s5969_s24 + $0x154] ss:$12 sps:$4 sm:$0xff]   ;;  %vm1916_vm0 = vcmask 523264   ;;  %s5875_s7 = smov 64  }
  0x54   : > { %v5365_v39 = vld [vmem:[%s5969_s24 + $0x180] ss:$12 sps:$4 sm:$0xff]  }
  0x55   : > { %1484 = vmatmul.mubr.bf16.vlgmr.msra.gmra.mxu1 %v5273_v34  ;;  %1115 = vmatpush2.bf16.msra.mxu0 %v5274_v35  ;;  %v5358_v34 = vld [vmem:[%s5969_s24 + $0x1b8] ss:$12 sps:$4 sm:$0xff]  }
  0x56   : > { %1493 = vmatprep.mubr.bf16.mxu1 %v5874_v0  ;;  %1116 = vmatprep.subr.bf16.mxu0 %v5275_v36  ;;  %v5359_v35 = vld [vmem:[%s5969_s24 + $0x16c] ss:$12 sps:$4 sm:$0xff]   ;;  %v5361_v36 = vld [vmem:[%s5969_s24 + $0x168] ss:$12 sps:$4 sm:$0xff]  }
  0x59   : > { %1117 = vmatpush2.bf16.msra.mxu0 %v5277_v37  ;;  %v5362_v37 = vld [vmem:[%s5969_s24 + $0x1d0] ss:$12 sps:$4 sm:$0xff]  }
  0x5a   : > { %1118 = vmatprep.subr.bf16.mxu0 %v5278_v38  ;;  %v5363_v38 = vld [vmem:[%s5969_s24 + $0x184] ss:$12 sps:$4 sm:$0xff]  }
  0x5d   : > { %1494 = vmatmul.mubr.bf16.gmra.mxu1 %v5280_v40  ;;  %1119 = vmatpush2.bf16.msra.mxu0 %v5281_v41  ;;  %v5366_v40 = vld [vmem:[%s5969_s24 + $0x1e8] ss:$12 sps:$4 sm:$0xff]  }
  0x5e   : > { %1503 = vmatprep.mubr.bf16.mxu1 %v5874_v0  ;;  %1120 = vmatprep.subr.bf16.mxu0 %v5282_v42  ;;  %v5367_v41 = vld [vmem:[%s5969_s24 + $0x19c] ss:$12 sps:$4 sm:$0xff]   ;;  %v5369_v42 = vld [vmem:[%s5969_s24 + $0x198] ss:$12 sps:$4 sm:$0xff]  }
  0x61   : > { %1121 = vmatpush2.bf16.msra.mxu0 %v5284_v43  ;;  %v5370_v43 = vld [vmem:[%s5969_s24 + $0x200] ss:$12 sps:$4 sm:$0xff]  }
  0x62   : > { %1122 = vmatprep.subr.bf16.mxu0 %v5285_v44  ;;  %v5371_v44 = vld [vmem:[%s5969_s24 + $0x1b4] ss:$12 sps:$4 sm:$0xff]  }
  0x65   : > { %1504 = vmatmul.mubr.bf16.gmra.mxu1 %v5287_v45  ;;  %1123 = vmatpush2.bf16.msra.mxu0 %v5288_v46  ;;  %v5373_v45 = vld [vmem:[%s5969_s24 + $0x1b0] ss:$12 sps:$4 sm:$0xff]   ;;  %v5374_v46 = vld [vmem:[%s5969_s24 + $0x218] ss:$12 sps:$4 sm:$0xff]  }
  0x66   : > { %1513 = vmatprep.mubr.bf16.mxu1 %v5874_v0  ;;  %1124 = vmatprep.subr.bf16.mxu0 %v5289_v47  ;;  %v5375_v47 = vld [vmem:[%s5969_s24 + $0x1cc] ss:$12 sps:$4 sm:$0xff]  }
  0x69   : > { %1125 = vmatpush2.bf16.msra.mxu0 %v5291_v48  ;;  %v5377_v48 = vld [vmem:[%s5969_s24 + $0x1c8] ss:$12 sps:$4 sm:$0xff]  }
  0x6a   : > { %1126 = vmatprep.subr.bf16.mxu0 %v5292_v49  ;;  %v5378_v49 = vld [vmem:[%s5969_s24 + $0x230] ss:$12 sps:$4 sm:$0xff]  }
  0x6d   : > { %1514 = vmatmul.mubr.bf16.gmra.mxu1 %v5294_v50  ;;  %1127 = vmatpush2.bf16.msra.mxu0 %v5295_v51  ;;  %v5379_v50 = vld [vmem:[%s5969_s24 + $0x1e4] ss:$12 sps:$4 sm:$0xff]   ;;  %v5381_v51 = vld [vmem:[%s5969_s24 + $0x1e0] ss:$12 sps:$4 sm:$0xff]  }
  0x6e   : > { %1523 = vmatprep.mubr.bf16.mxu1 %v5874_v0  ;;  %1128 = vmatprep.subr.bf16.mxu0 %v5296_v52  ;;  %v5382_v52 = vld [vmem:[%s5969_s24 + $0x248] ss:$12 sps:$4 sm:$0xff]  }
  0x71   : > { %1129 = vmatpush2.bf16.msra.mxu0 %v5298_v53  ;;  %v5383_v53 = vld [vmem:[%s5969_s24 + $0x1fc] ss:$12 sps:$4 sm:$0xff]  }
  0x74   : > { %1131 = vmatmul.mubr.bf16.vlgmr.msra.gmra.mxu0 %v5299_v54 }
  0x75   : > { %1524 = vmatmul.mubr.bf16.gmra.mxu1 %v5302_v55  ;;  %1140 = vmatprep.mubr.bf16.mxu0 %v5303_v56  ;;  %v5385_v56 = vld [vmem:[%s5969_s24 + $0x1f8] ss:$12 sps:$4 sm:$0xff]  }
  0x76   : > { %1533 = vmatprep.mubr.bf16.mxu1 %v5874_v0 }
  0x7c   : > { %1141 = vmatmul.mubr.bf16.gmra.mxu0 %v5305_v57  ;;  %v5386_v57 = vld [vmem:[%s5969_s24 + $0x260] ss:$12 sps:$4 sm:$0xff]  }
  0x7d   : > { %1534 = vmatmul.mubr.bf16.gmra.mxu1 %v5306_v58  ;;  %1150 = vmatprep.mubr.bf16.mxu0 %v5307_v59  ;;  %v5387_v59 = vld [vmem:[%s5969_s24 + $0x214] ss:$12 sps:$4 sm:$0xff]  }
  0x7e   : > { %1543 = vmatprep.mubr.bf16.mxu1 %v5874_v0 }
  0x84   : > { %1151 = vmatmul.mubr.bf16.gmra.mxu0 %v5309_v60 }
  0x85   : > { %1544 = vmatmul.mubr.bf16.gmra.mxu1 %v5310_v61  ;;  %1160 = vmatprep.mubr.bf16.mxu0 %v5311_v62 }
  0x86   : > { %1553 = vmatprep.mubr.bf16.mxu1 %v5874_v0 }
  0x8c   : > { %1161 = vmatmul.mubr.bf16.gmra.mxu0 %v5313_v63  ;;  %v5389_v63 = vld [vmem:[%s5969_s24 + $0x210] ss:$12 sps:$4 sm:$0xff]  }
  0x8d   : > { %1554 = vmatmul.mubr.bf16.gmra.mxu1 %v5314_v1  ;;  %1170 = vmatprep.mubr.bf16.mxu0 %v5315_v2  ;;  %v5390_v1 = vld [vmem:[%s5969_s24 + $0x278] ss:$12 sps:$4 sm:$0xff]  }
  0x8e   : > { %1563 = vmatprep.mubr.bf16.mxu1 %v5874_v0 }
  0x94   : > { %1171 = vmatmul.mubr.bf16.gmra.mxu0 %v5317_v3  ;;  %v5391_v3 = vld [vmem:[%s5969_s24 + $0x22c] ss:$12 sps:$4 sm:$0xff]  }
  0x95   : > { %1564 = vmatmul.mubr.bf16.gmra.mxu1 %v5318_v4  ;;  %1180 = vmatprep.mubr.bf16.mxu0 %v5319_v5 }
  0x96   : > { %1573 = vmatprep.mubr.bf16.mxu1 %v5874_v0 }
  0x9c   : > { %1181 = vmatmul.mubr.bf16.gmra.mxu0 %v5321_v6 }
  0x9d   : > { %1574 = vmatmul.mubr.bf16.gmra.mxu1 %v5322_v7  ;;  %1190 = vmatprep.mubr.bf16.mxu0 %v5323_v8  ;;  %v5393_v7 = vld [vmem:[%s5969_s24 + $0x228] ss:$12 sps:$4 sm:$0xff]   ;;  %v5394_v8 = vld [vmem:[%s5969_s24 + $0x290] ss:$12 sps:$4 sm:$0xff]  }
  0x9e   : > { %1583 = vmatprep.mubr.bf16.mxu1 %v5874_v0 }
  0xa4   : > { %1191 = vmatmul.mubr.bf16.gmra.mxu0 %v5325_v9 }
  0xa5   : > { %1584 = vmatmul.mubr.bf16.gmra.mxu1 %v5326_v10  ;;  %1200 = vmatprep.mubr.bf16.mxu0 %v5327_v11  ;;  %v5395_v10 = vld [vmem:[%s5969_s24 + $0x244] ss:$12 sps:$4 sm:$0xff]  }
  0xa6   : > { %1593 = vmatprep.mubr.bf16.mxu1 %v5874_v0 }
  0xac   : > { %1201 = vmatmul.mubr.bf16.gmra.mxu0 %v5329_v12 }
  0xad   : > { %1594 = vmatmul.mubr.bf16.gmra.mxu1 %v5330_v13  ;;  %1210 = vmatprep.mubr.bf16.mxu0 %v5331_v14  ;;  %v5397_v14 = vld [vmem:[%s5969_s24 + $0x240] ss:$12 sps:$4 sm:$0xff]  }
  0xae   : > { %1603 = vmatprep.mubr.bf16.mxu1 %v5874_v0 }
  0xb4   : > { %1211 = vmatmul.mubr.bf16.gmra.mxu0 %v5333_v15  ;;  %v5398_v15 = vld [vmem:[%s5969_s24 + $0x2a8] ss:$12 sps:$4 sm:$0xff]  }
  0xb5   : > { %1604 = vmatmul.mubr.bf16.gmra.mxu1 %v5334_v16  ;;  %1220 = vmatprep.mubr.bf16.mxu0 %v5335_v17  ;;  %v5399_v17 = vld [vmem:[%s5969_s24 + $0x25c] ss:$12 sps:$4 sm:$0xff]  }
  0xb6   : > { %1613 = vmatprep.mubr.bf16.mxu1 %v5874_v0 }
  0xbc   : > { %1221 = vmatmul.mubr.bf16.gmra.mxu0 %v5337_v18 }
  0xbd   : > { %1614 = vmatmul.mubr.bf16.gmra.mxu1 %v5338_v19  ;;  %1230 = vmatprep.mubr.bf16.mxu0 %v5339_v20 }
  0xbe   : > { %1623 = vmatprep.mubr.bf16.mxu1 %v5874_v0 }
  0xc4   : > { %1231 = vmatmul.mubr.bf16.gmra.mxu0 %v5341_v21 }
  0xc5   : > { %1624 = vmatmul.mubr.bf16.gmra.mxu1 %v5342_v22  ;;  %1240 = vmatprep.mubr.bf16.mxu0 %v5343_v23 }
  0xc6   : > { %1633 = vmatprep.mubr.bf16.mxu1 %v5874_v0 }
  0xcc   : > { %1241 = vmatmul.mubr.bf16.gmra.mxu0 %v5345_v24 }
  0xcd   : > { %1634 = vmatmul.mubr.bf16.gmra.mxu1 %v5346_v25  ;;  %1250 = vmatprep.mubr.bf16.mxu0 %v5347_v26  ;;  %v5401_v25 = vld [vmem:[%s5969_s24 + $0x258] ss:$12 sps:$4 sm:$0xff]   ;;  %v5402_v26 = vld [vmem:[%s5969_s24 + $0x2c0] ss:$12 sps:$4 sm:$0xff]  }
  0xce   : > { %1643 = vmatprep.mubr.bf16.mxu1 %v5874_v0 }
  0xd4   : > { %1251 = vmatmul.mubr.bf16.gmra.mxu0 %v5349_v27 }
  0xd5   : > { %1644 = vmatmul.mubr.bf16.gmra.mxu1 %v5350_v28  ;;  %1260 = vmatprep.mubr.bf16.mxu0 %v5351_v29  ;;  %v5403_v28 = vld [vmem:[%s5969_s24 + $0x274] ss:$12 sps:$4 sm:$0xff]  }
  0xd6   : > { %1653 = vmatprep.mubr.bf16.mxu1 %v5874_v0 }
  0xdc   : > { %1261 = vmatmul.mubr.bf16.gmra.mxu0 %v5353_v30 }
  0xdd   : > { %1654 = vmatmul.mubr.bf16.gmra.mxu1 %v5354_v31  ;;  %1270 = vmatprep.mubr.bf16.mxu0 %v5355_v32 }
  0xde   : > { %1663 = vmatprep.mubr.bf16.mxu1 %v5874_v0 }
  0xe4   : > { %1271 = vmatmul.mubr.bf16.gmra.mxu0 %v5357_v33 }
  0xe5   : > { %1664 = vmatmul.mubr.bf16.gmra.mxu1 %v5358_v34  ;;  %1280 = vmatprep.mubr.bf16.mxu0 %v5359_v35 }
  0xe6   : > { %1673 = vmatprep.mubr.bf16.mxu1 %v5874_v0 }
  0xec   : > { %1281 = vmatmul.mubr.bf16.gmra.mxu0 %v5361_v36 }
  0xed   : > { %1674 = vmatmul.mubr.bf16.gmra.mxu1 %v5362_v37  ;;  %1290 = vmatprep.mubr.bf16.mxu0 %v5363_v38 }
  0xee   : > { %1683 = vmatprep.mubr.bf16.mxu1 %v5874_v0 }
  0xf4   : > { %1291 = vmatmul.mubr.bf16.gmra.mxu0 %v5365_v39 }
  0xf5   : > { %1684 = vmatmul.mubr.bf16.gmra.mxu1 %v5366_v40  ;;  %1300 = vmatprep.mubr.bf16.mxu0 %v5367_v41  ;;  %v5405_v40 = vld [vmem:[%s5969_s24 + $0x270] ss:$12 sps:$4 sm:$0xff]   ;;  %v5406_v41 = vld [vmem:[%s5969_s24 + $0x2d8] ss:$12 sps:$4 sm:$0xff]  }
  0xf6   : > { %1693 = vmatprep.mubr.bf16.mxu1 %v5874_v0 }
  0xfc   : > { %1301 = vmatmul.mubr.bf16.gmra.mxu0 %v5369_v42 }
  0xfd   : > { %1694 = vmatmul.mubr.bf16.gmra.mxu1 %v5370_v43  ;;  %1310 = vmatprep.mubr.bf16.mxu0 %v5371_v44  ;;  %v5407_v44 = vld [vmem:[%s5969_s24 + $0x28c] ss:$12 sps:$4 sm:$0xff]  }
  0xfe   : > { %1703 = vmatprep.mubr.bf16.mxu1 %v5874_v0 }
 0x104   : > { %1311 = vmatmul.mubr.bf16.gmra.mxu0 %v5373_v45 }
 0x105   : > { %1704 = vmatmul.mubr.bf16.gmra.mxu1 %v5374_v46  ;;  %1320 = vmatprep.mubr.bf16.mxu0 %v5375_v47 }
 0x106   : > { %1713 = vmatprep.mubr.bf16.mxu1 %v5874_v0 }
 0x10c   : > { %1321 = vmatmul.mubr.bf16.gmra.mxu0 %v5377_v48 }
 0x10d   : > { %1714 = vmatmul.mubr.bf16.gmra.mxu1 %v5378_v49  ;;  %1330 = vmatprep.mubr.bf16.mxu0 %v5379_v50 }
 0x10e   : > { %1723 = vmatprep.mubr.bf16.mxu1 %v5874_v0 }
 0x114   : > { %1331 = vmatmul.mubr.bf16.gmra.mxu0 %v5381_v51 }
 0x115   : > { %1724 = vmatmul.mubr.bf16.gmra.mxu1 %v5382_v52  ;;  %v6212_v54 = vpop.f32.mrf.mxu1  ;;  %1340 = vmatprep.mubr.bf16.mxu0 %v5383_v53 }
 0x116   : > { %1733 = vmatprep.mubr.bf16.mxu1 %v5874_v0 }
 0x117   : > { %v1487_v55 = vpop.f32.mrf.mxu1 }
 0x119   : > { %v6217_v58 = vpop.f32.mrf.mxu1 }
 0x11b   : > { %v1491_v60 = vpop.f32.mrf.mxu1 }
 0x11c   : > { %1341 = vmatmul.mubr.bf16.gmra.mxu0 %v5385_v56 }
 0x11d   : > { %1734 = vmatmul.mubr.bf16.gmra.mxu1 %v5386_v57  ;;  %v1495_v61 = vpop.f32.mrf.mxu1  ;;  %1350 = vmatprep.mubr.bf16.mxu0 %v5387_v59 }
 0x11e   : > { %1743 = vmatprep.mubr.bf16.mxu1 %v5874_v0 }
 0x11f   : > { %v1497_v62 = vpop.f32.mrf.mxu1 }
 0x121   : > { %v1499_v2 = vpop.f32.mrf.mxu1 }
 0x123   : > { %v1501_v4 = vpop.f32.mrf.mxu1 }
 0x124   : > { %1351 = vmatmul.mubr.bf16.gmra.mxu0 %v5389_v63 }
 0x125   : > { %1744 = vmatmul.mubr.bf16.gmra.mxu1 %v5390_v1  ;;  %v6224_v5 = vpop.f32.mrf.mxu1  ;;  %1360 = vmatprep.mubr.bf16.mxu0 %v5391_v3 }
 0x126   : > { %1753 = vmatprep.mubr.bf16.mxu1 %v5874_v0 }
 0x127   : > { %v6227_v6 = vpop.f32.mrf.mxu1 }
 0x129   : > { %v6231_v9 = vpop.f32.mrf.mxu1 }
 0x12b   : > { %v6234_v11 = vpop.f32.mrf.mxu1 }
 0x12c   : > { %1361 = vmatmul.mubr.bf16.gmra.mxu0 %v5393_v7 }
 0x12d   : > { %1754 = vmatmul.mubr.bf16.gmra.mxu1 %v5394_v8  ;;  %v6236_v12 = vpop.f32.mrf.mxu1  ;;  %1370 = vmatprep.mubr.bf16.mxu0 %v5395_v10 }
 0x12e   : > { %1763 = vmatprep.mubr.bf16.mxu1 %v5874_v0 }
 0x12f   : > { %v6239_v13 = vpop.f32.mrf.mxu1 }
 0x131   : > { %v6243_v16 = vpop.f32.mrf.mxu1 }
 0x133   : > { %v6246_v18 = vpop.f32.mrf.mxu1 }
 0x134   : > { %v1132_v19 = vpop.f32.mrf.mxu0  ;;  %1371 = vmatmul.mubr.bf16.gmra.mxu0 %v5397_v14 }
 0x135   : > { %1764 = vmatmul.mubr.bf16.gmra.mxu1 %v5398_v15  ;;  %v6248_v20 = vpop.f32.mrf.mxu1  ;;  %1380 = vmatprep.mubr.bf16.mxu0 %v5399_v17  ;;  %v1486_v63 = vadd.f32 %v6212_v54, %v1132_v19  ;;  %v5411_v15 = vld [vmem:[%s5969_s24 + $0x2a0] ss:$12 sps:$4 sm:$0xff]  }
 0x136   : > { %1773 = vmatprep.mubr.bf16.mxu1 %v5874_v0  ;;  %v1134_v21 = vpop.f32.mrf.mxu0 }
 0x137   : > { %v6251_v22 = vpop.f32.mrf.mxu1  ;;  %v6253_v23 = vadd.f32 %v1487_v55, %v1134_v21  ;;  %v5416_v21 = vld [vmem:[%s5969_s24 + $0x2bc] ss:$12 sps:$4 sm:$0xff]  }
 0x138   : > { %v1136_v24 = vpop.f32.mrf.mxu0 }
 0x139   : > { %8661 = vst [vmem:[#allocation5_spill] sm:$0xff] %v6253_v23  ;;  %v6257_v27 = vpop.f32.mrf.mxu1  ;;  %v1490_v56 = vadd.f32 %v6217_v58, %v1136_v24 }
 0x13a   : > { %v1138_v29 = vpop.f32.mrf.mxu0 }
 0x13b   : > { %v6260_v30 = vpop.f32.mrf.mxu1  ;;  %v6262_v31 = vadd.f32 %v1491_v60, %v1138_v29  ;;  %v5409_v60 = vld [vmem:[%s5969_s24 + $0x288] ss:$12 sps:$4 sm:$0xff]  }
 0x13c   : > { %8662 = vst [vmem:[#allocation6_spill] sm:$0xff] %v6260_v30  ;;  %v1142_v32 = vpop.f32.mrf.mxu0  ;;  %1381 = vmatmul.mubr.bf16.gmra.mxu0 %v5401_v25 }
 0x13d   : > { %8663 = vst [vmem:[#allocation7_spill] sm:$0xff] %v6262_v31  ;;  %1774 = vmatmul.mubr.bf16.gmra.mxu1 %v5402_v26  ;;  %v6264_v33 = vpop.f32.mrf.mxu1  ;;  %v1496_v35 = vadd.f32 %v1495_v61, %v1142_v32  ;;  %1390 = vmatprep.mubr.bf16.mxu0 %v5403_v28  ;;  %v5410_v61 = vld [vmem:[%s5969_s24 + $0x2f0] ss:$12 sps:$4 sm:$0xff]  }
 0x13e   : > { %1783 = vmatprep.mubr.bf16.mxu1 %v5874_v0  ;;  %v1144_v36 = vpop.f32.mrf.mxu0 }
 0x13f   : > { %v6269_v37 = vpop.f32.mrf.mxu1  ;;  %v6271_v38 = vadd.f32 %v1497_v62, %v1144_v36 }
 0x140   : > { %v1146_v39 = vpop.f32.mrf.mxu0 }
 0x141   : > { %8664 = vst [vmem:[#allocation8_spill] sm:$0xff] %v6271_v38  ;;  %v6275_v42 = vpop.f32.mrf.mxu1  ;;  %v1500_v43 = vadd.f32 %v1499_v2, %v1146_v39  ;;  %v5413_v2 = vld [vmem:[%s5969_s24 + $0x2a4] ss:$12 sps:$4 sm:$0xff]  }
 0x142   : > { %v1148_v45 = vpop.f32.mrf.mxu0 }
 0x143   : > { %v6278_v46 = vpop.f32.mrf.mxu1  ;;  %v6280_v47 = vpack.c.bf16 %v1500_v43, %v1496_v35  ;;  %v6282_v48 = vadd.f32 %v1501_v4, %v1148_v45  ;;  %v6305_v4 = vpack.c.bf16 %v1490_v56, %v1486_v63  ;;  %v5419_v43 = vld [vmem:[%s5969_s24 + $0x2d4] ss:$12 sps:$4 sm:$0xff]  }
 0x144   : > { %8665 = vst [vmem:[#allocation9_spill] sm:$0xff] %v6278_v46  ;;  %v1152_v49 = vpop.f32.mrf.mxu0  ;;  %1391 = vmatmul.mubr.bf16.gmra.mxu0 %v5405_v40  ;;  %v5414_v40 = vld [vmem:[%s5969_s24 + $0x2b8] ss:$12 sps:$4 sm:$0xff]  }
 0x145   : > { %8666 = vst [vmem:[#allocation10_spill] sm:$0xff] %v6282_v48  ;;  %1784 = vmatmul.mubr.bf16.gmra.mxu1 %v5406_v41  ;;  %v6284_v50 = vpop.f32.mrf.mxu1  ;;  %v1506_v52 = vadd.f32 %v6224_v5, %v1152_v49  ;;  %1400 = vmatprep.mubr.bf16.mxu0 %v5407_v44 }
 0x146   : > { %1793 = vmatprep.mubr.bf16.mxu1 %v5874_v0  ;;  %v1154_v53 = vpop.f32.mrf.mxu0 }
 0x147   : > { %v6290_v55 = vpop.f32.mrf.mxu1  ;;  %v6294_v57 = vadd.f32 %v6227_v6, %v1154_v53 }
 0x148   : > { %v1156_v59 = vpop.f32.mrf.mxu0 }
 0x149   : > { %8667 = vst [vmem:[#allocation11_spill] sm:$0xff] %v6294_v57  ;;  %v6298_v62 = vpop.f32.mrf.mxu1  ;;  %v1510_v1 = vadd.f32 %v6231_v9, %v1156_v59 }
 0x14a   : > { %v1158_v3 = vpop.f32.mrf.mxu0 }
 0x14b   : > { %v6303_v0 = vpop.f32.mrf.mxu1  ;;  %v6307_v58 = vpack.c.bf16 %v1510_v1, %v1506_v52  ;;  %v6310_v5 = vadd.f32 %v6234_v11, %v1158_v3  ;;  %v5422_v1 = vld [vmem:[%s5969_s24 + $0x2ec] ss:$12 sps:$4 sm:$0xff]  }
 0x14c   : > { %v1162_v6 = vpop.f32.mrf.mxu0  ;;  %1401 = vmatmul.mubr.bf16.gmra.mxu0 %v5409_v60  ;;  %v5417_v60 = vld [vmem:[%s5969_s24 + $0x2d0] ss:$12 sps:$4 sm:$0xff]  }
 0x14d   : > { %8668 = vst [vmem:[#allocation12_spill] sm:$0xff] %v6310_v5  ;;  %1794 = vmatmul.mubr.bf16.gmra.mxu1 %v5410_v61  ;;  %v6312_v54 = vpop.f32.mrf.mxu1  ;;  %v1516_v8 = vadd.f32 %v6236_v12, %v1162_v6  ;;  %1410 = vmatprep.mubr.bf16.mxu0 %v5413_v2 }
 0x14e   : > { %4841 = vmatprep.mubr.msk.bf16.mxu1 %vm1916_vm0, %v6305_v4  ;;  %v1164_v9 = vpop.f32.mrf.mxu0 }
 0x14f   : > { %v6319_v10 = vpop.f32.mrf.mxu1  ;;  %v6322_v11 = vadd.f32 %v6239_v13, %v1164_v9 }
 0x150   : > { %v1166_v14 = vpop.f32.mrf.mxu0 }
 0x151   : > { %8669 = vst [vmem:[#allocation13_spill] sm:$0xff] %v6322_v11  ;;  %v6325_v17 = vpop.f32.mrf.mxu1  ;;  %v1520_v19 = vadd.f32 %v6243_v16, %v1166_v14 }
 0x152   : > { %v1168_v24 = vpop.f32.mrf.mxu0 }
 0x153   : > { %v6329_v12 = vpop.f32.mrf.mxu1  ;;  %v6331_v25 = vpack.c.bf16 %v1520_v19, %v1516_v8  ;;  %v6334_v26 = vadd.f32 %v6246_v18, %v1168_v24  ;;  %v5420_v19 = vld [vmem:[%s5969_s24 + $0x2e8] ss:$12 sps:$4 sm:$0xff]   ;;  %s4515_s24 = sshll.u32 %s4507_s13, 1 }
 0x154   : > { %v1172_v28 = vpop.f32.mrf.mxu0  ;;  %1411 = vmatmul.mubr.bf16.gmra.mxu0 %v5411_v15  ;;  %p163_p8 = scmp.lt.s32.totalorder %s4515_s24, 3 }
 0x155   : > { %8670 = vst [vmem:[#allocation14_spill] sm:$0xff] %v6334_v26  ;;  %v6336_v13 = vpop.f32.mrf.mxu1  ;;  %v1526_v16 = vadd.f32 %v6248_v20, %v1172_v28  ;;  %1420 = vmatprep.mubr.bf16.mxu0 %v5416_v21 }
 0x156   : > { %v1174_v32 = vpop.f32.mrf.mxu0  ;;  %s9146_s24 = smov (!%p163_p8, %s4515_s24), 3 }
 0x157   : > { %v1567_v35 = vpop.f32.mrf.mxu1  ;;  %v6342_v36 = vadd.f32 %v6251_v22, %v1174_v32  ;;  %s4760_s12 = sshll.u32 %s9146_s24, 7 }
 0x158   : > { %v1176_v39 = vpop.f32.mrf.mxu0  ;;  %s8284_s9 = scalar_lea.vmem %s8465_s2, %s4760_s12 }
 0x159   : > { %8671 = vst [vmem:[#allocation15_spill] sm:$0xff] %v6342_v36  ;;  %v1569_v18 = vpop.f32.mrf.mxu1  ;;  %v1530_v41 = vadd.f32 %v6257_v27, %v1176_v39 }
 0x15a   : > { %v6347_v44 = vpop.f32.mrf.mxu0 }
 0x15b   : > { %8672 = vst [vmem:[#allocation16_spill] sm:$0xff] %v6347_v44  ;;  %v6349_v45 = vpop.f32.mrf.mxu1  ;;  %v6351_v49 = vpack.c.bf16 %v1530_v41, %v1526_v16 }
 0x15c   : > { %8673 = vst [vmem:[#allocation17_spill] sm:$0xff] %v6349_v45  ;;  %v1182_v20 = vpop.f32.mrf.mxu0  ;;  %1421 = vmatmul.mubr.bf16.gmra.mxu0 %v5414_v40 }
 0x15d   : > { %v1575_v52 = vpop.f32.mrf.mxu1  ;;  %v1536_v22 = vadd.f32 %v6264_v33, %v1182_v20  ;;  %1430 = vmatprep.mubr.bf16.mxu0 %v5419_v43 }
 0x15e   : > { %v1184_v53 = vpop.f32.mrf.mxu0 }
 0x15f   : > { %v1577_v56 = vpop.f32.mrf.mxu1  ;;  %v6355_v59 = vadd.f32 %v6269_v37, %v1184_v53 }
 0x160   : > { %v1186_v27 = vpop.f32.mrf.mxu0 }
 0x161   : > { %8674 = vst [vmem:[#allocation18_spill] sm:$0xff] %v6355_v59  ;;  %v1579_v61 = vpop.f32.mrf.mxu1  ;;  %v1540_v63 = vadd.f32 %v6275_v42, %v1186_v27 }
 0x162   : > { %v6360_v2 = vpop.f32.mrf.mxu0 }
 0x163   : > { %8675 = vst [vmem:[#allocation19_spill] sm:$0xff] %v6360_v2  ;;  %v6362_v3 = vpop.f32.mrf.mxu1  ;;  %v6364_v6 = vpack.c.bf16 %v1540_v63, %v1536_v22 }
 0x164   : > { %8676 = vst [vmem:[#allocation20_spill] sm:$0xff] %v6362_v3  ;;  %v1192_v33 = vpop.f32.mrf.mxu0  ;;  %1431 = vmatmul.mubr.bf16.gmra.mxu0 %v5417_v60 }
 0x165   : > { %8677 = vst [vmem:[#allocation21_spill] sm:$0xff] %v6364_v6  ;;  %v1585_v8 = vpop.f32.mrf.mxu1  ;;  %1440 = vmatprep.mubr.bf16.mxu0 %v5422_v1  ;;  %v1546_v42 = vadd.f32 %v6284_v50, %v1192_v33 }
 0x166   : > { %v1194_v9 = vpop.f32.mrf.mxu0 }
 0x167   : > { %v1587_v37 = vpop.f32.mrf.mxu1  ;;  %v6367_v14 = vadd.f32 %v6290_v55, %v1194_v9 }
 0x168   : > { %v1196_v15 = vpop.f32.mrf.mxu0 }
 0x169   : > { %8678 = vst [vmem:[#allocation22_spill] sm:$0xff] %v6367_v14  ;;  %v1589_v21 = vpop.f32.mrf.mxu1  ;;  %v1550_v24 = vadd.f32 %v6298_v62, %v1196_v15 }
 0x16a   : > { %v6372_v28 = vpop.f32.mrf.mxu0 }
 0x16b   : > { %v6374_v16 = vpop.f32.mrf.mxu1  ;;  %v6376_v32 = vpack.c.bf16 %v1550_v24, %v1546_v42 }
 0x16c   : > { %8679 = vst [vmem:[#allocation23_spill] sm:$0xff] %v6374_v16  ;;  %v1202_v39 = vpop.f32.mrf.mxu0  ;;  %1441 = vmatmul.mubr.bf16.gmra.mxu0 %v5420_v19 }
 0x16d   : > { %8680 = vst [vmem:[#allocation24_spill] sm:$0xff] %v6376_v32  ;;  %v1595_v40 = vpop.f32.mrf.mxu1  ;;  %1896 = vrot.lane.b32.xlu1 %v6376_v32, %s5875_s7  ;;  %v1556_v20 = vadd.f32 %v6312_v54, %v1202_v39 }
 0x16e   : > { %v1204_v55 = vpop.f32.mrf.mxu0 }
 0x16f   : > { %v1597_v41 = vpop.f32.mrf.mxu1  ;;  %v6381_v43 = vadd.f32 %v6319_v10, %v1204_v55 }
 0x170   : > { %v1206_v50 = vpop.f32.mrf.mxu0 }
 0x171   : > { %8681 = vst [vmem:[#allocation25_spill] sm:$0xff] %v6381_v43  ;;  %v1599_v62 = vpop.f32.mrf.mxu1  ;;  %v1560_v22 = vadd.f32 %v6325_v17, %v1206_v50 }
 0x172   : > { %v6385_v53 = vpop.f32.mrf.mxu0 }
 0x173   : > { %v6387_v27 = vpop.f32.mrf.mxu1  ;;  %v6389_v60 = vpack.c.bf16 %v1560_v22, %v1556_v20 }
 0x174   : > { %8682 = vst [vmem:[#allocation26_spill] sm:$0xff] %v6387_v27  ;;  %v1212_v63 = vpop.f32.mrf.mxu0 }
 0x175   : > { %8683 = vst [vmem:[#allocation27_spill] sm:$0xff] %v6389_v60  ;;  %v1605_v1 = vpop.f32.mrf.mxu1  ;;  %v1566_v33 = vadd.f32 %v6336_v13, %v1212_v63  ;;  %1898 = vrot.lane.b32.xlu0 %v6389_v60, %s5875_s7 }
 0x176   : > { %v1214_v10 = vpop.f32.mrf.mxu0 }
 0x177   : > { %v1607_v9 = vpop.f32.mrf.mxu1  ;;  %v6394_v15 = vadd.f32 %v1567_v35, %v1214_v10 }
 0x178   : > { %v1216_v54 = vpop.f32.mrf.mxu0 }
 0x179   : > { %8684 = vst [vmem:[#allocation28_spill] sm:$0xff] %v6394_v15  ;;  %v1609_v19 = vpop.f32.mrf.mxu1  ;;  %v1570_v17 = vadd.f32 %v1569_v18, %v1216_v54 }
 0x17a   : > { %v6396_v42 = vpop.f32.mrf.mxu0 }
 0x17b   : > { %8685 = vst [vmem:[#allocation29_spill] sm:$0xff] %v6396_v42  ;;  %v6398_v24 = vpop.f32.mrf.mxu1  ;;  %v6400_v39 = vpack.c.bf16 %v1570_v17, %v1566_v33 }
 0x17c   : > { %8686 = vst [vmem:[#allocation30_spill] sm:$0xff] %v6398_v24  ;;  %v1222_v55 = vpop.f32.mrf.mxu0 }
 0x17d   : > { %v6402_v50 = vpop.f32.mrf.mxu1  ;;  %v1576_v13 = vadd.f32 %v1575_v52, %v1222_v55 }
 0x17e   : > { %v1224_v20 = vpop.f32.mrf.mxu0 }
 0x17f   : > { %v1617_v22 = vpop.f32.mrf.mxu1  ;;  %v6404_v63 = vadd.f32 %v1577_v56, %v1224_v20 }
 0x180   : > { %v1226_v34 = vpop.f32.mrf.mxu0 }
 0x181   : > { %8687 = vst [vmem:[#allocation31_spill] sm:$0xff] %v6404_v63  ;;  %v1619_v35 = vpop.f32.mrf.mxu1  ;;  %v1580_v10 = vadd.f32 %v1579_v61, %v1226_v34 }
 0x182   : > { %v6406_v51 = vpop.f32.mrf.mxu0 }
 0x183   : > { %8688 = vst [vmem:[#allocation32_spill] sm:$0xff] %v6406_v51  ;;  %v6408_v18 = vpop.f32.mrf.mxu1  ;;  %v6410_v54 = vpack.c.bf16 %v1580_v10, %v1576_v13 }
 0x184   : > { %8689 = vst [vmem:[#allocation33_spill] sm:$0xff] %v6408_v18  ;;  %v1232_v7 = vpop.f32.mrf.mxu0 }
 0x185   : > { %v1625_v33 = vpop.f32.mrf.mxu1  ;;  %v1586_v17 = vadd.f32 %v1585_v8, %v1232_v7 }
 0x186   : > { %v1234_v29 = vpop.f32.mrf.mxu0 }
 0x187   : > { %v1627_v60 = vpop.f32.mrf.mxu1  ;;  %v6412_v32 = vadd.f32 %v1587_v37, %v1234_v29 }
 0x188   : > { %v1236_v52 = vpop.f32.mrf.mxu0 }
 0x189   : > { %8690 = vst [vmem:[#allocation34_spill] sm:$0xff] %v6412_v32  ;;  %v1629_v55 = vpop.f32.mrf.mxu1  ;;  %v1590_v56 = vadd.f32 %v1589_v21, %v1236_v52 }
 0x18a   : > { %v6414_v20 = vpop.f32.mrf.mxu0 }
 0x18b   : > { %8691 = vst [vmem:[#allocation35_spill] sm:$0xff] %v6414_v20  ;;  %v6416_v23 = vpop.f32.mrf.mxu1  ;;  %v6418_v34 = vpack.c.bf16 %v1590_v56, %v1586_v17 }
 0x18c   : > { %v1242_v61 = vpop.f32.mrf.mxu0 }
 0x18d   : > { %v1635_v31 = vpop.f32.mrf.mxu1  ;;  %v1596_v13 = vadd.f32 %v1595_v40, %v1242_v61 }
 0x18e   : > { %v1244_v10 = vpop.f32.mrf.mxu0 }
 0x18f   : > { %v1637_v38 = vpop.f32.mrf.mxu1  ;;  %v6420_v48 = vadd.f32 %v1597_v41, %v1244_v10 }
 0x190   : > { %v1246_v7 = vpop.f32.mrf.mxu0 }
 0x191   : > { %8692 = vst [vmem:[#allocation36_spill] sm:$0xff] %v6420_v48  ;;  %v1639_v8 = vpop.f32.mrf.mxu1  ;;  %v1600_v29 = vadd.f32 %v1599_v62, %v1246_v7 }
 0x192   : > { %v6422_v37 = vpop.f32.mrf.mxu0 }
 0x193   : > { %8693 = vst [vmem:[#allocation37_spill] sm:$0xff] %v6422_v37  ;;  %v6424_v15 = vpop.f32.mrf.mxu1  ;;  %v6426_v21 = vpack.c.bf16 %v1600_v29, %v1596_v13 }
 0x194   : > { %v1252_v52 = vpop.f32.mrf.mxu0 }
 0x195   : > { %v1645_v57 = vpop.f32.mrf.mxu1  ;;  %v1606_v17 = vadd.f32 %v1605_v1, %v1252_v52 }
 0x196   : > { %v1254_v56 = vpop.f32.mrf.mxu0 }
 0x197   : > { %v1647_v5 = vpop.f32.mrf.mxu1  ;;  %v6428_v63 = vadd.f32 %v1607_v9, %v1254_v56 }
 0x198   : > { %v1256_v40 = vpop.f32.mrf.mxu0 }
 0x199   : > { %8694 = vst [vmem:[#allocation38_spill] sm:$0xff] %v6428_v63  ;;  %v1649_v61 = vpop.f32.mrf.mxu1  ;;  %v1610_v41 = vadd.f32 %v1609_v19, %v1256_v40 }
 0x19a   : > { %v6430_v10 = vpop.f32.mrf.mxu0 }
 0x19b   : > { %8695 = vst [vmem:[#allocation39_spill] sm:$0xff] %v6430_v10  ;;  %v6432_v45 = vpop.f32.mrf.mxu1  ;;  %v6434_v62 = vpack.c.bf16 %v1610_v41, %v1606_v17 }
 0x19c   : > { %8696 = vst [vmem:[#allocation40_spill] sm:$0xff] %v6432_v45  ;;  %v1262_v7 = vpop.f32.mrf.mxu0 }
 0x19d   : > { %v1655_v42 = vpop.f32.mrf.mxu1 }
 0x19e   : > { %v1264_v13 = vpop.f32.mrf.mxu0 }
 0x19f   : > { %v1657_v29 = vpop.f32.mrf.mxu1  ;;  %v6436_v11 = vadd.f32 %v1617_v22, %v1264_v13 }
 0x1a0   : > { %v1266_v1 = vpop.f32.mrf.mxu0 }
 0x1a1   : > { %8697 = vst [vmem:[#allocation41_spill] sm:$0xff] %v6436_v11  ;;  %v1659_v52 = vpop.f32.mrf.mxu1  ;;  %v1620_v13 = vadd.f32 %v1619_v35, %v1266_v1 }
 0x1a2   : > { %v6438_v26 = vpop.f32.mrf.mxu0 }
 0x1a3   : > { %8698 = vst [vmem:[#allocation42_spill] sm:$0xff] %v6438_v26  ;;  %v6440_v9 = vpop.f32.mrf.mxu1 }
 0x1a4   : > { %8699 = vst [vmem:[#allocation43_spill] sm:$0xff] %v6440_v9  ;;  %v1272_v56 = vpop.f32.mrf.mxu0  ;;  %v1616_v9 = vadd.f32 %v6402_v50, %v1262_v7 }
 0x1a5   : > { %v1665_v19 = vpop.f32.mrf.mxu1  ;;  %v1626_v45 = vadd.f32 %v1625_v33, %v1272_v56 }
 0x1a6   : > { %v1274_v40 = vpop.f32.mrf.mxu0  ;;  %v6453_v63 = vpack.c.bf16 %v1620_v13, %v1616_v9 }
 0x1a7   : > { %v1667_v32 = vpop.f32.mrf.mxu1  ;;  %v6442_v3 = vadd.f32 %v1627_v60, %v1274_v40 }
 0x1a8   : > { %v1276_v17 = vpop.f32.mrf.mxu0  ;;  %8703 = vst [vmem:[#allocation47_spill] sm:$0xff] %v6453_v63 }
 0x1a9   : > { %8700 = vst [vmem:[#allocation44_spill] sm:$0xff] %v6442_v3  ;;  %v1669_v41 = vpop.f32.mrf.mxu1  ;;  %v1630_v51 = vadd.f32 %v1629_v55, %v1276_v17 }
 0x1aa   : > { %v6444_v48 = vpop.f32.mrf.mxu0 }
 0x1ab   : > { %v6446_v22 = vpop.f32.mrf.mxu1  ;;  %v6448_v16 = vpack.c.bf16 %v1630_v51, %v1626_v45 }
 0x1ac   : > { %8701 = vst [vmem:[#allocation45_spill] sm:$0xff] %v6446_v22  ;;  %v1282_v20 = vpop.f32.mrf.mxu0 }
 0x1ad   : > { %8702 = vst [vmem:[#allocation46_spill] sm:$0xff] %v6448_v16  ;;  %v1675_v36 = vpop.f32.mrf.mxu1  ;;  %1912 = vrot.lane.b32.xlu1 %v6448_v16, %s5875_s7  ;;  %v1636_v17 = vadd.f32 %v1635_v31, %v1282_v20 }
 0x1ae   : > { %v1284_v60 = vpop.f32.mrf.mxu0 }
 0x1af   : > { %v1677_v40 = vpop.f32.mrf.mxu1  ;;  %v6455_v33 = vadd.f32 %v1637_v38, %v1284_v60 }
 0x1b0   : > { %v1286_v55 = vpop.f32.mrf.mxu0 }
 0x1b1   : > { %v1679_v56 = vpop.f32.mrf.mxu1  ;;  %v1640_v22 = vadd.f32 %v1639_v8, %v1286_v55  ;;  %1910 = vrot.lane.b32.xlu1 %v6453_v63, %s5875_s7 }
 0x1b2   : > { %v6459_v51 = vpop.f32.mrf.mxu0 }
 0x1b3   : > { %v6461_v45 = vpop.f32.mrf.mxu1  ;;  %v6463_v50 = vpack.c.bf16 %v1640_v22, %v1636_v17 }
 0x1b4   : > { %8704 = vst [vmem:[#allocation48_spill] sm:$0xff] %v6461_v45  ;;  %v1292_v35 = vpop.f32.mrf.mxu0 }
 0x1b5   : > { %8705 = vst [vmem:[#allocation49_spill] sm:$0xff] %v6463_v50  ;;  %v6465_v7 = vpop.f32.mrf.mxu1  ;;  %1914 = vrot.lane.b32.xlu0 %v6463_v50, %s5875_s7  ;;  %v1646_v8 = vadd.f32 %v1645_v57, %v1292_v35 }
 0x1b6   : > { %v1294_v38 = vpop.f32.mrf.mxu0 }
 0x1b7   : > { %v1687_v1 = vpop.f32.mrf.mxu1  ;;  %v6469_v9 = vadd.f32 %v1647_v5, %v1294_v38 }
 0x1b8   : > { %v1296_v31 = vpop.f32.mrf.mxu0 }
 0x1b9   : > { %8706 = vst [vmem:[#allocation50_spill] sm:$0xff] %v6469_v9  ;;  %v6471_v20 = vpop.f32.mrf.mxu1  ;;  %v1650_v13 = vadd.f32 %v1649_v61, %v1296_v31  ;;  %1894 = vrot.lane.b32.xlu0 %v6364_v6, %s5875_s7 }
 0x1ba   : > { %v6475_v22 = vpop.f32.mrf.mxu0 }
 0x1bb   : > { %8707 = vst [vmem:[#allocation51_spill] sm:$0xff] %v6475_v22  ;;  %v6477_v60 = vpop.f32.mrf.mxu1  ;;  %v6479_v55 = vpack.c.bf16 %v1650_v13, %v1646_v8 }
 0x1bc   : > { %8708 = vst [vmem:[#allocation52_spill] sm:$0xff] %v6477_v60  ;;  %v1302_v17 = vpop.f32.mrf.mxu0 }
 0x1bd   : > { %v6481_v50 = vpop.f32.mrf.mxu1  ;;  %v1656_v16 = vadd.f32 %v1655_v42, %v1302_v17  ;;  %4889 = vmatprep.mubr.msk.bf16.mxu0 %vm1916_vm0, %v6479_v55 }
 0x1be   : > { %v1304_v5 = vpop.f32.mrf.mxu0 }
 0x1bf   : > { %v1697_v38 = vpop.f32.mrf.mxu1  ;;  %v6485_v57 = vadd.f32 %v1657_v29, %v1304_v5 }
 0x1c0   : > { %v1306_v61 = vpop.f32.mrf.mxu0 }
 0x1c1   : > { %8709 = vst [vmem:[#allocation53_spill] sm:$0xff] %v6485_v57  ;;  %v6487_v35 = vpop.f32.mrf.mxu1  ;;  %v1660_v31 = vadd.f32 %v1659_v52, %v1306_v61 }
 0x1c2   : > { %v6489_v63 = vpop.f32.mrf.mxu0 }
 0x1c3   : > { %8710 = vst [vmem:[#allocation54_spill] sm:$0xff] %v6489_v63  ;;  %v6491_v9 = vpop.f32.mrf.mxu1  ;;  %v6493_v8 = vpack.c.bf16 %v1660_v31, %v1656_v16 }
 0x1c4   : > { %8711 = vst [vmem:[#allocation55_spill] sm:$0xff] %v6491_v9  ;;  %v1312_v13 = vpop.f32.mrf.mxu0 }
 0x1c5   : > { %v6495_v22 = vpop.f32.mrf.mxu1  ;;  %v1666_v42 = vadd.f32 %v1665_v19, %v1312_v13 }
 0x1c6   : > { %v1314_v17 = vpop.f32.mrf.mxu0 }
 0x1c7   : > { %v1707_v6 = vpop.f32.mrf.mxu1  ;;  %v6497_v45 = vadd.f32 %v1667_v32, %v1314_v17 }
 0x1c8   : > { %v1316_v29 = vpop.f32.mrf.mxu0 }
 0x1c9   : > { %8712 = vst [vmem:[#allocation56_spill] sm:$0xff] %v6497_v45  ;;  %v1709_v5 = vpop.f32.mrf.mxu1  ;;  %v1670_v57 = vadd.f32 %v1669_v41, %v1316_v29 }
 0x1ca   : > { %v6499_v60 = vpop.f32.mrf.mxu0 }
 0x1cb   : > { %8713 = vst [vmem:[#allocation57_spill] sm:$0xff] %v6499_v60  ;;  %v6501_v52 = vpop.f32.mrf.mxu1  ;;  %v6503_v61 = vpack.c.bf16 %v1670_v57, %v1666_v42 }
 0x1cc   : > { %8714 = vst [vmem:[#allocation58_spill] sm:$0xff] %v6501_v52  ;;  %v1322_v63 = vpop.f32.mrf.mxu0 }
 0x1cd   : > { %8715 = vst [vmem:[#allocation59_spill] sm:$0xff] %v6503_v61  ;;  %v1715_v16 = vpop.f32.mrf.mxu1  ;;  %v1676_v31 = vadd.f32 %v1675_v36, %v1322_v63 }
 0x1ce   : > { %v1324_v9 = vpop.f32.mrf.mxu0 }
 0x1cf   : > { %v1717_v27 = vpop.f32.mrf.mxu1  ;;  %v6505_v37 = vadd.f32 %v1677_v40, %v1324_v9 }
 0x1d0   : > { %v1326_v19 = vpop.f32.mrf.mxu0 }
 0x1d1   : > { %8716 = vst [vmem:[#allocation60_spill] sm:$0xff] %v6505_v37  ;;  %v1719_v13 = vpop.f32.mrf.mxu1  ;;  %v1680_v32 = vadd.f32 %v1679_v56, %v1326_v19 }
 0x1d2   : > { %v6507_v17 = vpop.f32.mrf.mxu0 }
 0x1d3   : > { %8717 = vst [vmem:[#allocation61_spill] sm:$0xff] %v6507_v17  ;;  %v6509_v45 = vpop.f32.mrf.mxu1  ;;  %v6511_v41 = vpack.c.bf16 %v1680_v32, %v1676_v31 }
 0x1d4   : > { %8718 = vst [vmem:[#allocation62_spill] sm:$0xff] %v6509_v45  ;;  %v6513_v29 = vpop.f32.mrf.mxu0 }
 0x1d5   : > { %8719 = vst [vmem:[#allocation63_spill] sm:$0xff] %v6511_v41  ;;  %v1725_v57 = vpop.f32.mrf.mxu1 }
 0x1d6   : > { %v1334_v42 = vpop.f32.mrf.mxu0 }
 0x1d7   : > { %v1727_v60 = vpop.f32.mrf.mxu1  ;;  %v6515_v52 = vadd.f32 %v1687_v1, %v1334_v42 }
 0x1d8   : > { %v6517_v36 = vpop.f32.mrf.mxu0 }
 0x1d9   : > { %8720 = vst [vmem:[#allocation64_spill] sm:$0xff] %v6515_v52  ;;  %v1729_v63 = vpop.f32.mrf.mxu1 }
 0x1da   : > { %v6519_v40 = vpop.f32.mrf.mxu0 }
 0x1db   : > { %8721 = vst [vmem:[#allocation65_spill] sm:$0xff] %v6519_v40  ;;  %v6521_v9 = vpop.f32.mrf.mxu1 }
 0x1dc   : > { %8722 = vst [vmem:[#allocation66_spill] sm:$0xff] %v6521_v9  ;;  %v1342_v56 = vpop.f32.mrf.mxu0 }
 0x1dd   : > { %v1735_v19 = vpop.f32.mrf.mxu1 }
 0x1de   : > { %v1344_v37 = vpop.f32.mrf.mxu0 }
 0x1df   : > { %v1737_v17 = vpop.f32.mrf.mxu1  ;;  %v6523_v31 = vadd.f32 %v1697_v38, %v1344_v37 }
 0x1e0   : > { %v1346_v32 = vpop.f32.mrf.mxu0 }
 0x1e1   : > { %8723 = vst [vmem:[#allocation67_spill] sm:$0xff] %v6523_v31  ;;  %v1739_v45 = vpop.f32.mrf.mxu1 }
 0x1e2   : > { %v6525_v59 = vpop.f32.mrf.mxu0 }
 0x1e3   : > { %8724 = vst [vmem:[#allocation68_spill] sm:$0xff] %v6525_v59  ;;  %v6527_v30 = vpop.f32.mrf.mxu1 }
 0x1e4   : > { %8725 = vst [vmem:[#allocation69_spill] sm:$0xff] %v6527_v30  ;;  %v1352_v1 = vpop.f32.mrf.mxu0 }
 0x1e5   : > { %v1745_v42 = vpop.f32.mrf.mxu1 }
 0x1e6   : > { %v1354_v52 = vpop.f32.mrf.mxu0 }
 0x1e7   : > { %v1747_v44 = vpop.f32.mrf.mxu1  ;;  %v6529_v11 = vadd.f32 %v1707_v6, %v1354_v52 }
 0x1e8   : > { %v1356_v40 = vpop.f32.mrf.mxu0 }
 0x1e9   : > { %8726 = vst [vmem:[#allocation70_spill] sm:$0xff] %v6529_v11  ;;  %v1749_v9 = vpop.f32.mrf.mxu1  ;;  %v1710_v26 = vadd.f32 %v1709_v5, %v1356_v40 }
 0x1ea   : > { %v6531_v24 = vpop.f32.mrf.mxu0 }
 0x1eb   : > { %8727 = vst [vmem:[#allocation71_spill] sm:$0xff] %v6531_v24  ;;  %v6533_v10 = vpop.f32.mrf.mxu1 }
 0x1ec   : > { %8728 = vst [vmem:[#allocation72_spill] sm:$0xff] %v6533_v10  ;;  %v1362_v37 = vpop.f32.mrf.mxu0 }
 0x1ed   : > { %v1755_v38 = vpop.f32.mrf.mxu1  ;;  %v1716_v2 = vadd.f32 %v1715_v16, %v1362_v37 }
 0x1ee   : > { %v1364_v31 = vpop.f32.mrf.mxu0 }
 0x1ef   : > { %v1757_v14 = vpop.f32.mrf.mxu1  ;;  %v6535_v46 = vadd.f32 %v1717_v27, %v1364_v31 }
 0x1f0   : > { %v1366_v59 = vpop.f32.mrf.mxu0 }
 0x1f1   : > { %v1759_v30 = vpop.f32.mrf.mxu1  ;;  %v1720_v3 = vadd.f32 %v1719_v13, %v1366_v59  ;;  %v1706_v59 = vadd.f32 %v6495_v22, %v1352_v1  ;;  %v1696_v1 = vadd.f32 %v6481_v50, %v1342_v56 }
 0x1f2   : > { %v6537_v18 = vpop.f32.mrf.mxu0 }
 0x1f3   : > { %v6539_v6 = vpack.c.bf16 %v1720_v3, %v1716_v2  ;;  %v6541_v11 = vpop.f32.mrf.mxu1  ;;  %v6554_v3 = vpack.c.bf16 %v1710_v26, %v1706_v59 }
 0x1f4   : > { %v1372_v52 = vpop.f32.mrf.mxu0 }
 0x1f5   : > { %8729 = vst [vmem:[#allocation73_spill] sm:$0xff] %v6539_v6  ;;  %v1726_v24 = vadd.f32 %v1725_v57, %v1372_v52  ;;  %2236 = vrot.lane.b32.xlu0 %v6539_v6, %s5875_s7  ;;  %v6547_v31 = vpop.f32.mrf.mxu1  ;;  %8732 = vst [vmem:[#allocation76_spill] sm:$0xff] %v6554_v3  ;;  %v1897_v6 = vpop.permute.xlu1 %1896 }
 0x1f6   : > { %v1374_v10 = vpop.f32.mrf.mxu0 }
 0x1f7   : > { %v6545_v43 = vadd.f32 %v1727_v60, %v1374_v10  ;;  %v1767_v37 = vpop.f32.mrf.mxu1  ;;  %v1700_v60 = vadd.f32 %v6487_v35, %v1346_v32 }
 0x1f8   : > { %v1376_v27 = vpop.f32.mrf.mxu0 }
 0x1f9   : > { %8730 = vst [vmem:[#allocation74_spill] sm:$0xff] %v6545_v43  ;;  %v1730_v16 = vadd.f32 %v1729_v63, %v1376_v27  ;;  %1892 = vrot.lane.b32.xlu0 %v6351_v49, %s5875_s7  ;;  %v6563_v40 = vpop.f32.mrf.mxu1 }
 0x1fa   : > { %v6552_v2 = vpop.f32.mrf.mxu0 }
 0x1fb   : > { %8731 = vst [vmem:[#allocation75_spill] sm:$0xff] %v6552_v2  ;;  %v6556_v13 = vpack.c.bf16 %v1730_v16, %v1726_v24  ;;  %v6574_v59 = vpop.f32.mrf.mxu1  ;;  %v1686_v16 = vadd.f32 %v6465_v7, %v6513_v29 }
 0x1fc   : > { %v1382_v57 = vpop.f32.mrf.mxu0 }
 0x1fd   : > { %v1736_v5 = vadd.f32 %v1735_v19, %v1382_v57  ;;  %2234 = vrot.lane.b32.xlu0 %v6554_v3, %s5875_s7  ;;  %v6570_v19 = vpack.c.bf16 %v1700_v60, %v1696_v1  ;;  %v6582_v32 = vpop.f32.mrf.mxu1 }
 0x1fe   : > { %v1384_v10 = vpop.f32.mrf.mxu0 }
 0x1ff   : > { %v6561_v22 = vadd.f32 %v1737_v17, %v1384_v10  ;;  %8735 = vst [vmem:[#allocation79_spill] sm:$0xff] %v6570_v19 }
 0x200   : > { %v1386_v63 = vpop.f32.mrf.mxu0 }
 0x201   : > { %8733 = vst [vmem:[#allocation77_spill] sm:$0xff] %v6561_v22  ;;  %v1740_v26 = vadd.f32 %v1739_v45, %v1386_v63  ;;  %1890 = vrot.lane.b32.xlu0 %v6331_v25, %s5875_s7  ;;  %v1690_v45 = vadd.f32 %v6471_v20, %v6517_v36  ;;  %v1777_v20 = vpop.f32.mrf.mxu1 }
 0x202   : > { %v6568_v24 = vpop.f32.mrf.mxu0 }
 0x203   : > { %8734 = vst [vmem:[#allocation78_spill] sm:$0xff] %v6568_v24  ;;  %v6572_v52 = vpack.c.bf16 %v1740_v26, %v1736_v5  ;;  %v6590_v5 = vpack.c.bf16 %v1690_v45, %v1686_v16  ;;  %v1779_v29 = vpop.f32.mrf.mxu1 }
 0x204   : > { %v1392_v27 = vpop.f32.mrf.mxu0 }
 0x205   : > { %v1746_v35 = vadd.f32 %v1745_v42, %v1392_v27  ;;  %2232 = vrot.lane.b32.xlu0 %v6570_v19, %s5875_s7  ;;  %8738 = vst [vmem:[#allocation82_spill] sm:$0xff] %v6590_v5 }
 0x206   : > { %v1394_v17 = vpop.f32.mrf.mxu0 }
 0x207   : > { %v6580_v50 = vadd.f32 %v1747_v44, %v1394_v17 }
 0x208   : > { %v1396_v56 = vpop.f32.mrf.mxu0 }
 0x209   : > { %8736 = vst [vmem:[#allocation80_spill] sm:$0xff] %v6580_v50  ;;  %v1750_v57 = vadd.f32 %v1749_v9, %v1396_v56  ;;  %1888 = vrot.lane.b32.xlu0 %v6307_v58, %s5875_s7 }
 0x20a   : > { %v6588_v42 = vpop.f32.mrf.mxu0 }
 0x20b   : > { %8737 = vst [vmem:[#allocation81_spill] sm:$0xff] %v6588_v42  ;;  %v6592_v10 = vpack.c.bf16 %v1750_v57, %v1746_v35  ;;  %v6604_v35 = vpop.f32.mrf.mxu1 }
 0x20c   : > { %v1402_v60 = vpop.f32.mrf.mxu0 }
 0x20d   : > { %v1756_v44 = vadd.f32 %v1755_v38, %v1402_v60  ;;  %2230 = vrot.lane.b32.xlu0 %v6590_v5, %s5875_s7  ;;  %v1785_v45 = vpop.f32.mrf.mxu1 }
 0x20e   : > { %v1404_v36 = vpop.f32.mrf.mxu0 }
 0x20f   : > { %v6596_v63 = vadd.f32 %v1757_v14, %v1404_v36  ;;  %v1787_v16 = vpop.f32.mrf.mxu1 }
 0x210   : > { %v1406_v7 = vpop.f32.mrf.mxu0 }
 0x211   : > { %8739 = vst [vmem:[#allocation83_spill] sm:$0xff] %v6596_v63  ;;  %v1760_v9 = vadd.f32 %v1759_v30, %v1406_v7  ;;  %1886 = vrot.lane.b32.xlu0 %v6280_v47, %s5875_s7  ;;  %v1789_v36 = vpop.f32.mrf.mxu1  ;;  %v1899_v7 = vpop.permute.xlu0 %1898 }
 0x212   : > { %v6600_v1 = vpop.f32.mrf.mxu0 }
 0x213   : > { %v6602_v26 = vpack.c.bf16 %v1760_v9, %v1756_v44 }
 0x214   : > { %v1412_v27 = vpop.f32.mrf.mxu0 }
 0x215   : > { %2228 = vrot.lane.b32.xlu0 %v6511_v41, %s5875_s7 }
 0x216   : > { %v1414_v38 = vpop.f32.mrf.mxu0 }
 0x217   : > { %v6608_v17 = vadd.f32 %v1767_v37, %v1414_v38  ;;  %v6622_v38 = vpop.f32.mrf.mxu1 }
 0x218   : > { %v1416_v14 = vpop.f32.mrf.mxu0 }
 0x219   : > { %8740 = vst [vmem:[#allocation84_spill] sm:$0xff] %v6608_v17  ;;  %1884 = vrot.lane.b32.xlu0 %v6305_v4, %s5875_s7  ;;  %v1795_v5 = vpop.f32.mrf.mxu1 }
 0x21a   : > { %v6612_v30 = vpop.f32.mrf.mxu0 }
 0x21b   : > { %v1797_v41 = vpop.f32.mrf.mxu1 }
 0x21c   : > { %v1422_v56 = vpop.f32.mrf.mxu0 }
 0x21d   : > { %2226 = vrot.lane.b32.xlu0 %v6503_v61, %s5875_s7 }
 0x21e   : > { %v1424_v57 = vpop.f32.mrf.mxu0 }
 0x21f   : > { %v6616_v60 = vadd.f32 %v1777_v20, %v1424_v57  ;;  %v1987_v57 = vsel %vm1916_vm0, %v1899_v7, 0  ;;  %v1913_v22 = vpop.permute.xlu1 %1912 }
 0x220   : > { %v1426_v44 = vpop.f32.mrf.mxu0 }
 0x221   : > { %2224 = vrot.lane.b32.xlu0 %v6493_v8, %s5875_s7 }
 0x222   : > { %v6620_v37 = vpop.f32.mrf.mxu0 }
 0x223   : > { %v1911_v7 = vpop.permute.xlu1 %1910 }
 0x224   : > { %v1432_v9 = vpop.f32.mrf.mxu0 }
 0x225   : > { %2222 = vrot.lane.b32.xlu0 %v6479_v55, %s5875_s7 }
 0x226   : > { %v1434_v3 = vpop.f32.mrf.mxu0 }
 0x227   : > { %v6626_v19 = vadd.f32 %v1787_v16, %v1434_v3  ;;  %v1915_v20 = vpop.permute.xlu0 %1914  ;;  %v1984_v3 = vsel %vm1916_vm0, %v1897_v6, 0  ;;  %v1799_v16 = vpop.f32.mrf.mxu1 }
 0x228   : > { %v1436_v43 = vpop.f32.mrf.mxu0  ;;  %5161 = vmatprep.subr.msk.bf16.mxu1 %vm1916_vm0, %v1915_v20 }
 0x229   : > { %4826 = vmatpush3.bf16.xpose.msra.mxu1 %v1987_v57 }
 0x22a   : > { %v6630_v2 = vpop.f32.mrf.mxu0  ;;  %5162 = vmatprep.subr.msk.bf16.mxu1 %vm1916_vm0, %v1913_v22  ;;  %v1790_v22 = vadd.f32 %v1789_v36, %v1436_v43  ;;  %v1770_v43 = vadd.f32 %v6563_v40, %v1416_v14 }
 0x22b   : > { %v1895_v57 = vpop.permute.xlu0 %1894 }
 0x22c   : > { %v1442_v50 = vpop.f32.mrf.mxu0 }
 0x22d   : > { %v1796_v61 = vadd.f32 %v1795_v5, %v1442_v50  ;;  %v1780_v50 = vadd.f32 %v1779_v29, %v1426_v44  ;;  %v1766_v5 = vadd.f32 %v6547_v31, %v1412_v27 }
 0x22e   : > { %v1444_v24 = vpop.f32.mrf.mxu0 }
 0x22f   : > { %v6633_v63 = vadd.f32 %v1797_v41, %v1444_v24  ;;  %v1981_v41 = vsel %vm1916_vm0, %v1895_v57, 0  ;;  %v1786_v24 = vadd.f32 %v1785_v45, %v1432_v9 }
 0x230   : > { %v1446_v42 = vpop.f32.mrf.mxu0 }
 0x231   : > { %v1800_v17 = vadd.f32 %v1799_v16, %v1446_v42  ;;  %4828 = vmatpush3.bf16.xpose.msra.mxu1 %v1984_v3  ;;  %v6644_v6 = vpack.c.bf16 %v1790_v22, %v1786_v24 }
 0x232   : > { %5163 = vmatprep.subr.msk.bf16.mxu1 %vm1916_vm0, %v1911_v7 }
 0x233   : > { %v6637_v20 = vpack.c.bf16 %v1800_v17, %v1796_v61  ;;  %v1776_v61 = vadd.f32 %v6582_v32, %v1422_v56  ;;  %v6659_v17 = vpack.c.bf16 %v1770_v43, %v1766_v5 }
 0x235   : > { %2252 = vrot.lane.b32.xlu1 %v6637_v20, %s5875_s7  ;;  %v6651_v42 = vpack.c.bf16 %v1780_v50, %v1776_v61 }
 0x239   : > { %4830 = vmatpush3.bf16.xpose.msra.mxu1 %v1981_v41  ;;  %1908 = vrot.lane.b32.xlu1 %v6434_v62, %s5875_s7 }
 0x23d   : > { %2250 = vrot.lane.b32.xlu1 %v6644_v6, %s5875_s7 }
 0x241   : > { %1906 = vrot.lane.b32.xlu1 %v6426_v21, %s5875_s7 }
 0x245   : > { %2248 = vrot.lane.b32.xlu1 %v6651_v42, %s5875_s7 }
 0x249   : > { %1904 = vrot.lane.b32.xlu1 %v6418_v34, %s5875_s7 }
 0x24d   : > { %2246 = vrot.lane.b32.xlu1 %v6659_v17, %s5875_s7 }
 0x251   : > { %1902 = vrot.lane.b32.xlu1 %v6410_v54, %s5875_s7 }
 0x255   : > { %2244 = vrot.lane.b32.xlu1 %v6602_v26, %s5875_s7 }
 0x259   : > { %1900 = vrot.lane.b32.xlu1 %v6400_v39, %s5875_s7 }
 0x25d   : > { %2242 = vrot.lane.b32.xlu1 %v6592_v10, %s5875_s7 }
 0x261   : > { %2240 = vrot.lane.b32.xlu1 %v6572_v52, %s5875_s7 }
 0x265   : > { %2238 = vrot.lane.b32.xlu1 %v6556_v13, %s5875_s7 }
 0x267   : > { %v2237_v31 = vpop.permute.xlu0 %2236 }
 0x268   : > { %v2324_v14 = vsel %vm1916_vm0, %v2237_v31, 0 }
 0x26b   : > { %v1893_v40 = vpop.permute.xlu0 %1892 }
 0x26c   : > { %v1978_v44 = vsel %vm1916_vm0, %v1893_v40, 0 }
 0x26f   : > { %v2235_v32 = vpop.permute.xlu0 %2234 }
 0x270   : > { %v2321_v3 = vsel %vm1916_vm0, %v2235_v32, 0 }
 0x273   : > { %v1891_v29 = vpop.permute.xlu0 %1890 }
 0x274   : > { %v1975_v7 = vsel %vm1916_vm0, %v1891_v29, 0 }
 0x277   : > { %v2233_v45 = vpop.permute.xlu0 %2232 }
 0x278   : > { %v2318_v41 = vsel %vm1916_vm0, %v2233_v45, 0 }
 0x27b   : > { %v1889_v36 = vpop.permute.xlu0 %1888 }
 0x27c   : > { %v1972_v61 = vsel %vm1916_vm0, %v1889_v36, 0 }
 0x27f   : > { %v2231_v57 = vpop.permute.xlu0 %2230 }
 0x280   : > { %v2315_v5 = vsel %vm1916_vm0, %v2231_v57, 0 }
 0x283   : > { %v1887_v24 = vpop.permute.xlu0 %1886 }
 0x284   : > { %v1969_v32 = vsel %vm1916_vm0, %v1887_v24, 0  ;;  %v8743_v24 = vld [vmem:[#allocation33_spill] sm:$0xff] }
 0x287   : > { %v2229_v31 = vpop.permute.xlu0 %2228 }
 0x288   : > { %v2312_v45 = vsel %vm1916_vm0, %v2229_v31, 0  ;;  %v8749_v31 = vld [vmem:[#allocation30_spill] sm:$0xff] }
 0x28b   : > { %v1885_v29 = vpop.permute.xlu0 %1884 }
 0x28c   : > { %v1966_v36 = vsel %vm1916_vm0, %v1885_v29, 0 }
 0x2a7   : > { %v2253_v27 = vpop.permute.xlu1 %2252 }
 0x2a8   : > { %5169 = vmatprep.subr.msk.bf16.mxu0 %vm1916_vm0, %v2253_v27 }
 0x2a9   : > { %4874 = vmatpush3.bf16.xpose.msra.mxu0 %v2324_v14  ;;  %v1642_v14 = vadd.f32 %v6424_v15, %v6459_v51  ;;  %v1632_v15 = vadd.f32 %v6416_v23, %v6444_v48  ;;  %v8745_v48 = vld [vmem:[#allocation19_spill] sm:$0xff] }
 0x2ab   : > { %v1909_v56 = vpop.permute.xlu1 %1908 }
 0x2ac   : > { %5164 = vmatprep.subr.msk.bf16.mxu1 %vm1916_vm0, %v1909_v56 }
 0x2ad   : > { %4832 = vmatpush3.bf16.xpose.msra.mxu1 %v1978_v44  ;;  %v1835_v44 = vpack.c.bf16 %v1642_v14, %v6455_v33  ;;  %v1552_v33 = vadd.f32 %v6303_v0, %v6372_v28  ;;  %v8746_v0 = vld [vmem:[#allocation9_spill] sm:$0xff] }
 0x2ae   : > { %v1542_v28 = vadd.f32 %v8746_v0, %v8745_v48 }
 0x2af   : > { %v2251_v9 = vpop.permute.xlu1 %2250 }
 0x2b0   : > { %5170 = vmatprep.subr.msk.bf16.mxu0 %vm1916_vm0, %v2251_v9  ;;  %v2227_v9 = vpop.permute.xlu0 %2226 }
 0x2b1   : > { %4876 = vmatpush3.bf16.xpose.msra.mxu0 %v2321_v3  ;;  %v1562_v3 = vadd.f32 %v6329_v12, %v6385_v53  ;;  %v2309_v51 = vsel %vm1916_vm0, %v2227_v9, 0  ;;  %v8747_v53 = vld [vmem:[#allocation22_spill] sm:$0xff] }
 0x2b3   : > { %v1907_v16 = vpop.permute.xlu1 %1906 }
 0x2b4   : > { %5165 = vmatprep.subr.msk.bf16.mxu1 %vm1916_vm0, %v1907_v16  ;;  %v2225_v23 = vpop.permute.xlu0 %2224 }
 0x2b5   : > { %4834 = vmatpush3.bf16.xpose.msra.mxu1 %v1975_v7  ;;  %v8741_v7 = vld [vmem:[#allocation25_spill] sm:$0xff] }
 0x2b6   : > { %v1819_v57 = vpack.c.bf16 %v1562_v3, %v8741_v7  ;;  %v1801_v3 = vpop.f32.mrf.mxu1 }
 0x2b7   : > { %v2249_v22 = vpop.permute.xlu1 %2248 }
 0x2b8   : > { %5171 = vmatprep.subr.msk.bf16.mxu0 %vm1916_vm0, %v2249_v22 }
 0x2b9   : > { %4878 = vmatpush3.bf16.xpose.msra.mxu0 %v2318_v41  ;;  %v8742_v41 = vld [vmem:[#allocation42_spill] sm:$0xff] }
 0x2bb   : > { %v1905_v50 = vpop.permute.xlu1 %1904 }
 0x2bc   : > { %5166 = vmatprep.subr.msk.bf16.mxu1 %vm1916_vm0, %v1905_v50  ;;  %v1622_v50 = vadd.f32 %v8743_v24, %v8742_v41  ;;  %v8757_v41 = vld [vmem:[#allocation15_spill] sm:$0xff] }
 0x2bd   : > { %4836 = vmatpush3.bf16.xpose.msra.mxu1 %v1972_v61  ;;  %v8744_v61 = vld [vmem:[#allocation44_spill] sm:$0xff] }
 0x2be   : > { %v1833_v12 = vpack.c.bf16 %v1632_v15, %v8744_v61  ;;  %v8755_v15 = vld [vmem:[#allocation26_spill] sm:$0xff]  ;;  %v8759_v61 = vld [vmem:[#allocation23_spill] sm:$0xff] }
 0x2bf   : > { %v2247_v43 = vpop.permute.xlu1 %2246 }
 0x2c0   : > { %5172 = vmatprep.subr.msk.bf16.mxu0 %vm1916_vm0, %v2247_v43  ;;  %v1817_v43 = vpack.c.bf16 %v1552_v33, %v8747_v53  ;;  %v8756_v33 = vld [vmem:[#allocation38_spill] sm:$0xff]  ;;  %v8762_v53 = vld [vmem:[#allocation20_spill] sm:$0xff] }
 0x2c1   : > { %4880 = vmatpush3.bf16.xpose.msra.mxu0 %v2315_v5  ;;  %v8748_v5 = vld [vmem:[#allocation39_spill] sm:$0xff] }
 0x2c3   : > { %v1903_v40 = vpop.permute.xlu1 %1902 }
 0x2c4   : > { %5167 = vmatprep.subr.msk.bf16.mxu1 %vm1916_vm0, %v1903_v40  ;;  %v1612_v40 = vadd.f32 %v8749_v31, %v8748_v5  ;;  %v8763_v5 = vld [vmem:[#allocation34_spill] sm:$0xff] }
 0x2c5   : > { %4838 = vmatpush3.bf16.xpose.msra.mxu1 %v1969_v32  ;;  %v8750_v32 = vld [vmem:[#allocation41_spill] sm:$0xff] }
 0x2c6   : > { %v1831_v29 = vpack.c.bf16 %v1622_v50, %v8750_v32  ;;  %v1829_v7 = vpack.c.bf16 %v1612_v40, %v8756_v33  ;;  %v8758_v50 = vld [vmem:[#allocation35_spill] sm:$0xff]  ;;  %v8764_v40 = vld [vmem:[#allocation62_spill] sm:$0xff]  ;;  %v8779_v33 = vld [vmem:[#allocation68_spill] sm:$0xff] }
 0x2c7   : > { %v2245_v27 = vpop.permute.xlu1 %2244  ;;  %v1722_v32 = vadd.f32 %v8764_v40, %v6537_v18  ;;  %v8771_v18 = vld [vmem:[#allocation71_spill] sm:$0xff]  ;;  %v8799_v40 = vld [vmem:[#allocation64_spill] sm:$0xff] }
 0x2c8   : > { %5173 = vmatprep.subr.msk.bf16.mxu0 %vm1916_vm0, %v2245_v27  ;;  %v1448_v27 = vpop.f32.mrf.mxu0 }
 0x2c9   : > { %4882 = vmatpush3.bf16.xpose.msra.mxu0 %v2312_v45  ;;  %v8751_v45 = vld [vmem:[#allocation16_spill] sm:$0xff] }
 0x2cb   : > { %v1901_v56 = vpop.permute.xlu1 %1900 }
 0x2cc   : > { %5168 = vmatprep.subr.msk.bf16.mxu1 %vm1916_vm0, %v1901_v56  ;;  %v8752_v56 = vld [vmem:[#allocation6_spill] sm:$0xff] }
 0x2cd   : > { %4840 = vmatpush3.bf16.xpose.msra.mxu1 %v1966_v36  ;;  %v8753_v36 = vld [vmem:[#allocation18_spill] sm:$0xff] }
 0x2ce   : > { %4921 = vmatprep.subr.bf16.mxu1 %v1835_v44  ;;  %v1532_v44 = vadd.f32 %v8752_v56, %v8751_v45  ;;  %v1815_v9 = vpack.c.bf16 %v1542_v28, %v8753_v36  ;;  %v8769_v45 = vld [vmem:[#allocation17_spill] sm:$0xff] }
 0x2cf   : > { %v2243_v16 = vpop.permute.xlu1 %2242 }
 0x2d0   : > { %5174 = vmatprep.subr.msk.bf16.mxu0 %vm1916_vm0, %v2243_v16  ;;  %v8754_v16 = vld [vmem:[#allocation37_spill] sm:$0xff]  ;;  %v1813_v24 = vpack.c.bf16 %v1532_v44, %v8757_v41  ;;  %v8770_v44 = vld [vmem:[#allocation31_spill] sm:$0xff]  ;;  %v8784_v41 = vld [vmem:[#allocation10_spill] sm:$0xff] }
 0x2d1   : > { %4884 = vmatpush3.bf16.xpose.msra.mxu0 %v2309_v51  ;;  %v1602_v51 = vadd.f32 %v8755_v15, %v8754_v16  ;;  %v8775_v16 = vld [vmem:[#allocation12_spill] sm:$0xff]  ;;  %v8776_v15 = vld [vmem:[#allocation11_spill] sm:$0xff] }
 0x2d3   : > { %v2241_v22 = vpop.permute.xlu1 %2240 }
 0x2d4   : > { %4842 = vmatmul.mubr.msk.bf16.vlgmr.msra.gmra.mxu1 %vm1916_vm0, %v6305_v4  ;;  %5175 = vmatprep.subr.msk.bf16.mxu0 %vm1916_vm0, %v2241_v22  ;;  %v2306_v4 = vsel %vm1916_vm0, %v2225_v23, 0  ;;  %v2223_v22 = vpop.permute.xlu0 %2222  ;;  %v8760_v23 = vld [vmem:[#allocation36_spill] sm:$0xff] }
 0x2d5   : > { %4843 = vmatprep.mubr.msk.bf16.mxu1 %vm1916_vm0, %v6280_v47  ;;  %4922 = vmatpush3.bf16.msra.mxu1 %v1819_v57  ;;  %v1802_v57 = vadd.f32 %v1801_v3, %v1448_v27  ;;  %v1827_v48 = vpack.c.bf16 %v1602_v51, %v8760_v23  ;;  %v2303_v28 = vsel %vm1916_vm0, %v2223_v22, 0  ;;  %v8777_v51 = vpack.c.bf16 %v8775_v16, %v8776_v15  ;;  %v8789_v23 = vld [vmem:[#allocation67_spill] sm:$0xff]  ;;  %v8815_v16 = vld [vmem:[#allocation54_spill] sm:$0xff] }
 0x2d6   : > { %4923 = vmatprep.subr.bf16.mxu1 %v1833_v12  ;;  %v1592_v12 = vadd.f32 %v8759_v61, %v8758_v50  ;;  %v8787_v61 = vld [vmem:[#allocation65_spill] sm:$0xff]  ;;  %v8816_v15 = vld [vmem:[#allocation43_spill] sm:$0xff] }
 0x2d7   : > { %v2239_v14 = vpop.permute.xlu1 %2238  ;;  %v1867_v0 = vpack.c.bf16 %v1802_v57, %v6633_v63  ;;  %v1792_v63 = vadd.f32 %v6622_v38, %v6630_v2  ;;  %v1782_v2 = vadd.f32 %v6604_v35, %v6620_v37  ;;  %v8781_v37 = vld [vmem:[#allocation70_spill] sm:$0xff]  ;;  %v1772_v57 = vadd.f32 %v6574_v59, %v6612_v30 }
 0x2d8   : > { %v1825_v31 = vpack.c.bf16 %v1592_v12, %v8763_v5  ;;  %v1762_v30 = vadd.f32 %v6541_v11, %v6600_v1  ;;  %v8797_v5 = vld [vmem:[#allocation61_spill] sm:$0xff] }
 0x2d9   : > { %4886 = vmatpush3.bf16.xpose.msra.mxu0 %v2306_v4  ;;  %4924 = vmatpush3.bf16.msra.mxu1 %v1817_v43  ;;  %v8766_v4 = vld [vmem:[#allocation13_spill] sm:$0xff]  ;;  %v6766_v38 = vpack.c.bf16 %v1792_v63, %v6626_v19  ;;  %v6786_v22 = vpack.c.bf16 %v1782_v2, %v6616_v60  ;;  %v8791_v60 = vld [vmem:[#allocation84_spill] sm:$0xff]  ;;  %v8814_v2 = vld [vmem:[#allocation63_spill] sm:$0xff] }
 0x2da   : > { %5176 = vmatprep.subr.msk.bf16.mxu0 %vm1916_vm0, %v2239_v14  ;;  %4925 = vmatprep.subr.bf16.mxu1 %v1831_v29  ;;  %v8765_v29 = vld [vmem:[#allocation14_spill] sm:$0xff]  ;;  %v8768_v14 = vld [vmem:[#allocation29_spill] sm:$0xff] }
 0x2db   : > { %v8767_v27 = vpack.c.bf16 %v8765_v29, %v8766_v4  ;;  %v1572_v56 = vadd.f32 %v8769_v45, %v8768_v14  ;;  %8774 = vst [vmem:[#allocation42_spill] sm:$0xff] %v6766_v38  ;;  %8783 = vst [vmem:[#allocation44_spill] sm:$0xff] %v6786_v22  ;;  %v8801_v1 = vld [vmem:[#allocation81_spill] sm:$0xff]  ;;  %v8803_v29 = vld [vmem:[#allocation83_spill] sm:$0xff] }
 0x2dc   : > { %4844 = vmatmul.mubr.msk.bf16.gmra.mxu1 %vm1916_vm0, %v6280_v47  ;;  %v8761_v47 = vld [vmem:[#allocation32_spill] sm:$0xff]  ;;  %v6824_v4 = vpack.c.bf16 %v1762_v30, %v8803_v29  ;;  %v8807_v14 = vld [vmem:[#allocation45_spill] sm:$0xff] }
 0x2dd   : > { %4845 = vmatprep.mubr.msk.bf16.mxu1 %vm1916_vm0, %v6307_v58  ;;  %4926 = vmatpush3.bf16.msra.mxu1 %v1815_v9  ;;  %v1582_v43 = vadd.f32 %v8762_v53, %v8761_v47  ;;  %v8772_v9 = vld [vmem:[#allocation58_spill] sm:$0xff]  ;;  %v8794_v47 = vld [vmem:[#allocation7_spill] sm:$0xff]  ;;  %v8795_v53 = vld [vmem:[#allocation5_spill] sm:$0xff] }
 0x2de   : > { %4927 = vmatprep.subr.bf16.mxu1 %v1829_v7  ;;  %v1712_v3 = vadd.f32 %v8772_v9, %v8771_v18  ;;  %v8780_v7 = vld [vmem:[#allocation55_spill] sm:$0xff]  ;;  %8804 = vst [vmem:[#allocation39_spill] sm:$0xff] %v6824_v4  ;;  %v8812_v9 = vld [vmem:[#allocation80_spill] sm:$0xff] }
 0x2df   : > { %v1823_v36 = vpack.c.bf16 %v1582_v43, %v8770_v44  ;;  %v1702_v35 = vadd.f32 %v8780_v7, %v8779_v33  ;;  %v8796_v43 = vpack.c.bf16 %v8794_v47, %v8795_v53  ;;  %v8819_v33 = vld [vmem:[#allocation75_spill] sm:$0xff]  ;;  %v8820_v7 = vld [vmem:[#allocation66_spill] sm:$0xff] }
 0x2e0   : > { %v6779_v19 = vpack.c.bf16 %v1712_v3, %v8781_v37  ;;  %v8821_v37 = vld [vmem:[#allocation77_spill] sm:$0xff]  ;;  %v8833_v53 = vld [vmem:[#allocation27_spill] sm:$0xff] }
 0x2e1   : > { %4888 = vmatpush3.bf16.xpose.msra.mxu0 %v2303_v28  ;;  %4928 = vmatpush3.bf16.msra.mxu1 %v1813_v24  ;;  %v8785_v24 = vld [vmem:[#allocation8_spill] sm:$0xff]  ;;  %v6798_v59 = vpack.c.bf16 %v1702_v35, %v8789_v23  ;;  %v8793_v28 = vld [vmem:[#allocation59_spill] sm:$0xff]  ;;  %v1732_v35 = vadd.f32 %v8820_v7, %v8819_v33  ;;  %v8828_v23 = vld [vmem:[#allocation74_spill] sm:$0xff] }
 0x2e2   : > { %4929 = vmatprep.subr.bf16.mxu1 %v1827_v48  ;;  %5033 = vmatprep.subr.bf16.mxu0 %v1867_v0  ;;  %8782 = vst [vmem:[#allocation33_spill] sm:$0xff] %v6779_v19  ;;  %v8786_v50 = vpack.c.bf16 %v8784_v41, %v8785_v24  ;;  %v6805_v48 = vpack.c.bf16 %v1772_v57, %v8791_v60  ;;  %v8823_v41 = vld [vmem:[#allocation24_spill] sm:$0xff]  ;;  %v8824_v24 = vld [vmem:[#allocation51_spill] sm:$0xff]  ;;  %v8830_v60 = vld [vmem:[#allocation82_spill] sm:$0xff] }
 0x2e3   : > { %8790 = vst [vmem:[#allocation19_spill] sm:$0xff] %v6798_v59  ;;  %v6870_v30 = vpack.c.bf16 %v1732_v35, %v8828_v23 }
 0x2e4   : > { %4846 = vmatmul.mubr.msk.bf16.gmra.mxu1 %vm1916_vm0, %v6307_v58  ;;  %v6759_v58 = vpack.c.bf16 %v1722_v32, %v6535_v46  ;;  %v8778_v46 = vld [vmem:[#allocation28_spill] sm:$0xff]  ;;  %8792 = vst [vmem:[#allocation9_spill] sm:$0xff] %v6805_v48 }
 0x2e5   : > { %4847 = vmatprep.mubr.msk.bf16.mxu1 %vm1916_vm0, %v6331_v25  ;;  %4930 = vmatpush3.bf16.msra.mxu1 %v8767_v27  ;;  %v8802_v32 = vld [vmem:[#allocation72_spill] sm:$0xff]  ;;  %v8805_v27 = vld [vmem:[#allocation21_spill] sm:$0xff]  ;;  %8829 = vst [vmem:[#allocation37_spill] sm:$0xff] %v6870_v30 }
 0x2e6   : > { %4931 = vmatprep.subr.bf16.mxu1 %v1825_v31  ;;  %8773 = vst [vmem:[#allocation25_spill] sm:$0xff] %v6759_v58  ;;  %v1752_v63 = vadd.f32 %v8802_v32, %v8801_v1 }
 0x2e8   : > { %4890 = vmatmul.mubr.msk.bf16.vlgmr.msra.gmra.mxu0 %vm1916_vm0, %v6479_v55  ;;  %v1821_v55 = vpack.c.bf16 %v1572_v56, %v8778_v46  ;;  %v8808_v56 = vld [vmem:[#allocation60_spill] sm:$0xff]  ;;  %v6840_v3 = vpack.c.bf16 %v1752_v63, %v8812_v9 }
 0x2e9   : > { %4891 = vmatprep.mubr.msk.bf16.mxu0 %vm1916_vm0, %v6493_v8  ;;  %4932 = vmatpush3.bf16.msra.mxu1 %v8777_v51  ;;  %v1662_v51 = vadd.f32 %v8816_v15, %v8815_v16  ;;  %v8817_v46 = vld [vmem:[#allocation56_spill] sm:$0xff] }
 0x2ea   : > { %5034 = vmatpush3.bf16.msra.mxu0 %v6759_v58  ;;  %4933 = vmatprep.subr.bf16.mxu1 %v1823_v36  ;;  %v8811_v36 = vld [vmem:[#allocation69_spill] sm:$0xff]  ;;  %8813 = vst [vmem:[#allocation41_spill] sm:$0xff] %v6840_v3 }
 0x2eb   : > { %5035 = vmatprep.subr.bf16.mxu0 %v6766_v38 }
 0x2ec   : > { %4848 = vmatmul.mubr.msk.bf16.gmra.mxu1 %vm1916_vm0, %v6331_v25  ;;  %v8788_v25 = vld [vmem:[#allocation52_spill] sm:$0xff] }
 0x2ed   : > { %4849 = vmatprep.mubr.msk.bf16.mxu1 %vm1916_vm0, %v6351_v49  ;;  %4934 = vmatpush3.bf16.msra.mxu1 %v8786_v50  ;;  %v1692_v12 = vadd.f32 %v8788_v25, %v8787_v61  ;;  %v8825_v50 = vld [vmem:[#allocation40_spill] sm:$0xff]  ;;  %v8826_v25 = vld [vmem:[#allocation53_spill] sm:$0xff] }
 0x2ee   : > { %5036 = vmatpush3.bf16.msra.mxu0 %v6779_v19  ;;  %4935 = vmatprep.subr.bf16.mxu1 %v1821_v55  ;;  %v1652_v61 = vadd.f32 %v8825_v50, %v8824_v24 }
 0x2ef   : > { %5037 = vmatprep.subr.bf16.mxu0 %v6786_v22  ;;  %v6817_v11 = vpack.c.bf16 %v1692_v12, %v8799_v40  ;;  %v6865_v12 = vpack.c.bf16 %v1662_v51, %v8826_v25 }
 0x2f0   : > { %4892 = vmatmul.mubr.msk.bf16.gmra.mxu0 %vm1916_vm0, %v6493_v8  ;;  %v8798_v8 = vld [vmem:[#allocation48_spill] sm:$0xff] }
 0x2f1   : > { %4893 = vmatprep.mubr.msk.bf16.mxu0 %vm1916_vm0, %v8793_v28  ;;  %4936 = vmatpush3.bf16.msra.mxu1 %v8796_v43  ;;  %v1682_v31 = vadd.f32 %v8798_v8, %v8797_v5  ;;  %8800 = vst [vmem:[#allocation22_spill] sm:$0xff] %v6817_v11  ;;  %8827 = vst [vmem:[#allocation18_spill] sm:$0xff] %v6865_v12  ;;  %v8834_v43 = vld [vmem:[#allocation79_spill] sm:$0xff]  ;;  %v8835_v5 = vld [vmem:[#allocation76_spill] sm:$0xff] }
 0x2f2   : > { %5038 = vmatpush3.bf16.msra.mxu0 %v6798_v59  ;;  %5145 = vmatprep.subr.bf16.mxu1 %v1867_v0  ;;  %v8806_v0 = vld [vmem:[#allocation57_spill] sm:$0xff] }
 0x2f3   : > { %5039 = vmatprep.subr.bf16.mxu0 %v6805_v48  ;;  %v1672_v45 = vadd.f32 %v8807_v14, %v8806_v0  ;;  %v6833_v44 = vpack.c.bf16 %v1682_v31, %v8808_v56  ;;  %v8836_v8 = vld [vmem:[#allocation73_spill] sm:$0xff] }
 0x2f4   : > { %4850 = vmatmul.mubr.msk.bf16.gmra.mxu1 %vm1916_vm0, %v6351_v49  ;;  %v8810_v49 = vld [vmem:[#allocation78_spill] sm:$0xff] }
 0x2f5   : > { %4851 = vmatprep.mubr.msk.bf16.mxu1 %vm1916_vm0, %v8805_v27  ;;  %8809 = vst [vmem:[#allocation30_spill] sm:$0xff] %v6833_v44  ;;  %v1742_v18 = vadd.f32 %v8811_v36, %v8810_v49  ;;  %v6849_v55 = vpack.c.bf16 %v1672_v45, %v8817_v46 }
 0x2f6   : > { %5040 = vmatpush3.bf16.msra.mxu0 %v6817_v11 }
 0x2f7   : > { %5041 = vmatprep.subr.bf16.mxu0 %v6824_v4  ;;  %8818 = vst [vmem:[#allocation16_spill] sm:$0xff] %v6849_v55  ;;  %v6856_v57 = vpack.c.bf16 %v1742_v18, %v8821_v37 }
 0x2f8   : > { %4894 = vmatmul.mubr.msk.bf16.gmra.mxu0 %vm1916_vm0, %v8793_v28  ;;  %v8831_v28 = vld [vmem:[#allocation50_spill] sm:$0xff] }
 0x2f9   : > { %4895 = vmatprep.mubr.msk.bf16.mxu0 %vm1916_vm0, %v8814_v2  ;;  %8822 = vst [vmem:[#allocation6_spill] sm:$0xff] %v6856_v57  ;;  %v6877_v47 = vpack.c.bf16 %v1652_v61, %v8831_v28 }
 0x2fa   : > { %5042 = vmatpush3.bf16.msra.mxu0 %v6833_v44 }
 0x2fb   : > { %5043 = vmatprep.subr.bf16.mxu0 %v6840_v3  ;;  %8832 = vst [vmem:[#allocation26_spill] sm:$0xff] %v6877_v47 }
 0x2fc   : > { %4852 = vmatmul.mubr.msk.bf16.gmra.mxu1 %vm1916_vm0, %v8805_v27 }
 0x2fd   : > { %4853 = vmatprep.mubr.msk.bf16.mxu1 %vm1916_vm0, %v8823_v41 }
 0x2fe   : > { %5044 = vmatpush3.bf16.msra.mxu0 %v6849_v55 }
 0x2ff   : > { %5045 = vmatprep.subr.bf16.mxu0 %v6856_v57 }
 0x300   : > { %4896 = vmatmul.mubr.msk.bf16.gmra.mxu0 %vm1916_vm0, %v8814_v2 }
 0x301   : > { %4897 = vmatprep.mubr.msk.bf16.mxu0 %vm1916_vm0, %v8830_v60 }
 0x302   : > { %5046 = vmatpush3.bf16.msra.mxu0 %v6865_v12 }
 0x303   : > { %5047 = vmatprep.subr.bf16.mxu0 %v6870_v30 }
 0x304   : > { %4854 = vmatmul.mubr.msk.bf16.gmra.mxu1 %vm1916_vm0, %v8823_v41 }
 0x305   : > { %4855 = vmatprep.mubr.msk.bf16.mxu1 %vm1916_vm0, %v8833_v53 }
 0x306   : > { %5048 = vmatpush3.bf16.msra.mxu0 %v6877_v47 }
 0x308   : > { %4898 = vmatmul.mubr.msk.bf16.gmra.mxu0 %vm1916_vm0, %v8830_v60 }
 0x309   : > { %4899 = vmatprep.mubr.msk.bf16.mxu0 %vm1916_vm0, %v8834_v43 }
 0x30c   : > { %4856 = vmatmul.mubr.msk.bf16.gmra.mxu1 %vm1916_vm0, %v8833_v53 }
 0x30d   : > { %4857 = vmatprep.mubr.msk.bf16.mxu1 %vm1916_vm0, %v6400_v39 }
 0x310   : > { %4900 = vmatmul.mubr.msk.bf16.gmra.mxu0 %vm1916_vm0, %v8834_v43 }
 0x311   : > { %4901 = vmatprep.mubr.msk.bf16.mxu0 %vm1916_vm0, %v8835_v5 }
 0x314   : > { %4858 = vmatmul.mubr.msk.bf16.gmra.mxu1 %vm1916_vm0, %v6400_v39  ;;  %v8837_v39 = vld [vmem:[#allocation47_spill] sm:$0xff] }
 0x315   : > { %4859 = vmatprep.mubr.msk.bf16.mxu1 %vm1916_vm0, %v6410_v54 }
 0x318   : > { %4902 = vmatmul.mubr.msk.bf16.gmra.mxu0 %vm1916_vm0, %v8835_v5 }
 0x319   : > { %4903 = vmatprep.mubr.msk.bf16.mxu0 %vm1916_vm0, %v8836_v8 }
 0x31c   : > { %4860 = vmatmul.mubr.msk.bf16.gmra.mxu1 %vm1916_vm0, %v6410_v54  ;;  %v8838_v54 = vld [vmem:[#allocation46_spill] sm:$0xff] }
 0x31d   : > { %4861 = vmatprep.mubr.msk.bf16.mxu1 %vm1916_vm0, %v6418_v34 }
 0x320   : > { %4904 = vmatmul.mubr.msk.bf16.gmra.mxu0 %vm1916_vm0, %v8836_v8 }
 0x321   : > { %4905 = vmatprep.mubr.msk.bf16.mxu0 %vm1916_vm0, %v6556_v13 }
 0x324   : > { %4862 = vmatmul.mubr.msk.bf16.gmra.mxu1 %vm1916_vm0, %v6418_v34  ;;  %v8839_v34 = vld [vmem:[#allocation49_spill] sm:$0xff] }
 0x325   : > { %4863 = vmatprep.mubr.msk.bf16.mxu1 %vm1916_vm0, %v6426_v21 }
 0x328   : > { %4906 = vmatmul.mubr.msk.bf16.gmra.mxu0 %vm1916_vm0, %v6556_v13 }
 0x329   : > { %4907 = vmatprep.mubr.msk.bf16.mxu0 %vm1916_vm0, %v6572_v52 }
 0x32c   : > { %4864 = vmatmul.mubr.msk.bf16.gmra.mxu1 %vm1916_vm0, %v6426_v21  ;;  %v2543_v21 = vlaneseq }
 0x32d   : > { %4865 = vmatprep.mubr.msk.bf16.mxu1 %vm1916_vm0, %v6434_v62 }
 0x32e   : > { %v6966_v13 = vand.u32 127, %v2543_v21 }
 0x330   : > { %4908 = vmatmul.mubr.msk.bf16.gmra.mxu0 %vm1916_vm0, %v6572_v52 }
 0x331   : > { %4909 = vmatprep.mubr.msk.bf16.mxu0 %vm1916_vm0, %v6592_v10 }
 0x334   : > { %4866 = vmatmul.mubr.msk.bf16.gmra.mxu1 %vm1916_vm0, %v6434_v62  ;;  %v6964_v62 = vshrl.u32 %v2543_v21, 7 }
 0x335   : > { %4867 = vmatprep.mubr.msk.bf16.mxu1 %vm1916_vm0, %v8837_v39 }
 0x336   : > { %vm2579_vm1 = vcmp.le.s32.totalorder %v6966_v13, %v6964_v62  ;;  %v2545_v52 = vadd.s32 8, %v6964_v62  ;;  %v2547_v32 = vadd.s32 24, %v6964_v62  ;;  %v2548_v14 = vadd.s32 32, %v6964_v62 }
 0x337   : > { %v7000_v18 = vadd.s32 40, %v6964_v62  ;;  %v7010_v51 = vadd.s32 48, %v6964_v62  ;;  %v7026_v50 = vadd.s32 56, %v6964_v62  ;;  %v7041_v5 = vadd.s32 64, %v6964_v62 }
 0x338   : > { %4910 = vmatmul.mubr.msk.bf16.gmra.mxu0 %vm1916_vm0, %v6592_v10  ;;  %vm2581_vm2 = vcmp.le.s32.totalorder %v6966_v13, %v2545_v52  ;;  %vm2585_vm4 = vcmp.le.s32.totalorder %v6966_v13, %v2547_v32  ;;  %vm2587_vm5 = vcmp.le.s32.totalorder %v6966_v13, %v2548_v14  ;;  %v7310_v22 = vadd.s32 192, %v6964_v62 }
 0x339   : > { %4911 = vmatprep.mubr.msk.bf16.mxu0 %vm1916_vm0, %v6602_v26  ;;  %vm2589_vm6 = vcmp.le.s32.totalorder %v6966_v13, %v7000_v18  ;;  %vm2591_vm7 = vcmp.le.s32.totalorder %v6966_v13, %v7010_v51  ;;  %vm2593_vm8 = vcmp.le.s32.totalorder %v6966_v13, %v7026_v50  ;;  %vm2595_vm9 = vcmp.le.s32.totalorder %v6966_v13, %v7041_v5 }
 0x33a   : > { %v7324_v58 = vadd.s32 200, %v6964_v62 }
 0x33c   : > { %4868 = vmatmul.mubr.msk.bf16.gmra.mxu1 %vm1916_vm0, %v8837_v39 }
 0x33d   : > { %4869 = vmatprep.mubr.msk.bf16.mxu1 %vm1916_vm0, %v8838_v54 }
 0x340   : > { %4912 = vmatmul.mubr.msk.bf16.gmra.mxu0 %vm1916_vm0, %v6602_v26 }
 0x341   : > { %4913 = vmatprep.mubr.msk.bf16.mxu0 %vm1916_vm0, %v6659_v17 }
 0x344   : > { %4870 = vmatmul.mubr.msk.bf16.gmra.mxu1 %vm1916_vm0, %v8838_v54 }
 0x345   : > { %4871 = vmatprep.mubr.msk.bf16.mxu1 %vm1916_vm0, %v8839_v34 }
 0x348   : > { %4914 = vmatmul.mubr.msk.bf16.gmra.mxu0 %vm1916_vm0, %v6659_v17 }
 0x349   : > { %4915 = vmatprep.mubr.msk.bf16.mxu0 %vm1916_vm0, %v6651_v42 }
 0x34c   : > { %4872 = vmatmul.mubr.msk.bf16.gmra.mxu1 %vm1916_vm0, %v8839_v34 }
 0x350   : > { %4916 = vmatmul.mubr.msk.bf16.gmra.mxu0 %vm1916_vm0, %v6651_v42 }
 0x351   : > { %4917 = vmatprep.mubr.msk.bf16.mxu0 %vm1916_vm0, %v6644_v6 }
 0x358   : > { %4918 = vmatmul.mubr.msk.bf16.gmra.mxu0 %vm1916_vm0, %v6644_v6 }
 0x359   : > { %4919 = vmatprep.mubr.msk.bf16.mxu0 %vm1916_vm0, %v6637_v20 }
 0x360   : > { %4920 = vmatmul.mubr.msk.bf16.gmra.mxu0 %vm1916_vm0, %v6637_v20  ;;  %v2546_v20 = vadd.s32 16, %v6964_v62 }
 0x362   : > { %vm2583_vm3 = vcmp.le.s32.totalorder %v6966_v13, %v2546_v20 }
 0x394   : > { %v2047_v10 = vpop.f32.mrf.mxu1 }
 0x395   : > { %v6974_v26 = vsel %vm2579_vm1, %v2047_v10, -1e+30 }
 0x396   : > { %v2049_v6 = vpop.f32.mrf.mxu1  ;;  %v2771_v42 = vmax.f32 %v6974_v26, -1e+30 }
 0x397   : > { %v7056_v6 = vadd.s32 72, %v6964_v62 }
 0x398   : > { %2772 = vmax.xlane.f32.xlu0 %v2771_v42  ;;  %v2051_v17 = vpop.f32.mrf.mxu1 }
 0x399   : > { %v6981_v31 = vsel %vm2581_vm2, %v2051_v17, -1e+30  ;;  %vm2597_vm10 = vcmp.le.s32.totalorder %v6966_v13, %v7056_v6 }
 0x39a   : > { %v2053_v40 = vpop.f32.mrf.mxu1  ;;  %v2774_v1 = vmax.f32 %v6981_v31, -1e+30 }
 0x39c   : > { %2775 = vmax.xlane.f32.xlu1 %v2774_v1  ;;  %v2057_v63 = vpop.f32.mrf.mxu1 }
 0x39d   : > { %v6988_v29 = vsel %vm2583_vm3, %v2057_v63, -1e+30 }
 0x39e   : > { %v2059_v27 = vpop.f32.mrf.mxu1  ;;  %v2777_v0 = vmax.f32 %v6988_v29, -1e+30 }
 0x3a0   : > { %2778 = vmax.xlane.f32.xlu0 %v2777_v0  ;;  %v2061_v45 = vpop.f32.mrf.mxu1  ;;  %v7071_v0 = vadd.s32 80, %v6964_v62 }
 0x3a1   : > { %v6995_v56 = vsel %vm2585_vm4, %v2061_v45, -1e+30 }
 0x3a2   : > { %v2063_v49 = vpop.f32.mrf.mxu1  ;;  %v2780_v36 = vmax.f32 %v6995_v56, -1e+30  ;;  %vm2599_vm11 = vcmp.le.s32.totalorder %v6966_v13, %v7071_v0 }
 0x3a4   : > { %2781 = vmax.xlane.f32.xlu0 %v2780_v36  ;;  %v2067_v9 = vpop.f32.mrf.mxu1 }
 0x3a5   : > { %v7004_v2 = vsel %vm2587_vm5, %v2067_v9, -1e+30 }
 0x3a6   : > { %v2069_v16 = vpop.f32.mrf.mxu1  ;;  %v2783_v15 = vmax.f32 %v7004_v2, -1e+30 }
 0x3a8   : > { %2784 = vmax.xlane.f32.xlu1 %v2783_v15  ;;  %v2071_v46 = vpop.f32.mrf.mxu1  ;;  %v2384_v33 = vpop.f32.mrf.mxu0 }
 0x3a9   : > { %v7015_v7 = vsel %vm2589_vm6, %v2071_v46, -1e+30  ;;  %v7020_v35 = vsel %vm2579_vm1, %v2384_v33, -1e+30  ;;  %v7086_v46 = vadd.s32 88, %v6964_v62 }
 0x3aa   : > { %v2073_v37 = vpop.f32.mrf.mxu1  ;;  %v2386_v41 = vpop.f32.mrf.mxu0  ;;  %v2786_v24 = vmax.f32 %v7015_v7, -1e+30 }
 0x3ab   : > { %vm2601_vm12 = vcmp.le.s32.totalorder %v6966_v13, %v7086_v46  ;;  %v7206_v46 = vadd.s32 144, %v6964_v62 }
 0x3ac   : > { %2787 = vmax.xlane.f32.xlu0 %v2786_v24  ;;  %v2077_v61 = vpop.f32.mrf.mxu1  ;;  %v2388_v25 = vpop.f32.mrf.mxu0 }
 0x3ad   : > { %v7031_v23 = vsel %vm2591_vm7, %v2077_v61, -1e+30  ;;  %v7035_v60 = vsel %vm2581_vm2, %v2388_v25, -1e+30 }
 0x3ae   : > { %v2079_v28 = vpop.f32.mrf.mxu1  ;;  %v2390_v53 = vpop.f32.mrf.mxu0  ;;  %v2789_v43 = vmax.f32 %v7031_v23, -1e+30 }
 0x3af   : > { %v7102_v28 = vadd.s32 96, %v6964_v62 }
 0x3b0   : > { %2790 = vmax.xlane.f32.xlu1 %v2789_v43  ;;  %v2081_v8 = vpop.f32.mrf.mxu1  ;;  %v2394_v39 = vpop.f32.mrf.mxu0 }
 0x3b1   : > { %v7046_v54 = vsel %vm2593_vm8, %v2081_v8, -1e+30  ;;  %v7050_v34 = vsel %vm2583_vm3, %v2394_v39, -1e+30  ;;  %vm2603_vm13 = vcmp.le.s32.totalorder %v6966_v13, %v7102_v28  ;;  %v7225_v28 = vadd.s32 152, %v6964_v62 }
 0x3b2   : > { %v2083_v21 = vpop.f32.mrf.mxu1  ;;  %v2396_v52 = vpop.f32.mrf.mxu0  ;;  %v2792_v10 = vmax.f32 %v7046_v54, -1e+30 }
 0x3b4   : > { %2793 = vmax.xlane.f32.xlu0 %v2792_v10  ;;  %v2087_v42 = vpop.f32.mrf.mxu1  ;;  %v2398_v17 = vpop.f32.mrf.mxu0  ;;  %v7118_v10 = vadd.s32 104, %v6964_v62 }
 0x3b5   : > { %v7061_v40 = vsel %vm2595_vm9, %v2087_v42, -1e+30  ;;  %v7065_v20 = vsel %vm2585_vm4, %v2398_v17, -1e+30 }
 0x3b6   : > { %8840 = vst [vmem:[#allocation38_spill] sm:$0xff] %v7065_v20  ;;  %v2089_v1 = vpop.f32.mrf.mxu1  ;;  %v2400_v63 = vpop.f32.mrf.mxu0  ;;  %v2795_v27 = vmax.f32 %v7061_v40, -1e+30  ;;  %vm2605_vm14 = vcmp.le.s32.totalorder %v6966_v13, %v7118_v10  ;;  %v7244_v10 = vadd.s32 160, %v6964_v62 }
 0x3b8   : > { %2796 = vmax.xlane.f32.xlu1 %v2795_v27  ;;  %v2091_v45 = vpop.f32.mrf.mxu1  ;;  %v2404_v49 = vpop.f32.mrf.mxu0 }
 0x3b9   : > { %v7076_v36 = vsel %vm2597_vm10, %v2091_v45, -1e+30  ;;  %v7080_v32 = vsel %vm2587_vm5, %v2404_v49, -1e+30  ;;  %v7134_v49 = vadd.s32 112, %v6964_v62 }
 0x3ba   : > { %8841 = vst [vmem:[#allocation15_spill] sm:$0xff] %v7080_v32  ;;  %v2093_v9 = vpop.f32.mrf.mxu1  ;;  %v2406_v16 = vpop.f32.mrf.mxu0  ;;  %v2798_v15 = vmax.f32 %v7076_v36, -1e+30 }
 0x3bb   : > { %vm2607_vm15 = vcmp.le.s32.totalorder %v6966_v13, %v7134_v49 }
 0x3bc   : > { %2799 = vmax.xlane.f32.xlu0 %v2798_v15  ;;  %v2097_v33 = vpop.f32.mrf.mxu1  ;;  %v2408_v37 = vpop.f32.mrf.mxu0 }
 0x3bd   : > { %v7091_v41 = vsel %vm2599_vm11, %v2097_v33, -1e+30  ;;  %v7096_v14 = vsel %vm2589_vm6, %v2408_v37, -1e+30 }
 0x3be   : > { %8842 = vst [vmem:[#allocation35_spill] sm:$0xff] %v7096_v14  ;;  %v2099_v24 = vpop.f32.mrf.mxu1  ;;  %v2410_v61 = vpop.f32.mrf.mxu0  ;;  %v2801_v25 = vmax.f32 %v7091_v41, -1e+30 }
 0x3bf   : > { %v7150_v61 = vadd.s32 120, %v6964_v62 }
 0x3c0   : > { %2802 = vmax.xlane.f32.xlu1 %v2801_v25  ;;  %v2101_v53 = vpop.f32.mrf.mxu1  ;;  %v2414_v43 = vpop.f32.mrf.mxu0 }
 0x3c1   : > { %v7107_v8 = vsel %vm2601_vm12, %v2101_v53, -1e+30  ;;  %v7112_v18 = vsel %vm2591_vm7, %v2414_v43, -1e+30  ;;  %vm2609_vm0 = vcmp.le.s32.totalorder %v6966_v13, %v7150_v61 }
 0x3c2   : > { %8843 = vst [vmem:[#allocation23_spill] sm:$0xff] %v7112_v18  ;;  %v2103_v39 = vpop.f32.mrf.mxu1  ;;  %v2416_v21 = vpop.f32.mrf.mxu0  ;;  %v2804_v52 = vmax.f32 %v7107_v8, -1e+30 }
 0x3c4   : > { %2805 = vmax.xlane.f32.xlu0 %v2804_v52  ;;  %v2107_v42 = vpop.f32.mrf.mxu1  ;;  %v2418_v17 = vpop.f32.mrf.mxu0 }
 0x3c5   : > { %v7123_v1 = vsel %vm2603_vm13, %v2107_v42, -1e+30  ;;  %v7128_v51 = vsel %vm2593_vm8, %v2418_v17, -1e+30 }
 0x3c6   : > { %8844 = vst [vmem:[#allocation36_spill] sm:$0xff] %v7128_v51  ;;  %v2109_v63 = vpop.f32.mrf.mxu1  ;;  %v2420_v27 = vpop.f32.mrf.mxu0  ;;  %v2807_v45 = vmax.f32 %v7123_v1, -1e+30 }
 0x3c7   : > { %v7166_v63 = vadd.s32 128, %v6964_v62  ;;  %v7169_v27 = vadd.s32 128, %v6966_v13  ;;  %v7282_v13 = vadd.s32 176, %v6964_v62 }
 0x3c8   : > { %2808 = vmax.xlane.f32.xlu1 %v2807_v45  ;;  %v2111_v9 = vpop.f32.mrf.mxu1  ;;  %v2424_v16 = vpop.f32.mrf.mxu0 }
 0x3c9   : > { %v7139_v15 = vsel %vm2605_vm14, %v2111_v9, -1e+30  ;;  %v7144_v50 = vsel %vm2595_vm9, %v2424_v16, -1e+30  ;;  %vm2612_vm1 = vcmp.le.s32.totalorder %v7169_v27, %v7166_v63  ;;  %vm2616_vm3 = vcmp.le.s32.totalorder %v7169_v27, %v7206_v46 }
 0x3ca   : > { %v2113_v33 = vpop.f32.mrf.mxu1  ;;  %v2426_v37 = vpop.f32.mrf.mxu0  ;;  %v2810_v24 = vmax.f32 %v7139_v15, -1e+30  ;;  %vm2618_vm4 = vcmp.le.s32.totalorder %v7169_v27, %v7225_v28  ;;  %vm2620_vm5 = vcmp.le.s32.totalorder %v7169_v27, %v7244_v10  ;;  %vm2624_vm7 = vcmp.le.s32.totalorder %v7169_v27, %v7282_v13 }
 0x3cb   : > { %vm2628_vm9 = vcmp.le.s32.totalorder %v7169_v27, %v7310_v22 }
 0x3cc   : > { %2811 = vmax.xlane.f32.xlu0 %v2810_v24  ;;  %v2117_v25 = vpop.f32.mrf.mxu1  ;;  %v2428_v53 = vpop.f32.mrf.mxu0 }
 0x3cd   : > { %v7155_v43 = vsel %vm2607_vm15, %v2117_v25, -1e+30  ;;  %v7160_v5 = vsel %vm2597_vm10, %v2428_v53, -1e+30  ;;  %v7187_v25 = vadd.s32 136, %v6964_v62  ;;  %vm2630_vm10 = vcmp.le.s32.totalorder %v7169_v27, %v7324_v58 }
 0x3ce   : > { %v2119_v39 = vpop.f32.mrf.mxu1  ;;  %v2430_v21 = vpop.f32.mrf.mxu0  ;;  %v2813_v52 = vmax.f32 %v7155_v43, -1e+30 }
 0x3cf   : > { %vm2614_vm2 = vcmp.le.s32.totalorder %v7169_v27, %v7187_v25 }
 0x3d0   : > { %2814 = vmax.xlane.f32.xlu1 %v2813_v52  ;;  %v2121_v42 = vpop.f32.mrf.mxu1  ;;  %v2434_v17 = vpop.f32.mrf.mxu0 }
 0x3d1   : > { %v7174_v6 = vsel %vm2609_vm0, %v2121_v42, -1e+30  ;;  %v7179_v45 = vsel %vm2599_vm11, %v2434_v17, -1e+30 }
 0x3d2   : > { %8845 = vst [vmem:[#allocation32_spill] sm:$0xff] %v7174_v6  ;;  %v2123_v9 = vpop.f32.mrf.mxu1  ;;  %v2436_v16 = vpop.f32.mrf.mxu0  ;;  %v2816_v33 = vmax.f32 %v7174_v6, -1e+30 }
 0x3d4   : > { %2817 = vmax.xlane.f32.xlu0 %v2816_v33  ;;  %v7182_v37 = vpop.f32.mrf.mxu1  ;;  %v2438_v24 = vpop.f32.mrf.mxu0 }
 0x3d5   : > { %8846 = vst [vmem:[#allocation20_spill] sm:$0xff] %v7182_v37  ;;  %v7192_v0 = vsel %vm2601_vm12, %v2438_v24, -1e+30 }
 0x3d6   : > { %v2129_v53 = vpop.f32.mrf.mxu1  ;;  %v2440_v39 = vpop.f32.mrf.mxu0 }
 0x3d7   : > { %v7197_v21 = vsel %vm2612_vm1, %v2129_v53, -1e+30 }
 0x3d8   : > { %8847 = vst [vmem:[#allocation34_spill] sm:$0xff] %v7197_v21  ;;  %v7199_v52 = vpop.f32.mrf.mxu1  ;;  %v2444_v42 = vpop.f32.mrf.mxu0  ;;  %v2819_v17 = vmax.f32 %v7182_v37, %v7197_v21 }
 0x3d9   : > { %8848 = vst [vmem:[#allocation62_spill] sm:$0xff] %v7199_v52  ;;  %v7211_v9 = vsel %vm2603_vm13, %v2444_v42, -1e+30 }
 0x3da   : > { %2820 = vmax.xlane.f32.xlu1 %v2819_v17  ;;  %v2133_v16 = vpop.f32.mrf.mxu1  ;;  %v2446_v33 = vpop.f32.mrf.mxu0 }
 0x3db   : > { %v7216_v24 = vsel %vm2614_vm2, %v2133_v16, -1e+30 }
 0x3dc   : > { %8849 = vst [vmem:[#allocation14_spill] sm:$0xff] %v7216_v24  ;;  %v7218_v53 = vpop.f32.mrf.mxu1  ;;  %v2448_v39 = vpop.f32.mrf.mxu0  ;;  %v2822_v47 = vmax.f32 %v7199_v52, %v7216_v24 }
 0x3dd   : > { %8850 = vst [vmem:[#allocation13_spill] sm:$0xff] %v7218_v53  ;;  %v7230_v42 = vsel %vm2605_vm14, %v2448_v39, -1e+30 }
 0x3de   : > { %2823 = vmax.xlane.f32.xlu0 %v2822_v47  ;;  %v2139_v17 = vpop.f32.mrf.mxu1  ;;  %v2450_v16 = vpop.f32.mrf.mxu0 }
 0x3df   : > { %v7235_v33 = vsel %vm2616_vm3, %v2139_v17, -1e+30 }
 0x3e0   : > { %8851 = vst [vmem:[#allocation29_spill] sm:$0xff] %v7235_v33  ;;  %v7237_v30 = vpop.f32.mrf.mxu1  ;;  %v2454_v12 = vpop.f32.mrf.mxu0  ;;  %v2825_v57 = vmax.f32 %v7218_v53, %v7235_v33  ;;  %v7415_v53 = vadd.s32 248, %v6964_v62 }
 0x3e1   : > { %8852 = vst [vmem:[#allocation17_spill] sm:$0xff] %v7237_v30  ;;  %v7249_v47 = vsel %vm2607_vm15, %v2454_v12, -1e+30  ;;  %v7263_v12 = vadd.s32 168, %v6964_v62 }
 0x3e2   : > { %2826 = vmax.xlane.f32.xlu1 %v2825_v57  ;;  %v2143_v39 = vpop.f32.mrf.mxu1  ;;  %v2456_v17 = vpop.f32.mrf.mxu0  ;;  %8876 = vst [vmem:[#allocation83_spill] sm:$0xff] %v7415_v53 }
 0x3e3   : > { %v7254_v16 = vsel %vm2618_vm4, %v2143_v39, -1e+30  ;;  %vm2622_vm6 = vcmp.le.s32.totalorder %v7169_v27, %v7263_v12 }
 0x3e4   : > { %8853 = vst [vmem:[#allocation31_spill] sm:$0xff] %v7254_v16  ;;  %v7256_v55 = vpop.f32.mrf.mxu1  ;;  %v2458_v3 = vpop.f32.mrf.mxu0  ;;  %v2828_v44 = vmax.f32 %v7237_v30, %v7254_v16  ;;  %v7398_v30 = vadd.s32 240, %v6964_v62 }
 0x3e5   : > { %8854 = vst [vmem:[#allocation71_spill] sm:$0xff] %v7256_v55  ;;  %v7268_v57 = vsel %vm2609_vm0, %v2458_v3, -1e+30  ;;  %vm2642_vm0 = vcmp.le.s32.totalorder %v7169_v27, %v7415_v53 }
 0x3e6   : > { %2829 = vmax.xlane.f32.xlu0 %v2828_v44  ;;  %v2149_v49 = vpop.f32.mrf.mxu1  ;;  %v2460_v39 = vpop.f32.mrf.mxu0  ;;  %8873 = vst [vmem:[#allocation64_spill] sm:$0xff] %v7398_v30  ;;  %vm2640_vm15 = vcmp.le.s32.totalorder %v7169_v27, %v7398_v30 }
 0x3e7   : > { %v7273_v17 = vsel %vm2620_vm5, %v2149_v49, -1e+30  ;;  %v7296_v39 = vadd.s32 184, %v6964_v62 }
 0x3e8   : > { %8855 = vst [vmem:[#allocation58_spill] sm:$0xff] %v7273_v17  ;;  %v7275_v4 = vpop.f32.mrf.mxu1  ;;  %v2831_v11 = vmax.f32 %v7256_v55, %v7273_v17 }
 0x3e9   : > { %8856 = vst [vmem:[#allocation12_spill] sm:$0xff] %v7275_v4  ;;  %vm2626_vm8 = vcmp.le.s32.totalorder %v7169_v27, %v7296_v39 }
 0x3ea   : > { %2832 = vmax.xlane.f32.xlu1 %v2831_v11  ;;  %v2153_v44 = vpop.f32.mrf.mxu1 }
 0x3eb   : > { %v7287_v3 = vsel %vm2622_vm6, %v2153_v44, -1e+30 }
 0x3ec   : > { %8857 = vst [vmem:[#allocation11_spill] sm:$0xff] %v7287_v3  ;;  %v7289_v61 = vpop.f32.mrf.mxu1  ;;  %v2834_v49 = vmax.f32 %v7275_v4, %v7287_v3 }
 0x3ed   : > { %8858 = vst [vmem:[#allocation28_spill] sm:$0xff] %v7289_v61 }
 0x3ee   : > { %2835 = vmax.xlane.f32.xlu0 %v2834_v49  ;;  %v2159_v48 = vpop.f32.mrf.mxu1 }
 0x3ef   : > { %v7301_v11 = vsel %vm2624_vm7, %v2159_v48, -1e+30 }
 0x3f0   : > { %8859 = vst [vmem:[#allocation68_spill] sm:$0xff] %v7301_v11  ;;  %v7303_v44 = vpop.f32.mrf.mxu1  ;;  %v2837_v59 = vmax.f32 %v7289_v61, %v7301_v11 }
 0x3f1   : > { %8860 = vst [vmem:[#allocation55_spill] sm:$0xff] %v7303_v44 }
 0x3f2   : > { %2838 = vmax.xlane.f32.xlu1 %v2837_v59  ;;  %v2163_v19 = vpop.f32.mrf.mxu1 }
 0x3f3   : > { %v7315_v49 = vsel %vm2626_vm8, %v2163_v19, -1e+30 }
 0x3f4   : > { %8861 = vst [vmem:[#allocation70_spill] sm:$0xff] %v7315_v49  ;;  %v7317_v48 = vpop.f32.mrf.mxu1  ;;  %v2840_v38 = vmax.f32 %v7303_v44, %v7315_v49  ;;  %v7338_v49 = vadd.s32 208, %v6964_v62 }
 0x3f5   : > { %8862 = vst [vmem:[#allocation10_spill] sm:$0xff] %v7317_v48 }
 0x3f6   : > { %2841 = vmax.xlane.f32.xlu0 %v2840_v38  ;;  %v2169_v11 = vpop.f32.mrf.mxu1  ;;  %vm2632_vm11 = vcmp.le.s32.totalorder %v7169_v27, %v7338_v49 }
 0x3f7   : > { %v7329_v59 = vsel %vm2628_vm9, %v2169_v11, -1e+30 }
 0x3f8   : > { %8863 = vst [vmem:[#allocation8_spill] sm:$0xff] %v7329_v59  ;;  %v7331_v19 = vpop.f32.mrf.mxu1  ;;  %v2843_v61 = vmax.f32 %v7317_v48, %v7329_v59  ;;  %v7352_v59 = vadd.s32 216, %v6964_v62 }
 0x3f9   : > { %8864 = vst [vmem:[#allocation65_spill] sm:$0xff] %v7331_v19 }
 0x3fa   : > { %2844 = vmax.xlane.f32.xlu1 %v2843_v61  ;;  %v2173_v44 = vpop.f32.mrf.mxu1  ;;  %vm2634_vm12 = vcmp.le.s32.totalorder %v7169_v27, %v7352_v59 }
 0x3fb   : > { %v7343_v38 = vsel %vm2630_vm10, %v2173_v44, -1e+30 }
 0x3fc   : > { %8865 = vst [vmem:[#allocation52_spill] sm:$0xff] %v7343_v38  ;;  %v7345_v11 = vpop.f32.mrf.mxu1  ;;  %v2846_v3 = vmax.f32 %v7331_v19, %v7343_v38  ;;  %v7366_v38 = vadd.s32 224, %v6964_v62 }
 0x3fd   : > { %8866 = vst [vmem:[#allocation67_spill] sm:$0xff] %v7345_v11 }
 0x3fe   : > { %2847 = vmax.xlane.f32.xlu0 %v2846_v3  ;;  %v2179_v48 = vpop.f32.mrf.mxu1  ;;  %vm2636_vm13 = vcmp.le.s32.totalorder %v7169_v27, %v7366_v38 }
 0x3ff   : > { %v7357_v61 = vsel %vm2632_vm11, %v2179_v48, -1e+30 }
 0x400   : > { %8867 = vst [vmem:[#allocation84_spill] sm:$0xff] %v7357_v61  ;;  %v7359_v44 = vpop.f32.mrf.mxu1  ;;  %v2849_v4 = vmax.f32 %v7345_v11, %v7357_v61  ;;  %v2867_v61 = vmax.f32 %v7020_v35, -1e+30  ;;  %v7381_v11 = vadd.s32 232, %v6964_v62  ;;  %v2876_v62 = vmax.f32 %v7065_v20, -1e+30 }
 0x401   : > { %8868 = vst [vmem:[#allocation59_spill] sm:$0xff] %v7359_v44 }
 0x402   : > { %2850 = vmax.xlane.f32.xlu1 %v2849_v4  ;;  %v2183_v19 = vpop.f32.mrf.mxu1  ;;  %v7383_v4 = vpop.f32.mrf.mxu0  ;;  %vm2638_vm14 = vcmp.le.s32.totalorder %v7169_v27, %v7381_v11 }
 0x403   : > { %v7371_v3 = vsel %vm2634_vm12, %v2183_v19, -1e+30 }
 0x404   : > { %8869 = vst [vmem:[#allocation7_spill] sm:$0xff] %v7371_v3  ;;  %v7373_v48 = vpop.f32.mrf.mxu1  ;;  %v2852_v17 = vmax.f32 %v7359_v44, %v7371_v3  ;;  %v2870_v44 = vmax.f32 %v7035_v60, -1e+30 }
 0x405   : > { %8870 = vst [vmem:[#allocation5_spill] sm:$0xff] %v7373_v48 }
 0x406   : > { %2853 = vmax.xlane.f32.xlu0 %v2852_v17  ;;  %v2189_v55 = vpop.f32.mrf.mxu1  ;;  %2868 = vmax.xlane.f32.xlu1 %v2867_v61  ;;  %v7400_v17 = vpop.f32.mrf.mxu0 }
 0x407   : > { %v7388_v19 = vsel %vm2636_vm13, %v2189_v55, -1e+30 }
 0x408   : > { %8871 = vst [vmem:[#allocation61_spill] sm:$0xff] %v7388_v19  ;;  %v7390_v16 = vpop.f32.mrf.mxu1  ;;  %v2855_v3 = vmax.f32 %v7373_v48, %v7388_v19  ;;  %v2873_v48 = vmax.f32 %v7050_v34, -1e+30 }
 0x409   : > { %8872 = vst [vmem:[#allocation48_spill] sm:$0xff] %v7390_v16 }
 0x40a   : > { %v2193_v61 = vpop.f32.mrf.mxu1  ;;  %2856 = vmax.xlane.f32.xlu1 %v2855_v3  ;;  %2871 = vmax.xlane.f32.xlu0 %v2870_v44  ;;  %v7417_v3 = vpop.f32.mrf.mxu0 }
 0x40b   : > { %v7405_v55 = vsel %vm2638_vm14, %v2193_v61, -1e+30 }
 0x40c   : > { %8874 = vst [vmem:[#allocation81_spill] sm:$0xff] %v7405_v55  ;;  %v7407_v33 = vpop.f32.mrf.mxu1  ;;  %v2858_v19 = vmax.f32 %v7390_v16, %v7405_v55  ;;  %v7431_v16 = vpop.f32.mrf.mxu0 }
 0x40d   : > { %8875 = vst [vmem:[#allocation72_spill] sm:$0xff] %v7407_v33  ;;  %v7568_v63 = vsel %vm2614_vm2, %v7431_v16, -1e+30 }
 0x40e   : > { %v2199_v44 = vpop.f32.mrf.mxu1  ;;  %2859 = vmax.xlane.f32.xlu0 %v2858_v19  ;;  %2874 = vmax.xlane.f32.xlu1 %v2873_v48  ;;  %v7441_v21 = vpop.f32.mrf.mxu0 }
 0x40f   : > { %v7422_v61 = vsel %vm2640_vm15, %v2199_v44, -1e+30  ;;  %v2879_v44 = vmax.f32 %v7080_v32, -1e+30 }
 0x410   : > { %8877 = vst [vmem:[#allocation21_spill] sm:$0xff] %v7422_v61  ;;  %v7424_v24 = vpop.f32.mrf.mxu1  ;;  %v2861_v55 = vmax.f32 %v7407_v33, %v7422_v61  ;;  %v2882_v61 = vmax.f32 %v7096_v14, -1e+30  ;;  %v2885_v33 = vmax.f32 %v7112_v18, -1e+30 }
 0x411   : > { %8878 = vst [vmem:[#allocation57_spill] sm:$0xff] %v7424_v24 }
 0x412   : > { %v2203_v52 = vpop.f32.mrf.mxu1  ;;  %2862 = vmax.xlane.f32.xlu1 %v2861_v55  ;;  %2877 = vmax.xlane.f32.xlu0 %v2876_v62  ;;  %v7445_v55 = vpop.f32.mrf.mxu0 }
 0x413   : > { %v7436_v48 = vsel %vm2642_vm0, %v2203_v52, -1e+30  ;;  %v2888_v52 = vmax.f32 %v7128_v51, -1e+30  ;;  %v7582_v25 = vsel %vm2616_vm3, %v7445_v55, -1e+30 }
 0x414   : > { %8879 = vst [vmem:[#allocation45_spill] sm:$0xff] %v7436_v48  ;;  %v2864_v19 = vmax.f32 %v7424_v24, %v7436_v48  ;;  %v7448_v62 = vpop.f32.mrf.mxu0 }
 0x416   : > { %2865 = vmax.xlane.f32.xlu0 %v2864_v19  ;;  %2880 = vmax.xlane.f32.xlu1 %v2879_v44  ;;  %v7450_v24 = vpop.f32.mrf.mxu0 }
 0x417   : > { %v7598_v46 = vsel %vm2618_vm4, %v7450_v24, -1e+30 }
 0x418   : > { %v7453_v30 = vpop.f32.mrf.mxu0 }
 0x41a   : > { %2883 = vmax.xlane.f32.xlu0 %v2882_v61  ;;  %2886 = vmax.xlane.f32.xlu1 %v2885_v33 }
 0x41e   : > { %2889 = vmax.xlane.f32.xlu0 %v2888_v52  ;;  %v7456_v52 = vpop.f32.mrf.mxu0 }
 0x41f   : > { %v7604_v55 = vsel %vm2620_vm5, %v7456_v52, -1e+30 }
 0x420   : > { %v7459_v20 = vpop.f32.mrf.mxu0 }
 0x421   : > { %v2773_v48 = vpop.xlane.xlu0 %2772  ;;  %8880 = vst [vmem:[#allocation60_spill] sm:$0xff] %v7459_v20 }
 0x422   : > { %v2963_v53 = vsub.f32 %v6974_v26, %v2773_v48  ;;  %v2964_v19 = vsub.f32 -1e+30, %v2773_v48 }
 0x424   : > { %v3091_v44 = vmul.f32 1.442695, %v2963_v53  ;;  %v3093_v37 = vmul.f32 1.442695, %v2964_v19 }
 0x425   : > { %v2776_v14 = vpop.xlane.xlu1 %2775 }
 0x426   : > { %5423 = vpow2.f32 %v3091_v44  ;;  %v2965_v61 = vsub.f32 %v6981_v31, %v2776_v14  ;;  %v2966_v33 = vsub.f32 -1e+30, %v2776_v14 }
 0x427   : > { %5425 = vpow2.f32 %v3093_v37 }
 0x428   : > { %v3095_v51 = vmul.f32 1.442695, %v2965_v61  ;;  %v3097_v18 = vmul.f32 1.442695, %v2966_v33  ;;  %v7462_v33 = vpop.f32.mrf.mxu0 }
 0x429   : > { %v2779_v6 = vpop.xlane.xlu0 %2778  ;;  %v7614_v24 = vsel %vm2622_vm6, %v7462_v33, -1e+30 }
 0x42a   : > { %5427 = vpow2.f32 %v3095_v51  ;;  %v2967_v32 = vsub.f32 %v6988_v29, %v2779_v6  ;;  %v2968_v26 = vsub.f32 -1e+30, %v2779_v6  ;;  %8908 = vst [vmem:[#allocation88_spill] sm:$0xff] %v7614_v24  ;;  %v2930_v52 = vmax.f32 %v7459_v20, %v7614_v24 }
 0x42b   : > { %5429 = vpow2.f32 %v3097_v18 }
 0x42c   : > { %v3099_v53 = vmul.f32 1.442695, %v2967_v32  ;;  %v3101_v48 = vmul.f32 1.442695, %v2968_v26 }
 0x42d   : > { %v2782_v19 = vpop.xlane.xlu0 %2781 }
 0x42e   : > { %5431 = vpow2.f32 %v3099_v53  ;;  %v2969_v31 = vsub.f32 %v6995_v56, %v2782_v19  ;;  %v2970_v14 = vsub.f32 -1e+30, %v2782_v19 }
 0x42f   : > { %5433 = vpow2.f32 %v3101_v48  ;;  %v7471_v48 = vpop.f32.mrf.mxu0 }
 0x430   : > { %v3103_v37 = vmul.f32 1.442695, %v2969_v31  ;;  %v3105_v44 = vmul.f32 1.442695, %v2970_v14  ;;  %8883 = vst [vmem:[#allocation80_spill] sm:$0xff] %v7471_v48 }
 0x431   : > { %v2785_v61 = vpop.xlane.xlu1 %2784 }
 0x432   : > { %5435 = vpow2.f32 %v3103_v37  ;;  %v2971_v29 = vsub.f32 %v7004_v2, %v2785_v61  ;;  %v2972_v51 = vsub.f32 -1e+30, %v2785_v61 }
 0x433   : > { %v7465_v18 = vpop.eup %5423  ;;  %5437 = vpow2.f32 %v3105_v44 }
 0x434   : > { %8881 = vst [vmem:[#allocation78_spill] sm:$0xff] %v7465_v18  ;;  %v7467_v32 = vpop.eup %5425  ;;  %v3107_v6 = vmul.f32 1.442695, %v2971_v29  ;;  %v3109_v26 = vmul.f32 1.442695, %v2972_v51 }
 0x435   : > { %8882 = vst [vmem:[#allocation69_spill] sm:$0xff] %v7467_v32  ;;  %v2788_v53 = vpop.xlane.xlu0 %2787  ;;  %v3347_v56 = vadd.f32 %v7467_v32, %v7465_v18  ;;  %v2891_v51 = vmax.f32 %v7144_v50, -1e+30  ;;  %v7481_v32 = vpop.f32.mrf.mxu0 }
 0x436   : > { %5439 = vpow2.f32 %v3107_v6  ;;  %v2973_v19 = vsub.f32 %v7015_v7, %v2788_v53  ;;  %v2974_v31 = vsub.f32 -1e+30, %v2788_v53  ;;  %v7620_v28 = vsel %vm2624_vm7, %v7481_v32, -1e+30 }
 0x437   : > { %v7474_v14 = vpop.eup %5427  ;;  %5441 = vpow2.f32 %v3109_v26  ;;  %3348 = vadd.xlane.f32.xlu1 %v3347_v56  ;;  %v7491_v18 = vpop.f32.mrf.mxu0  ;;  %8909 = vst [vmem:[#allocation89_spill] sm:$0xff] %v7620_v28 }
 0x438   : > { %8884 = vst [vmem:[#allocation63_spill] sm:$0xff] %v7474_v14  ;;  %v7476_v2 = vpop.eup %5429  ;;  %v3111_v37 = vmul.f32 1.442695, %v2973_v19  ;;  %v3113_v44 = vmul.f32 1.442695, %v2974_v31  ;;  %8888 = vst [vmem:[#allocation75_spill] sm:$0xff] %v7491_v18 }
 0x439   : > { %8885 = vst [vmem:[#allocation54_spill] sm:$0xff] %v7476_v2  ;;  %v2791_v61 = vpop.xlane.xlu1 %2790  ;;  %v3350_v29 = vadd.f32 %v7476_v2, %v7474_v14  ;;  %v2894_v14 = vmax.f32 %v7160_v5, -1e+30 }
 0x43a   : > { %5443 = vpow2.f32 %v3111_v37  ;;  %v2975_v7 = vsub.f32 %v7031_v23, %v2791_v61  ;;  %v2976_v6 = vsub.f32 -1e+30, %v2791_v61 }
 0x43b   : > { %v7484_v53 = vpop.eup %5431  ;;  %5445 = vpow2.f32 %v3113_v44  ;;  %3351 = vadd.xlane.f32.xlu0 %v3350_v29  ;;  %2892 = vmax.xlane.f32.xlu1 %v2891_v51 }
 0x43c   : > { %8886 = vst [vmem:[#allocation43_spill] sm:$0xff] %v7484_v53  ;;  %v7486_v26 = vpop.eup %5433  ;;  %v3115_v56 = vmul.f32 1.442695, %v2975_v7  ;;  %v3117_v19 = vmul.f32 1.442695, %v2976_v6 }
 0x43d   : > { %8887 = vst [vmem:[#allocation56_spill] sm:$0xff] %v7486_v26  ;;  %v2794_v31 = vpop.xlane.xlu0 %2793  ;;  %v3353_v2 = vadd.f32 %v7486_v26, %v7484_v53  ;;  %v2897_v53 = vmax.f32 %v7179_v45, -1e+30  ;;  %v7501_v26 = vpop.f32.mrf.mxu0 }
 0x43e   : > { %5447 = vpow2.f32 %v3115_v56  ;;  %v2977_v23 = vsub.f32 %v7046_v54, %v2794_v31  ;;  %v2978_v37 = vsub.f32 -1e+30, %v2794_v31  ;;  %v7632_v12 = vsel %vm2626_vm8, %v7501_v26, -1e+30 }
 0x43f   : > { %v7494_v61 = vpop.eup %5435  ;;  %5449 = vpow2.f32 %v3117_v19  ;;  %3354 = vadd.xlane.f32.xlu1 %v3353_v2  ;;  %2895 = vmax.xlane.f32.xlu0 %v2894_v14  ;;  %8911 = vst [vmem:[#allocation91_spill] sm:$0xff] %v7632_v12  ;;  %v2936_v32 = vmax.f32 %v7491_v18, %v7632_v12 }
 0x440   : > { %8889 = vst [vmem:[#allocation66_spill] sm:$0xff] %v7494_v61  ;;  %v7496_v44 = vpop.eup %5437  ;;  %v3119_v29 = vmul.f32 1.442695, %v2977_v23  ;;  %v3121_v51 = vmul.f32 1.442695, %v2978_v37 }
 0x441   : > { %8890 = vst [vmem:[#allocation77_spill] sm:$0xff] %v7496_v44  ;;  %v2797_v7 = vpop.xlane.xlu1 %2796  ;;  %v3356_v6 = vadd.f32 %v7496_v44, %v7494_v61  ;;  %v2900_v61 = vmax.f32 %v7192_v0, -1e+30  ;;  %v7511_v44 = vpop.f32.mrf.mxu0 }
 0x442   : > { %5451 = vpow2.f32 %v3119_v29  ;;  %v2979_v54 = vsub.f32 %v7061_v40, %v2797_v7  ;;  %v2980_v56 = vsub.f32 -1e+30, %v2797_v7  ;;  %8893 = vst [vmem:[#allocation40_spill] sm:$0xff] %v7511_v44 }
 0x443   : > { %v7504_v31 = vpop.eup %5439  ;;  %5453 = vpow2.f32 %v3121_v51  ;;  %3357 = vadd.xlane.f32.xlu0 %v3356_v6  ;;  %2898 = vmax.xlane.f32.xlu1 %v2897_v53 }
 0x444   : > { %8891 = vst [vmem:[#allocation24_spill] sm:$0xff] %v7504_v31  ;;  %v7506_v14 = vpop.eup %5441  ;;  %v3123_v2 = vmul.f32 1.442695, %v2979_v54  ;;  %v3125_v19 = vmul.f32 1.442695, %v2980_v56 }
 0x445   : > { %8892 = vst [vmem:[#allocation51_spill] sm:$0xff] %v7506_v14  ;;  %v2800_v23 = vpop.xlane.xlu0 %2799  ;;  %v3359_v37 = vadd.f32 %v7506_v14, %v7504_v31  ;;  %v2903_v31 = vmax.f32 %v7211_v9, -1e+30  ;;  %v7521_v14 = vpop.f32.mrf.mxu0 }
 0x446   : > { %5455 = vpow2.f32 %v3123_v2  ;;  %v2981_v40 = vsub.f32 %v7076_v36, %v2800_v23  ;;  %v2982_v29 = vsub.f32 -1e+30, %v2800_v23  ;;  %v7638_v13 = vsel %vm2628_vm9, %v7521_v14, -1e+30 }
 0x447   : > { %v7514_v7 = vpop.eup %5443  ;;  %5457 = vpow2.f32 %v3125_v19  ;;  %3360 = vadd.xlane.f32.xlu1 %v3359_v37  ;;  %2901 = vmax.xlane.f32.xlu0 %v2900_v61  ;;  %8912 = vst [vmem:[#allocation92_spill] sm:$0xff] %v7638_v13 }
 0x448   : > { %8894 = vst [vmem:[#allocation53_spill] sm:$0xff] %v7514_v7  ;;  %v7516_v53 = vpop.eup %5445  ;;  %v3127_v51 = vmul.f32 1.442695, %v2981_v40  ;;  %v3129_v6 = vmul.f32 1.442695, %v2982_v29 }
 0x449   : > { %8895 = vst [vmem:[#allocation74_spill] sm:$0xff] %v7516_v53  ;;  %v2803_v54 = vpop.xlane.xlu1 %2802  ;;  %v3362_v56 = vadd.f32 %v7516_v53, %v7514_v7  ;;  %v2906_v7 = vmax.f32 %v7230_v42, -1e+30  ;;  %v7531_v53 = vpop.f32.mrf.mxu0 }
 0x44a   : > { %5459 = vpow2.f32 %v3127_v51  ;;  %v2983_v36 = vsub.f32 %v7091_v41, %v2803_v54  ;;  %v2984_v2 = vsub.f32 -1e+30, %v2803_v54  ;;  %8897 = vst [vmem:[#allocation50_spill] sm:$0xff] %v7531_v53 }
 0x44b   : > { %v7524_v23 = vpop.eup %5447  ;;  %5461 = vpow2.f32 %v3129_v6  ;;  %3363 = vadd.xlane.f32.xlu0 %v3362_v56  ;;  %2904 = vmax.xlane.f32.xlu1 %v2903_v31 }
 0x44c   : > { %8896 = vst [vmem:[#allocation82_spill] sm:$0xff] %v7524_v23  ;;  %v7526_v61 = vpop.eup %5449  ;;  %v3131_v19 = vmul.f32 1.442695, %v2983_v36  ;;  %v3133_v37 = vmul.f32 1.442695, %v2984_v2 }
 0x44d   : > { %v2806_v40 = vpop.xlane.xlu0 %2805  ;;  %v3365_v29 = vadd.f32 %v7526_v61, %v7524_v23  ;;  %v2909_v2 = vmax.f32 %v7249_v47, -1e+30  ;;  %v2510_v23 = vpop.f32.mrf.mxu0 }
 0x44e   : > { %5463 = vpow2.f32 %v3131_v19  ;;  %v2985_v41 = vsub.f32 %v7107_v8, %v2806_v40  ;;  %v2986_v51 = vsub.f32 -1e+30, %v2806_v40  ;;  %v7552_v40 = vsel %vm2612_vm1, %v7400_v17, -1e+30 }
 0x44f   : > { %v7534_v54 = vpop.eup %5451  ;;  %5465 = vpow2.f32 %v3133_v37  ;;  %3366 = vadd.xlane.f32.xlu1 %v3365_v29  ;;  %2907 = vmax.xlane.f32.xlu0 %v2906_v7  ;;  %v2912_v37 = vmax.f32 %v7268_v57, -1e+30  ;;  %v7554_v29 = vpop.f32.mrf.mxu0  ;;  %v7647_v39 = vsel %vm2630_vm10, %v2510_v23, -1e+30  ;;  %vm4373_vm1 = vcmask 519168  }
 0x450   : > { %v7536_v31 = vpop.eup %5453  ;;  %v3135_v6 = vmul.f32 1.442695, %v2985_v41  ;;  %v3137_v56 = vmul.f32 1.442695, %v2986_v51  ;;  %8900 = vst [vmem:[#allocation76_spill] sm:$0xff] %v7554_v29  ;;  %8913 = vst [vmem:[#allocation93_spill] sm:$0xff] %v7647_v39 }
 0x451   : > { %v3368_v36 = vadd.f32 %v7536_v31, %v7534_v54  ;;  %v2516_v17 = vpop.f32.mrf.mxu0  ;;  %v2809_v14 = vpop.xlane.xlu1 %2808 }
 0x452   : > { %5467 = vpow2.f32 %v3135_v6  ;;  %v7652_v22 = vsel %vm2632_vm11, %v2516_v17, -1e+30 }
 0x453   : > { %v7541_v19 = vpop.eup %5455  ;;  %5469 = vpow2.f32 %v3137_v56  ;;  %3369 = vadd.xlane.f32.xlu0 %v3368_v36  ;;  %2910 = vmax.xlane.f32.xlu1 %v2909_v2  ;;  %v2915_v56 = vmax.f32 %v7383_v4, %v7552_v40  ;;  %v7584_v16 = vpop.f32.mrf.mxu0  ;;  %8914 = vst [vmem:[#allocation94_spill] sm:$0xff] %v7652_v22 }
 0x454   : > { %8898 = vst [vmem:[#allocation27_spill] sm:$0xff] %v7541_v19  ;;  %v7543_v8 = vpop.eup %5457  ;;  %8905 = vst [vmem:[#allocation85_spill] sm:$0xff] %v7584_v16 }
 0x455   : > { %8899 = vst [vmem:[#allocation79_spill] sm:$0xff] %v7543_v8  ;;  %v3371_v7 = vadd.f32 %v7543_v8, %v7541_v19  ;;  %v2812_v17 = vpop.xlane.xlu0 %2811 }
 0x457   : > { %v7556_v41 = vpop.eup %5459  ;;  %3372 = vadd.xlane.f32.xlu1 %v3371_v7  ;;  %2913 = vmax.xlane.f32.xlu0 %v2912_v37  ;;  %v2918_v37 = vmax.f32 %v7417_v3, %v7568_v63 }
 0x458   : > { %8901 = vst [vmem:[#allocation73_spill] sm:$0xff] %v7556_v41  ;;  %v7558_v51 = vpop.eup %5461 }
 0x459   : > { %8902 = vst [vmem:[#allocation47_spill] sm:$0xff] %v7558_v51  ;;  %v3374_v6 = vadd.f32 %v7558_v51, %v7556_v41 }
 0x45b   : > { %v7570_v36 = vpop.eup %5463  ;;  %3375 = vadd.xlane.f32.xlu0 %v3374_v6  ;;  %2916 = vmax.xlane.f32.xlu1 %v2915_v56 }
 0x45c   : > { %8903 = vst [vmem:[#allocation46_spill] sm:$0xff] %v7570_v36  ;;  %v7572_v2 = vpop.eup %5465 }
 0x45d   : > { %8904 = vst [vmem:[#allocation49_spill] sm:$0xff] %v7572_v2  ;;  %v3377_v7 = vadd.f32 %v7572_v2, %v7570_v36  ;;  %v2921_v36 = vmax.f32 %v7441_v21, %v7582_v25  ;;  %v7681_v38 = vpop.xlane.xlu0 %2817 }
 0x45f   : > { %v7586_v41 = vpop.eup %5467  ;;  %3378 = vadd.xlane.f32.xlu1 %v3377_v7  ;;  %2919 = vmax.xlane.f32.xlu0 %v2918_v37  ;;  %v2520_v7 = vpop.f32.mrf.mxu0  ;;  %v2924_v37 = vmax.f32 %v7448_v62, %v7598_v46 }
 0x460   : > { %8906 = vst [vmem:[#allocation86_spill] sm:$0xff] %v7586_v41  ;;  %v7588_v6 = vpop.eup %5469  ;;  %v7663_v58 = vsel %vm2634_vm12, %v2520_v7, -1e+30 }
 0x461   : > { %8907 = vst [vmem:[#allocation87_spill] sm:$0xff] %v7588_v6  ;;  %v3380_v56 = vadd.f32 %v7588_v6, %v7586_v41  ;;  %v2927_v41 = vmax.f32 %v7453_v30, %v7604_v55  ;;  %v7622_v10 = vpop.f32.mrf.mxu0  ;;  %8916 = vst [vmem:[#allocation96_spill] sm:$0xff] %v7663_v58  ;;  %v2987_v6 = vsub.f32 %v7123_v1, %v2809_v14  ;;  %v2990_v1 = vsub.f32 -1e+30, %v2812_v17 }
 0x462   : > { %8910 = vst [vmem:[#allocation90_spill] sm:$0xff] %v7622_v10 }
 0x463   : > { %3381 = vadd.xlane.f32.xlu0 %v3380_v56  ;;  %2922 = vmax.xlane.f32.xlu1 %v2921_v36  ;;  %v2933_v36 = vmax.f32 %v7471_v48, %v7620_v28  ;;  %v2526_v33 = vpop.f32.mrf.mxu0  ;;  %v2942_v56 = vmax.f32 %v7531_v53, %v7647_v39 }
 0x464   : > { %v7668_v49 = vsel %vm2636_vm13, %v2526_v33, -1e+30 }
 0x465   : > { %v7654_v26 = vpop.f32.mrf.mxu0  ;;  %8917 = vst [vmem:[#allocation97_spill] sm:$0xff] %v7668_v49 }
 0x466   : > { %8915 = vst [vmem:[#allocation95_spill] sm:$0xff] %v7654_v26 }
 0x467   : > { %2925 = vmax.xlane.f32.xlu0 %v2924_v37  ;;  %2928 = vmax.xlane.f32.xlu1 %v2927_v41  ;;  %v2939_v41 = vmax.f32 %v7511_v44, %v7638_v13  ;;  %v2945_v37 = vmax.f32 %v7554_v29, %v7652_v22  ;;  %v2530_v23 = vpop.f32.mrf.mxu0  ;;  %v2988_v13 = vsub.f32 -1e+30, %v2809_v14 }
 0x468   : > { %v7679_v59 = vsel %vm2638_vm14, %v2530_v23, -1e+30 }
 0x469   : > { %8918 = vst [vmem:[#allocation98_spill] sm:$0xff] %v7679_v59  ;;  %v2954_v33 = vmax.f32 %v7654_v26, %v7679_v59  ;;  %v3141_v51 = vmul.f32 1.442695, %v2988_v13 }
 0x46b   : > { %2931 = vmax.xlane.f32.xlu0 %v2930_v52  ;;  %2934 = vmax.xlane.f32.xlu1 %v2933_v36  ;;  %v7670_v52 = vpop.xlane.xlu1 %2814  ;;  %v2948_v36 = vmax.f32 %v7584_v16, %v7663_v58 }
 0x46c   : > { %v2992_v13 = vsub.f32 -1e+30, %v7670_v52 }
 0x46f   : > { %2937 = vmax.xlane.f32.xlu0 %v2936_v32  ;;  %2940 = vmax.xlane.f32.xlu1 %v2939_v41  ;;  %v2951_v32 = vmax.f32 %v7622_v10, %v7668_v49  ;;  %v7683_v7 = vpop.xlane.xlu1 %2820  ;;  %v7687_v41 = vpop.xlane.xlu0 %2823 }
 0x473   : > { %2943 = vmax.xlane.f32.xlu0 %v2942_v56  ;;  %2946 = vmax.xlane.f32.xlu1 %v2945_v37  ;;  %v7689_v56 = vpop.xlane.xlu1 %2826  ;;  %v7691_v37 = vpop.xlane.xlu0 %2829 }
 0x477   : > { %2949 = vmax.xlane.f32.xlu0 %v2948_v36  ;;  %2952 = vmax.xlane.f32.xlu1 %v2951_v32  ;;  %v7693_v58 = vpop.xlane.xlu1 %2832  ;;  %v7695_v11 = vpop.xlane.xlu0 %2835 }
 0x47b   : > { %2955 = vmax.xlane.f32.xlu0 %v2954_v33  ;;  %v7697_v23 = vpop.xlane.xlu1 %2838 }
 0x47f   : > { %v7699_v16 = vpop.xlane.xlu0 %2841 }
 0x483   : > { %v7701_v36 = vpop.xlane.xlu1 %2844 }
 0x487   : > { %v7703_v32 = vpop.xlane.xlu0 %2847 }
 0x48b   : > { %v7705_v22 = vpop.xlane.xlu1 %2850 }
 0x48f   : > { %v7707_v59 = vpop.xlane.xlu0 %2853  ;;  %v2869_v26 = vpop.xlane.xlu1 %2868 }
 0x490   : > { %v3027_v33 = vsub.f32 %v7020_v35, %v2869_v26  ;;  %v3028_v29 = vsub.f32 -1e+30, %v2869_v26  ;;  %v3139_v35 = vmul.f32 1.442695, %v2987_v6  ;;  %v2989_v26 = vsub.f32 %v7139_v15, %v2812_v17  ;;  %v8919_v15 = vld [vmem:[#allocation38_spill] sm:$0xff] }
 0x491   : > { %v2991_v6 = vsub.f32 %v7155_v43, %v7670_v52 }
 0x492   : > { %v3219_v49 = vmul.f32 1.442695, %v3027_v33  ;;  %v3221_v10 = vmul.f32 1.442695, %v3028_v29  ;;  %v7718_v33 = vpop.f32.mrf.mxu0 }
 0x493   : > { %v7710_v39 = vpop.xlane.xlu1 %2856  ;;  %v2872_v53 = vpop.xlane.xlu0 %2871 }
 0x494   : > { %v3029_v2 = vsub.f32 %v7035_v60, %v2872_v53  ;;  %v3030_v44 = vsub.f32 -1e+30, %v2872_v53  ;;  %5471 = vpow2.f32 %v3219_v49  ;;  %v3145_v49 = vmul.f32 1.442695, %v2990_v1 }
 0x495   : > { %5473 = vpow2.f32 %v3221_v10  ;;  %v3143_v10 = vmul.f32 1.442695, %v2989_v26  ;;  %v8921_v26 = vld [vmem:[#allocation15_spill] sm:$0xff] }
 0x496   : > { %v3223_v12 = vmul.f32 1.442695, %v3029_v2  ;;  %v3225_v18 = vmul.f32 1.442695, %v3030_v44 }
 0x497   : > { %v7714_v28 = vpop.xlane.xlu0 %2859  ;;  %v2875_v48 = vpop.xlane.xlu1 %2874 }
 0x498   : > { %v3031_v29 = vsub.f32 %v7050_v34, %v2875_v48  ;;  %v3032_v24 = vsub.f32 -1e+30, %v2875_v48  ;;  %5475 = vpow2.f32 %v3223_v12  ;;  %v2536_v34 = vpop.f32.mrf.mxu0 }
 0x499   : > { %5477 = vpow2.f32 %v3225_v18 }
 0x49a   : > { %v3227_v60 = vmul.f32 1.442695, %v3031_v29  ;;  %v3229_v53 = vmul.f32 1.442695, %v3032_v24  ;;  %5479 = vpow2.f32 %v3139_v35  ;;  %v3147_v35 = vmul.f32 1.442695, %v2991_v6  ;;  %v7729_v43 = vpop.f32.mrf.mxu0 }
 0x49b   : > { %v7720_v2 = vpop.xlane.xlu1 %2862  ;;  %v2878_v44 = vpop.xlane.xlu0 %2877  ;;  %5481 = vpow2.f32 %v3141_v51  ;;  %v8922_v51 = vld [vmem:[#allocation32_spill] sm:$0xff] }
 0x49c   : > { %v3033_v14 = vsub.f32 %v8919_v15, %v2878_v44  ;;  %v3034_v48 = vsub.f32 -1e+30, %v2878_v44  ;;  %5483 = vpow2.f32 %v3227_v60  ;;  %v3149_v15 = vmul.f32 1.442695, %v2992_v13  ;;  %v2540_v20 = vpop.f32.mrf.mxu0 }
 0x49d   : > { %5485 = vpow2.f32 %v3229_v53  ;;  %v2993_v1 = vsub.f32 %v8922_v51, %v7681_v38 }
 0x49e   : > { %v3231_v12 = vmul.f32 1.442695, %v3033_v14  ;;  %v3233_v18 = vmul.f32 1.442695, %v3034_v48  ;;  %5487 = vpow2.f32 %v3143_v10  ;;  %v7738_v14 = vsel %vm2640_vm15, %v2536_v34, -1e+30 }
 0x49f   : > { %v7726_v24 = vpop.xlane.xlu0 %2865  ;;  %v2881_v17 = vpop.xlane.xlu1 %2880  ;;  %5489 = vpow2.f32 %v3145_v49  ;;  %v2994_v10 = vsub.f32 -1e+30, %v7681_v38  ;;  %v3151_v19 = vmul.f32 1.442695, %v2993_v1  ;;  %v8928_v38 = vld [vmem:[#allocation20_spill] sm:$0xff] }
 0x4a0   : > { %8920 = vst [vmem:[#allocation38_spill] sm:$0xff] %v7726_v24  ;;  %v3035_v29 = vsub.f32 %v8921_v26, %v2881_v17  ;;  %v3036_v52 = vsub.f32 -1e+30, %v2881_v17  ;;  %5491 = vpow2.f32 %v3231_v12  ;;  %v8926_v26 = vld [vmem:[#allocation35_spill] sm:$0xff] }
 0x4a1   : > { %v7733_v44 = vpop.eup %5471  ;;  %5493 = vpow2.f32 %v3233_v18  ;;  %v2995_v18 = vsub.f32 %v8928_v38, %v7683_v7 }
 0x4a2   : > { %v3235_v60 = vmul.f32 1.442695, %v3035_v29  ;;  %8923 = vst [vmem:[#allocation15_spill] sm:$0xff] %v7733_v44  ;;  %v3237_v6 = vmul.f32 1.442695, %v3036_v52  ;;  %v7741_v13 = vpop.eup %5473  ;;  %5495 = vpow2.f32 %v3147_v35  ;;  %v8927_v29 = vld [vmem:[#allocation23_spill] sm:$0xff]  ;;  %v2957_v35 = vmax.f32 %v7718_v33, %v7738_v14 }
 0x4a3   : > { %v2884_v48 = vpop.xlane.xlu0 %2883  ;;  %v2887_v49 = vpop.xlane.xlu1 %2886  ;;  %8925 = vst [vmem:[#allocation32_spill] sm:$0xff] %v7741_v13  ;;  %5497 = vpow2.f32 %v3149_v15  ;;  %v3443_v34 = vadd.f32 %v7741_v13, %v7733_v44 }
 0x4a4   : > { %v3037_v17 = vsub.f32 %v8926_v26, %v2884_v48  ;;  %v3038_v12 = vsub.f32 -1e+30, %v2884_v48  ;;  %v3039_v51 = vsub.f32 %v8927_v29, %v2887_v49  ;;  %v3040_v53 = vsub.f32 -1e+30, %v2887_v49  ;;  %v8929_v26 = vld [vmem:[#allocation34_spill] sm:$0xff] }
 0x4a5   : > { %5499 = vpow2.f32 %v3235_v60  ;;  %v7749_v24 = vpop.eup %5475  ;;  %v3153_v48 = vmul.f32 1.442695, %v2994_v10  ;;  %v2996_v15 = vsub.f32 %v8929_v26, %v7683_v7  ;;  %3444 = vadd.xlane.f32.xlu1 %v3443_v34  ;;  %v7760_v60 = vsel %vm2642_vm0, %v2540_v20, -1e+30 }
 0x4a6   : > { %v3239_v52 = vmul.f32 1.442695, %v3037_v17  ;;  %v3241_v8 = vmul.f32 1.442695, %v3038_v12  ;;  %5501 = vpow2.f32 %v3237_v6  ;;  %v7755_v49 = vpop.eup %5477  ;;  %v3243_v17 = vmul.f32 1.442695, %v3039_v51 }
 0x4a7   : > { %v2890_v1 = vpop.xlane.xlu0 %2889  ;;  %8930 = vst [vmem:[#allocation64_spill] sm:$0xff] %v7755_v49  ;;  %v8932_v12 = vld [vmem:[#allocation36_spill] sm:$0xff]  ;;  %v7763_v13 = vpop.eup %5479  ;;  %v3245_v10 = vmul.f32 1.442695, %v3040_v53  ;;  %v3446_v7 = vadd.f32 %v7755_v49, %v7749_v24  ;;  %v3155_v34 = vmul.f32 1.442695, %v2995_v18 }
 0x4a8   : > { %5503 = vpow2.f32 %v3239_v52  ;;  %v3041_v38 = vsub.f32 %v8932_v12, %v2890_v1  ;;  %8933 = vst [vmem:[#allocation35_spill] sm:$0xff] %v7763_v13  ;;  %v3042_v44 = vsub.f32 -1e+30, %v2890_v1  ;;  %v7767_v6 = vpop.eup %5481  ;;  %v3157_v20 = vmul.f32 1.442695, %v2996_v15  ;;  %v8937_v51 = vld [vmem:[#allocation62_spill] sm:$0xff] }
 0x4a9   : > { %5505 = vpow2.f32 %v3241_v8  ;;  %8934 = vst [vmem:[#allocation23_spill] sm:$0xff] %v7767_v6  ;;  %v7769_v26 = vpop.eup %5483  ;;  %3447 = vadd.xlane.f32.xlu0 %v3446_v7  ;;  %2958 = vmax.xlane.f32.xlu1 %v2957_v35  ;;  %v2960_v8 = vmax.f32 %v7729_v43, %v7760_v60  ;;  %v2997_v53 = vsub.f32 %v8937_v51, %v7687_v41 }
 0x4aa   : > { %5507 = vpow2.f32 %v3151_v19  ;;  %8935 = vst [vmem:[#allocation20_spill] sm:$0xff] %v7769_v26  ;;  %v7771_v27 = vpop.eup %5485  ;;  %v3247_v52 = vmul.f32 1.442695, %v3041_v38  ;;  %v8939_v19 = vld [vmem:[#allocation14_spill] sm:$0xff]  ;;  %v8943_v38 = vld [vmem:[#allocation13_spill] sm:$0xff] }
 0x4ab   : > { %5509 = vpow2.f32 %v3153_v48  ;;  %8936 = vst [vmem:[#allocation34_spill] sm:$0xff] %v7771_v27  ;;  %v7777_v1 = vpop.eup %5487  ;;  %v2998_v18 = vsub.f32 %v8939_v19, %v7687_v41  ;;  %v3249_v48 = vmul.f32 1.442695, %v3042_v44  ;;  %v3449_v35 = vadd.f32 %v7771_v27, %v7769_v26 }
 0x4ac   : > { %5511 = vpow2.f32 %v3243_v17  ;;  %8938 = vst [vmem:[#allocation83_spill] sm:$0xff] %v7777_v1  ;;  %v7783_v15 = vpop.eup %5489  ;;  %v3159_v12 = vmul.f32 1.442695, %v2997_v53  ;;  %v2999_v7 = vsub.f32 %v8943_v38, %v7689_v56  ;;  %v3383_v41 = vadd.f32 %v7767_v6, %v7763_v13  ;;  %v8947_v53 = vld [vmem:[#allocation17_spill] sm:$0xff] }
 0x4ad   : > { %5513 = vpow2.f32 %v3245_v10  ;;  %8940 = vst [vmem:[#allocation36_spill] sm:$0xff] %v7783_v15  ;;  %v7785_v29 = vpop.eup %5491  ;;  %3450 = vadd.xlane.f32.xlu1 %v3449_v35  ;;  %2961 = vmax.xlane.f32.xlu0 %v2960_v8  ;;  %v3161_v10 = vmul.f32 1.442695, %v2998_v18  ;;  %v3001_v19 = vsub.f32 %v8947_v53, %v7691_v37  ;;  %v3386_v13 = vadd.f32 %v7783_v15, %v7777_v1  ;;  %v8957_v1 = vld [vmem:[#allocation11_spill] sm:$0xff] }
 0x4ae   : > { %5515 = vpow2.f32 %v3155_v34  ;;  %8941 = vst [vmem:[#allocation62_spill] sm:$0xff] %v7785_v29  ;;  %v7787_v17 = vpop.eup %5493  ;;  %v8945_v34 = vld [vmem:[#allocation29_spill] sm:$0xff]  ;;  %v3006_v15 = vsub.f32 %v8957_v1, %v7695_v11 }
 0x4af   : > { %5517 = vpow2.f32 %v3157_v20  ;;  %8942 = vst [vmem:[#allocation14_spill] sm:$0xff] %v7787_v17  ;;  %v7793_v44 = vpop.eup %5495  ;;  %v3000_v51 = vsub.f32 %v8945_v34, %v7689_v56  ;;  %v3452_v20 = vadd.f32 %v7787_v17, %v7785_v29  ;;  %v3163_v56 = vmul.f32 1.442695, %v2999_v7  ;;  %v8953_v29 = vld [vmem:[#allocation58_spill] sm:$0xff]  ;;  %v8955_v7 = vld [vmem:[#allocation12_spill] sm:$0xff] }
 0x4b0   : > { %5519 = vpow2.f32 %v3247_v52  ;;  %8944 = vst [vmem:[#allocation13_spill] sm:$0xff] %v7793_v44  ;;  %v7799_v8 = vpop.eup %5497  ;;  %v8949_v52 = vld [vmem:[#allocation31_spill] sm:$0xff]  ;;  %v3004_v26 = vsub.f32 %v8953_v29, %v7693_v58 }
 0x4b1   : > { %5521 = vpow2.f32 %v3249_v48  ;;  %8946 = vst [vmem:[#allocation29_spill] sm:$0xff] %v7799_v8  ;;  %v3002_v38 = vsub.f32 %v8949_v52, %v7691_v37  ;;  %3384 = vadd.xlane.f32.xlu1 %v3383_v41  ;;  %3453 = vadd.xlane.f32.xlu0 %v3452_v20  ;;  %v8951_v48 = vld [vmem:[#allocation71_spill] sm:$0xff]  ;;  %v3165_v53 = vmul.f32 1.442695, %v3000_v51  ;;  %v3005_v20 = vsub.f32 %v8955_v7, %v7695_v11  ;;  %v8959_v51 = vld [vmem:[#allocation28_spill] sm:$0xff] }
 0x4b2   : > { %v7803_v35 = vpop.eup %5499  ;;  %5523 = vpow2.f32 %v3159_v12  ;;  %v3003_v34 = vsub.f32 %v8951_v48, %v7693_v58  ;;  %v3167_v12 = vmul.f32 1.442695, %v3001_v19  ;;  %v3007_v19 = vsub.f32 %v8959_v51, %v7697_v23 }
 0x4b3   : > { %8948 = vst [vmem:[#allocation17_spill] sm:$0xff] %v7803_v35  ;;  %v7807_v18 = vpop.eup %5501  ;;  %5525 = vpow2.f32 %v3161_v10  ;;  %v3169_v48 = vmul.f32 1.442695, %v3002_v38  ;;  %v3173_v7 = vmul.f32 1.442695, %v3004_v26  ;;  %v8961_v38 = vld [vmem:[#allocation68_spill] sm:$0xff]  ;;  %v3389_v11 = vadd.f32 %v7799_v8, %v7793_v44 }
 0x4b4   : > { %8950 = vst [vmem:[#allocation31_spill] sm:$0xff] %v7807_v18  ;;  %v3455_v37 = vadd.f32 %v7807_v18, %v7803_v35  ;;  %5527 = vpow2.f32 %v3163_v56  ;;  %v3171_v10 = vmul.f32 1.442695, %v3003_v34  ;;  %v3008_v18 = vsub.f32 %v8961_v38, %v7697_v23  ;;  %v8963_v56 = vld [vmem:[#allocation55_spill] sm:$0xff] }
 0x4b5   : > { %v7813_v6 = vpop.eup %5503  ;;  %3387 = vadd.xlane.f32.xlu0 %v3386_v13  ;;  %5529 = vpow2.f32 %v3165_v53  ;;  %v3175_v1 = vmul.f32 1.442695, %v3005_v20  ;;  %v3009_v34 = vsub.f32 %v8963_v56, %v7699_v16  ;;  %v3177_v51 = vmul.f32 1.442695, %v3006_v15  ;;  %v8966_v53 = vld [vmem:[#allocation70_spill] sm:$0xff] }
 0x4b6   : > { %8952 = vst [vmem:[#allocation71_spill] sm:$0xff] %v7813_v6  ;;  %v7819_v41 = vpop.eup %5505  ;;  %3456 = vadd.xlane.f32.xlu1 %v3455_v37  ;;  %5531 = vpow2.f32 %v3167_v12  ;;  %v3179_v23 = vmul.f32 1.442695, %v3007_v19  ;;  %v3010_v38 = vsub.f32 %v8966_v53, %v7699_v16  ;;  %v3181_v12 = vmul.f32 1.442695, %v3008_v18  ;;  %v8970_v16 = vld [vmem:[#allocation8_spill] sm:$0xff] }
 0x4b7   : > { %8954 = vst [vmem:[#allocation58_spill] sm:$0xff] %v7819_v41  ;;  %v7823_v52 = vpop.eup %5507  ;;  %v3458_v58 = vadd.f32 %v7819_v41, %v7813_v6  ;;  %5533 = vpow2.f32 %v3169_v48  ;;  %v8987_v41 = vld [vmem:[#allocation54_spill] sm:$0xff] }
 0x4b8   : > { %8956 = vst [vmem:[#allocation12_spill] sm:$0xff] %v7823_v52  ;;  %v7829_v29 = vpop.eup %5509  ;;  %5535 = vpow2.f32 %v3171_v10  ;;  %v8969_v10 = vld [vmem:[#allocation10_spill] sm:$0xff]  ;;  %v3185_v18 = vmul.f32 1.442695, %v3010_v38 }
 0x4b9   : > { %8958 = vst [vmem:[#allocation11_spill] sm:$0xff] %v7829_v29  ;;  %v7833_v35 = vpop.eup %5511  ;;  %3459 = vadd.xlane.f32.xlu0 %v3458_v58  ;;  %5537 = vpow2.f32 %v3173_v7  ;;  %v3392_v48 = vadd.f32 %v7829_v29, %v7823_v52  ;;  %v3183_v58 = vmul.f32 1.442695, %v3009_v34  ;;  %v3011_v19 = vsub.f32 %v8969_v10, %v7701_v36  ;;  %v8971_v7 = vld [vmem:[#allocation65_spill] sm:$0xff]  ;;  %v8984_v52 = vld [vmem:[#allocation63_spill] sm:$0xff] }
 0x4ba   : > { %8960 = vst [vmem:[#allocation28_spill] sm:$0xff] %v7833_v35  ;;  %v7839_v13 = vpop.eup %5513  ;;  %3390 = vadd.xlane.f32.xlu1 %v3389_v11  ;;  %5539 = vpow2.f32 %v3175_v1  ;;  %v3012_v11 = vsub.f32 %v8970_v16, %v7701_v36  ;;  %v3013_v56 = vsub.f32 %v8971_v7, %v7703_v32 }
 0x4bb   : > { %8962 = vst [vmem:[#allocation68_spill] sm:$0xff] %v7839_v13  ;;  %v7843_v37 = vpop.eup %5515  ;;  %v3461_v20 = vadd.f32 %v7839_v13, %v7833_v35  ;;  %5541 = vpow2.f32 %v3177_v51  ;;  %v3187_v36 = vmul.f32 1.442695, %v3011_v19 }
 0x4bc   : > { %8964 = vst [vmem:[#allocation55_spill] sm:$0xff] %v7843_v37  ;;  %v7845_v26 = vpop.eup %5517  ;;  %5543 = vpow2.f32 %v3179_v23  ;;  %v8974_v23 = vld [vmem:[#allocation52_spill] sm:$0xff] }
 0x4bd   : > { %8965 = vst [vmem:[#allocation99_spill] sm:$0xff] %v7845_v26  ;;  %v7849_v44 = vpop.eup %5519  ;;  %3393 = vadd.xlane.f32.xlu0 %v3392_v48  ;;  %5545 = vpow2.f32 %v3181_v12  ;;  %v3395_v1 = vadd.f32 %v7845_v26, %v7843_v37  ;;  %v3014_v38 = vsub.f32 %v8974_v23, %v7703_v32  ;;  %v3191_v48 = vmul.f32 1.442695, %v3013_v56 }
 0x4be   : > { %8967 = vst [vmem:[#allocation70_spill] sm:$0xff] %v7849_v44  ;;  %v7855_v15 = vpop.eup %5521  ;;  %3462 = vadd.xlane.f32.xlu1 %v3461_v20  ;;  %5547 = vpow2.f32 %v3183_v58  ;;  %v3189_v20 = vmul.f32 1.442695, %v3012_v11 }
 0x4bf   : > { %8968 = vst [vmem:[#allocation100_spill] sm:$0xff] %v7855_v15  ;;  %v7863_v35 = vpop.eup %5523  ;;  %v3464_v34 = vadd.f32 %v7855_v15, %v7849_v44  ;;  %v3193_v11 = vmul.f32 1.442695, %v3014_v38 }
 0x4c0   : > { %v3349_v53 = vpop.xlane.xlu1 %3348  ;;  %8972 = vst [vmem:[#allocation10_spill] sm:$0xff] %v7863_v35  ;;  %v7869_v51 = vpop.eup %5525 }
 0x4c1   : > { %8973 = vst [vmem:[#allocation8_spill] sm:$0xff] %v7869_v51  ;;  %5549 = vrcp.f32 %v3349_v53  ;;  %3465 = vadd.xlane.f32.xlu0 %v3464_v34  ;;  %v7873_v16 = vpop.eup %5527  ;;  %v3398_v58 = vadd.f32 %v7869_v51, %v7863_v35 }
 0x4c2   : > { %3396 = vadd.xlane.f32.xlu1 %v3395_v1  ;;  %5551 = vpow2.f32 %v3185_v18  ;;  %8975 = vst [vmem:[#allocation65_spill] sm:$0xff] %v7873_v16  ;;  %v7878_v19 = vpop.eup %5529  ;;  %v8977_v1 = vld [vmem:[#allocation67_spill] sm:$0xff] }
 0x4c3   : > { %8976 = vst [vmem:[#allocation52_spill] sm:$0xff] %v7878_v19  ;;  %v7880_v32 = vpop.eup %5531 }
 0x4c4   : > { %v3352_v12 = vpop.xlane.xlu0 %3351  ;;  %v2893_v10 = vpop.xlane.xlu1 %2892 }
 0x4c5   : > { %5553 = vrcp.f32 %v3352_v12  ;;  %v3043_v7 = vsub.f32 %v7144_v50, %v2893_v10  ;;  %v3044_v37 = vsub.f32 -1e+30, %v2893_v10  ;;  %3399 = vadd.xlane.f32.xlu0 %v3398_v58  ;;  %v7882_v53 = vpop.eup %5533  ;;  %v3015_v50 = vsub.f32 %v8977_v1, %v7705_v22 }
 0x4c6   : > { %5555 = vpow2.f32 %v3187_v36  ;;  %v7886_v12 = vpop.eup %5535 }
 0x4c7   : > { %5557 = vpow2.f32 %v3189_v20  ;;  %v3251_v18 = vmul.f32 1.442695, %v3043_v7  ;;  %v3253_v56 = vmul.f32 1.442695, %v3044_v37  ;;  %8978 = vst [vmem:[#allocation67_spill] sm:$0xff] %v7886_v12  ;;  %v7889_v35 = vpop.eup %5537 }
 0x4c8   : > { %5559 = vpow2.f32 %v3191_v48  ;;  %v3355_v34 = vpop.xlane.xlu1 %3354  ;;  %v2896_v23 = vpop.xlane.xlu0 %2895  ;;  %8979 = vst [vmem:[#allocation101_spill] sm:$0xff] %v7889_v35  ;;  %v3195_v7 = vmul.f32 1.442695, %v3015_v50  ;;  %v8980_v50 = vld [vmem:[#allocation84_spill] sm:$0xff] }
 0x4c9   : > { %5561 = vpow2.f32 %v3251_v18  ;;  %v3045_v36 = vsub.f32 %v7160_v5, %v2896_v23  ;;  %v3046_v10 = vsub.f32 -1e+30, %v2896_v23  ;;  %v7891_v20 = vpop.eup %5539 }
 0x4ca   : > { %5563 = vpow2.f32 %v3253_v56  ;;  %v7893_v48 = vpop.eup %5541 }
 0x4cb   : > { %5565 = vpow2.f32 %v3193_v11  ;;  %v3255_v37 = vmul.f32 1.442695, %v3045_v36  ;;  %v3257_v38 = vmul.f32 1.442695, %v3046_v10  ;;  %v7895_v51 = vpop.eup %5543 }
 0x4cc   : > { %5567 = vrcp.f32 %v3355_v34  ;;  %v3358_v58 = vpop.xlane.xlu0 %3357  ;;  %v2899_v1 = vpop.xlane.xlu1 %2898  ;;  %v3016_v34 = vsub.f32 %v8980_v50, %v7705_v22 }
 0x4cd   : > { %5569 = vpow2.f32 %v3255_v37  ;;  %v3047_v5 = vsub.f32 %v7179_v45, %v2899_v1  ;;  %v3048_v18 = vsub.f32 -1e+30, %v2899_v1  ;;  %v7898_v23 = vpop.eup %5545 }
 0x4ce   : > { %5571 = vpow2.f32 %v3257_v38  ;;  %v7900_v56 = vpop.eup %5547  ;;  %v8981_v38 = vld [vmem:[#allocation59_spill] sm:$0xff]  ;;  %v3197_v8 = vmul.f32 1.442695, %v3016_v34 }
 0x4cf   : > { %5573 = vrcp.f32 %v3358_v58  ;;  %v3259_v11 = vmul.f32 1.442695, %v3047_v5  ;;  %v3261_v36 = vmul.f32 1.442695, %v3048_v18  ;;  %v5550_v10 = vpop.eup %5549  ;;  %v3017_v13 = vsub.f32 %v8981_v38, %v7707_v59  ;;  %v8983_v5 = vld [vmem:[#allocation78_spill] sm:$0xff] }
 0x4d0   : > { %5575 = vpow2.f32 %v3195_v7  ;;  %v3361_v26 = vpop.xlane.xlu1 %3360  ;;  %v2902_v44 = vpop.xlane.xlu0 %2901  ;;  %v3603_v18 = vmul.f32 %v5550_v10, %v8983_v5 }
 0x4d1   : > { %v7904_v15 = vpop.eup %5551  ;;  %5577 = vpow2.f32 %v3259_v11  ;;  %v3049_v45 = vsub.f32 %v7192_v0, %v2902_v44  ;;  %v3050_v37 = vsub.f32 -1e+30, %v2902_v44  ;;  %v8986_v44 = vld [vmem:[#allocation69_spill] sm:$0xff]  ;;  %v3199_v49 = vmul.f32 1.442695, %v3017_v13 }
 0x4d2   : > { %v5554_v1 = vpop.eup %5553  ;;  %5579 = vpow2.f32 %v3261_v36  ;;  %v3604_v6 = vmul.f32 %v5550_v10, %v8986_v44  ;;  %v8993_v13 = vld [vmem:[#allocation5_spill] sm:$0xff] }
 0x4d3   : > { %v7909_v58 = vpop.eup %5555  ;;  %v3605_v22 = vmul.f32 %v5554_v1, %v8984_v52  ;;  %v3263_v7 = vmul.f32 1.442695, %v3049_v45  ;;  %v3265_v50 = vmul.f32 1.442695, %v3050_v37  ;;  %5581 = vrcp.f32 %v3361_v26  ;;  %v8990_v45 = vld [vmem:[#allocation7_spill] sm:$0xff] }
 0x4d4   : > { %8982 = vst [vmem:[#allocation84_spill] sm:$0xff] %v7909_v58  ;;  %v7913_v29 = vpop.eup %5557  ;;  %v3364_v11 = vpop.xlane.xlu0 %3363  ;;  %v3606_v17 = vmul.f32 %v5554_v1, %v8987_v41  ;;  %v3018_v37 = vsub.f32 %v8990_v45, %v7707_v59  ;;  %v8996_v45 = vld [vmem:[#allocation61_spill] sm:$0xff] }
 0x4d5   : > { %8985 = vst [vmem:[#allocation59_spill] sm:$0xff] %v7913_v29  ;;  %v2905_v0 = vpop.xlane.xlu1 %2904  ;;  %v7917_v38 = vpop.eup %5559  ;;  %v3731_v36 = vpack.c.bf16 %v3605_v22, %v3603_v18  ;;  %5583 = vpow2.f32 %v3263_v7 }
 0x4d6   : > { %8988 = vst [vmem:[#allocation78_spill] sm:$0xff] %v7917_v38  ;;  %v3051_v5 = vsub.f32 %v7211_v9, %v2905_v0  ;;  %v3052_v27 = vsub.f32 -1e+30, %v2905_v0  ;;  %v7920_v52 = vpop.eup %5561  ;;  %5585 = vpow2.f32 %v3265_v50  ;;  %v3732_v26 = vpack.c.bf16 %v3606_v17, %v3604_v6  ;;  %v8994_v50 = vld [vmem:[#allocation25_spill] sm:$0xff] }
 0x4d7   : > { %8989 = vst [vmem:[#allocation63_spill] sm:$0xff] %v7920_v52  ;;  %v7924_v34 = vpop.eup %5563  ;;  %5587 = vrcp.f32 %v3364_v11  ;;  %v3201_v0 = vmul.f32 1.442695, %v3018_v37 }
 0x4d8   : > { %v3267_v10 = vmul.f32 1.442695, %v3051_v5  ;;  %v3269_v41 = vmul.f32 1.442695, %v3052_v27  ;;  %v7926_v1 = vpop.eup %5565  ;;  %5589 = vpow2.f32 %v3197_v8  ;;  %3827 = vmatprep.mubr.bf16.mxu1 %v3732_v26  ;;  %v2908_v9 = vpop.xlane.xlu0 %2907  ;;  %v3467_v22 = vadd.f32 %v7924_v34, %v7920_v52 }
 0x4d9   : > { %8991 = vst [vmem:[#allocation69_spill] sm:$0xff] %v7926_v1  ;;  %v3367_v18 = vpop.xlane.xlu1 %3366  ;;  %v5568_v7 = vpop.eup %5567  ;;  %3828 = vmatmul.mubr.bf16.vlgmr.msra.gmra.mxu1 %v3731_v36  ;;  %v3053_v59 = vsub.f32 %v7230_v42, %v2908_v9  ;;  %v3054_v6 = vsub.f32 -1e+30, %v2908_v9  ;;  %v3019_v27 = vsub.f32 %v8993_v13, %v7710_v39  ;;  %v3401_v8 = vadd.f32 %v7878_v19, %v7873_v16  ;;  %v8995_v42 = vld [vmem:[#allocation42_spill] sm:$0xff] }
 0x4da   : > { %5591 = vpow2.f32 %v3267_v10  ;;  %v7931_v17 = vpop.eup %5569  ;;  %5153 = vmatpush3.bf16.msra.mxu1 %v8994_v50  ;;  %3468 = vadd.xlane.f32.xlu1 %v3467_v22  ;;  %v3020_v26 = vsub.f32 %v8996_v45, %v7710_v39  ;;  %v8997_v22 = vld [vmem:[#allocation56_spill] sm:$0xff]  ;;  %v9000_v39 = vld [vmem:[#allocation33_spill] sm:$0xff]  ;;  %v9002_v19 = vld [vmem:[#allocation66_spill] sm:$0xff] }
 0x4db   : > { %8992 = vst [vmem:[#allocation54_spill] sm:$0xff] %v7931_v17  ;;  %5593 = vpow2.f32 %v3269_v41  ;;  %v7938_v11 = vpop.eup %5571  ;;  %v3271_v44 = vmul.f32 1.442695, %v3053_v59  ;;  %v3273_v36 = vmul.f32 1.442695, %v3054_v6  ;;  %5146 = vmatprep.subr.bf16.mxu1 %v8995_v42  ;;  %v3608_v13 = vmul.f32 %v5568_v7, %v8997_v22  ;;  %v8999_v59 = vld [vmem:[#allocation77_spill] sm:$0xff] }
 0x4dc   : > { %5595 = vpow2.f32 %v3199_v49  ;;  %v5574_v5 = vpop.eup %5573  ;;  %v3370_v10 = vpop.xlane.xlu0 %3369  ;;  %v3470_v9 = vadd.f32 %v7938_v11, %v7931_v17  ;;  %v3203_v16 = vmul.f32 1.442695, %v3019_v27 }
 0x4dd   : > { %5597 = vrcp.f32 %v3367_v18  ;;  %v2911_v41 = vpop.xlane.xlu1 %2910  ;;  %v7946_v50 = vpop.eup %5575  ;;  %v3610_v6 = vmul.f32 %v5574_v5, %v8999_v59  ;;  %v9001_v18 = vld [vmem:[#allocation43_spill] sm:$0xff]  ;;  %v3609_v17 = vmul.f32 %v5574_v5, %v9002_v19  ;;  %v3404_v5 = vadd.f32 %v7882_v53, %v7880_v32 }
 0x4de   : > { %8998 = vst [vmem:[#allocation7_spill] sm:$0xff] %v7946_v50  ;;  %5599 = vpow2.f32 %v3271_v44  ;;  %v3055_v49 = vsub.f32 %v7249_v47, %v2911_v41  ;;  %v3056_v37 = vsub.f32 -1e+30, %v2911_v41  ;;  %v7950_v42 = vpop.eup %5577  ;;  %5154 = vmatpush3.bf16.msra.mxu1 %v9000_v39  ;;  %3402 = vadd.xlane.f32.xlu1 %v3401_v8  ;;  %v3607_v45 = vmul.f32 %v5568_v7, %v9001_v18  ;;  %v9003_v47 = vld [vmem:[#allocation44_spill] sm:$0xff] }
 0x4df   : > { %5601 = vpow2.f32 %v3273_v36  ;;  %v7955_v22 = vpop.eup %5579  ;;  %3471 = vadd.xlane.f32.xlu0 %v3470_v9  ;;  %5147 = vmatprep.subr.bf16.mxu1 %v9003_v47  ;;  %v3734_v41 = vpack.c.bf16 %v3610_v6, %v3608_v13  ;;  %v9004_v9 = vld [vmem:[#allocation48_spill] sm:$0xff]  ;;  %v9005_v6 = vld [vmem:[#allocation19_spill] sm:$0xff] }
 0x4e0   : > { %5603 = vrcp.f32 %v3370_v10  ;;  %v3275_v44 = vmul.f32 1.442695, %v3055_v49  ;;  %v3277_v52 = vmul.f32 1.442695, %v3056_v37  ;;  %v3733_v59 = vpack.c.bf16 %v3609_v17, %v3607_v45  ;;  %v2914_v36 = vpop.xlane.xlu0 %2913  ;;  %v5582_v39 = vpop.eup %5581  ;;  %v9006_v45 = vld [vmem:[#allocation81_spill] sm:$0xff] }
 0x4e1   : > { %5605 = vpow2.f32 %v3201_v0  ;;  %v3373_v27 = vpop.xlane.xlu1 %3372  ;;  %v3473_v8 = vadd.f32 %v7955_v22, %v7950_v42  ;;  %3835 = vmatprep.mubr.bf16.mxu1 %v3734_v41  ;;  %v3057_v19 = vsub.f32 %v7268_v57, %v2914_v36  ;;  %v3058_v7 = vsub.f32 -1e+30, %v2914_v36  ;;  %v9008_v36 = vld [vmem:[#allocation51_spill] sm:$0xff] }
 0x4e2   : > { %5607 = vpow2.f32 %v3275_v44  ;;  %v7963_v10 = vpop.eup %5583  ;;  %v3021_v0 = vsub.f32 %v9004_v9, %v7714_v28  ;;  %3836 = vmatmul.mubr.bf16.gmra.mxu1 %v3733_v59  ;;  %v3407_v17 = vadd.f32 %v7889_v35, %v7886_v12  ;;  %v3205_v49 = vmul.f32 1.442695, %v3020_v26  ;;  %v9011_v9 = vld [vmem:[#allocation24_spill] sm:$0xff]  ;;  %v9013_v35 = vld [vmem:[#allocation22_spill] sm:$0xff] }
 0x4e3   : > { %5609 = vpow2.f32 %v3277_v52  ;;  %3474 = vadd.xlane.f32.xlu1 %v3473_v8  ;;  %v7969_v13 = vpop.eup %5585  ;;  %v3279_v57 = vmul.f32 1.442695, %v3057_v19  ;;  %v3281_v37 = vmul.f32 1.442695, %v3058_v7  ;;  %5155 = vmatpush3.bf16.msra.mxu1 %v9005_v6  ;;  %v3022_v44 = vsub.f32 %v9006_v45, %v7714_v28  ;;  %v9007_v52 = vld [vmem:[#allocation9_spill] sm:$0xff]  ;;  %v9010_v7 = vld [vmem:[#allocation74_spill] sm:$0xff] }
 0x4e4   : > { %5611 = vpow2.f32 %v3203_v16  ;;  %3405 = vadd.xlane.f32.xlu0 %v3404_v5  ;;  %v5588_v18 = vpop.eup %5587  ;;  %5148 = vmatprep.subr.bf16.mxu1 %v9007_v52  ;;  %v3376_v47 = vpop.xlane.xlu0 %3375  ;;  %v3476_v59 = vadd.f32 %v7969_v13, %v7963_v10  ;;  %v3612_v16 = vmul.f32 %v5582_v39, %v9008_v36  ;;  %v3611_v6 = vmul.f32 %v5582_v39, %v9011_v9  ;;  %v9012_v45 = vld [vmem:[#allocation53_spill] sm:$0xff] }
 0x4e5   : > { %5613 = vrcp.f32 %v3373_v27  ;;  %v2917_v41 = vpop.xlane.xlu1 %2916  ;;  %v7978_v26 = vpop.eup %5589  ;;  %v3614_v5 = vmul.f32 %v5588_v18, %v9010_v7  ;;  %v3207_v27 = vmul.f32 1.442695, %v3021_v0  ;;  %v3613_v52 = vmul.f32 %v5588_v18, %v9012_v45 }
 0x4e6   : > { %9009 = vst [vmem:[#allocation5_spill] sm:$0xff] %v7978_v26  ;;  %5615 = vpow2.f32 %v3279_v57  ;;  %v3059_v8 = vsub.f32 %v7383_v4, %v2917_v41  ;;  %v3060_v19 = vsub.f32 %v7552_v40, %v2917_v41  ;;  %v9014_v41 = vld [vmem:[#allocation39_spill] sm:$0xff] }
 0x4e7   : > { %v7983_v28 = vpop.eup %5591  ;;  %5617 = vpow2.f32 %v3281_v37  ;;  %3408 = vadd.xlane.f32.xlu1 %v3407_v17  ;;  %5156 = vmatpush3.bf16.msra.mxu1 %v9013_v35  ;;  %v3736_v4 = vpack.c.bf16 %v3614_v5, %v3612_v16  ;;  %v3735_v0 = vpack.c.bf16 %v3613_v52, %v3611_v6  ;;  %v9015_v5 = vld [vmem:[#allocation30_spill] sm:$0xff]  ;;  %v9016_v6 = vld [vmem:[#allocation72_spill] sm:$0xff]  ;;  %v9017_v52 = vld [vmem:[#allocation41_spill] sm:$0xff] }
 0x4e8   : > { %v7987_v12 = vpop.eup %5593  ;;  %5619 = vrcp.f32 %v3376_v47  ;;  %v3283_v36 = vmul.f32 1.442695, %v3059_v8  ;;  %v3285_v57 = vmul.f32 1.442695, %v3060_v19  ;;  %3477 = vadd.xlane.f32.xlu0 %v3476_v59  ;;  %5149 = vmatprep.subr.bf16.mxu1 %v9014_v41  ;;  %v2920_v37 = vpop.xlane.xlu0 %2919  ;;  %v3410_v59 = vadd.f32 %v7893_v48, %v7891_v20 }
 0x4e9   : > { %v7990_v40 = vpop.eup %5595  ;;  %5621 = vpow2.f32 %v3205_v49  ;;  %v3379_v17 = vpop.xlane.xlu1 %3378  ;;  %v3479_v39 = vadd.f32 %v7987_v12, %v7983_v28  ;;  %3843 = vmatprep.mubr.bf16.mxu1 %v3736_v4  ;;  %v3061_v47 = vsub.f32 %v7417_v3, %v2920_v37  ;;  %v3062_v35 = vsub.f32 %v7568_v63, %v2920_v37 }
 0x4ea   : > { %v5598_v18 = vpop.eup %5597  ;;  %5623 = vpow2.f32 %v3283_v36  ;;  %3844 = vmatmul.mubr.bf16.gmra.mxu1 %v3735_v0  ;;  %v3413_v49 = vadd.f32 %v7898_v23, %v7895_v51  ;;  %v3416_v8 = vadd.f32 %v7904_v15, %v7900_v56  ;;  %v3209_v3 = vmul.f32 1.442695, %v3022_v44 }
 0x4eb   : > { %v7999_v16 = vpop.eup %5599  ;;  %5625 = vpow2.f32 %v3285_v57  ;;  %3480 = vadd.xlane.f32.xlu1 %v3479_v39  ;;  %v3287_v7 = vmul.f32 1.442695, %v3061_v47  ;;  %v3289_v63 = vmul.f32 1.442695, %v3062_v35  ;;  %5157 = vmatpush3.bf16.msra.mxu1 %v9015_v5  ;;  %v3023_v45 = vsub.f32 %v9016_v6, %v7720_v2  ;;  %v9019_v35 = vld [vmem:[#allocation82_spill] sm:$0xff]  ;;  %v9020_v6 = vld [vmem:[#allocation16_spill] sm:$0xff] }
 0x4ec   : > { %v8005_v19 = vpop.eup %5601  ;;  %5627 = vpow2.f32 %v3207_v27  ;;  %3411 = vadd.xlane.f32.xlu0 %v3410_v59  ;;  %5150 = vmatprep.subr.bf16.mxu1 %v9017_v52  ;;  %v3382_v36 = vpop.xlane.xlu0 %3381  ;;  %v3616_v27 = vmul.f32 %v5598_v18, %v7526_v61  ;;  %v3615_v59 = vmul.f32 %v5598_v18, %v9019_v35 }
 0x4ed   : > { %v5604_v9 = vpop.eup %5603  ;;  %5629 = vrcp.f32 %v3379_v17  ;;  %v2923_v57 = vpop.xlane.xlu1 %2922  ;;  %v3482_v4 = vadd.f32 %v8005_v19, %v7999_v16  ;;  %v9018_v17 = vld [vmem:[#allocation21_spill] sm:$0xff]  ;;  %v3211_v52 = vmul.f32 1.442695, %v3023_v45  ;;  %v3419_v45 = vadd.f32 %v7913_v29, %v7909_v58 }
 0x4ee   : > { %v8014_v44 = vpop.eup %5605  ;;  %5631 = vpow2.f32 %v3287_v7  ;;  %v3063_v41 = vsub.f32 %v7441_v21, %v2923_v57  ;;  %v3064_v0 = vsub.f32 %v7582_v25, %v2923_v57  ;;  %v3618_v37 = vmul.f32 %v5604_v9, %v7536_v31 }
 0x4ef   : > { %v8019_v39 = vpop.eup %5607  ;;  %v3024_v47 = vsub.f32 %v9018_v17, %v7720_v2  ;;  %5633 = vpow2.f32 %v3289_v63  ;;  %3414 = vadd.xlane.f32.xlu1 %v3413_v49  ;;  %v3617_v61 = vmul.f32 %v5604_v9, %v7534_v54  ;;  %5158 = vmatpush3.bf16.msra.mxu1 %v9020_v6  ;;  %v9021_v2 = vld [vmem:[#allocation6_spill] sm:$0xff]  ;;  %v9024_v17 = vld [vmem:[#allocation57_spill] sm:$0xff]  ;;  %v9027_v6 = vld [vmem:[#allocation79_spill] sm:$0xff] }
 0x4f0   : > { %v8025_v5 = vpop.eup %5609  ;;  %5635 = vrcp.f32 %v3382_v36  ;;  %v3291_v7 = vmul.f32 1.442695, %v3063_v41  ;;  %v3293_v21 = vmul.f32 1.442695, %v3064_v0  ;;  %3483 = vadd.xlane.f32.xlu0 %v3482_v4  ;;  %v3738_v31 = vpack.c.bf16 %v3618_v37, %v3616_v27  ;;  %5151 = vmatprep.subr.bf16.mxu1 %v9021_v2  ;;  %v2926_v63 = vpop.xlane.xlu0 %2925  ;;  %v9023_v37 = vld [vmem:[#allocation38_spill] sm:$0xff] }
 0x4f1   : > { %v8028_v25 = vpop.eup %5611  ;;  %5637 = vpow2.f32 %v3209_v3  ;;  %v3737_v49 = vpack.c.bf16 %v3617_v61, %v3615_v59  ;;  %v2929_v18 = vpop.xlane.xlu1 %2928  ;;  %v3485_v54 = vadd.f32 %v8025_v5, %v8019_v39  ;;  %v3065_v36 = vsub.f32 %v7448_v62, %v2926_v63  ;;  %v9025_v59 = vld [vmem:[#allocation18_spill] sm:$0xff]  ;;  %v9026_v61 = vld [vmem:[#allocation37_spill] sm:$0xff] }
 0x4f2   : > { %v5614_v9 = vpop.eup %5613  ;;  %5639 = vpow2.f32 %v3291_v7  ;;  %3851 = vmatprep.mubr.bf16.mxu1 %v3738_v31  ;;  %v3066_v57 = vsub.f32 %v7598_v46, %v2926_v63  ;;  %v3067_v4 = vsub.f32 %v7453_v30, %v2929_v18  ;;  %v3068_v3 = vsub.f32 %v7604_v55, %v2929_v18  ;;  %v9029_v18 = vld [vmem:[#allocation60_spill] sm:$0xff] }
 0x4f3   : > { %v8036_v27 = vpop.eup %5615  ;;  %5641 = vpow2.f32 %v3293_v21  ;;  %3852 = vmatmul.mubr.bf16.gmra.mxu1 %v3737_v49  ;;  %3486 = vadd.xlane.f32.xlu1 %v3485_v54  ;;  %v3213_v0 = vmul.f32 1.442695, %v3024_v47  ;;  %v3025_v62 = vsub.f32 %v9024_v17, %v9023_v37  ;;  %v3295_v35 = vmul.f32 1.442695, %v3065_v36  ;;  %v9028_v47 = vld [vmem:[#allocation27_spill] sm:$0xff] }
 0x4f4   : > { %9022 = vst [vmem:[#allocation25_spill] sm:$0xff] %v8036_v27  ;;  %v8041_v41 = vpop.eup %5617  ;;  %v3297_v46 = vmul.f32 1.442695, %v3066_v57  ;;  %5159 = vmatpush3.bf16.msra.mxu1 %v9025_v59  ;;  %3417 = vadd.xlane.f32.xlu0 %v3416_v8  ;;  %5643 = vpow2.f32 %v3211_v52  ;;  %v2932_v55 = vpop.xlane.xlu0 %2931  ;;  %v3620_v31 = vmul.f32 %v5614_v9, %v9027_v6  ;;  %v3619_v2 = vmul.f32 %v5614_v9, %v9028_v47  ;;  %v9030_v8 = vld [vmem:[#allocation88_spill] sm:$0xff]  ;;  %v9032_v17 = vld [vmem:[#allocation47_spill] sm:$0xff]  ;;  %v9035_v9 = vld [vmem:[#allocation45_spill] sm:$0xff] }
 0x4f5   : > { %v5620_v30 = vpop.eup %5619  ;;  %5152 = vmatprep.subr.bf16.mxu1 %v9026_v61  ;;  %v2935_v7 = vpop.xlane.xlu1 %2934  ;;  %v3488_v21 = vadd.f32 %v8041_v41, %v8036_v27  ;;  %5645 = vpow2.f32 %v3295_v35  ;;  %v3299_v63 = vmul.f32 1.442695, %v3067_v4  ;;  %v3069_v54 = vsub.f32 %v9029_v18, %v2932_v55  ;;  %v9033_v61 = vld [vmem:[#allocation73_spill] sm:$0xff]  ;;  %v9036_v47 = vld [vmem:[#allocation26_spill] sm:$0xff] }
 0x4f6   : > { %v8051_v49 = vpop.eup %5621  ;;  %v3070_v36 = vsub.f32 %v9030_v8, %v2932_v55  ;;  %5647 = vpow2.f32 %v3297_v46  ;;  %v3301_v57 = vmul.f32 1.442695, %v3068_v3  ;;  %v3622_v59 = vmul.f32 %v5620_v30, %v9032_v17  ;;  %v9037_v46 = vld [vmem:[#allocation80_spill] sm:$0xff] }
 0x4f7   : > { %v8055_v52 = vpop.eup %5623  ;;  %3420 = vadd.xlane.f32.xlu1 %v3419_v45  ;;  %v3621_v58 = vmul.f32 %v5620_v30, %v9033_v61  ;;  %5649 = vpow2.f32 %v3213_v0  ;;  %v3026_v35 = vsub.f32 %v9035_v9, %v9023_v37  ;;  %v3215_v4 = vmul.f32 1.442695, %v3025_v62  ;;  %v9038_v0 = vld [vmem:[#allocation89_spill] sm:$0xff] }
 0x4f8   : > { %9031 = vst [vmem:[#allocation42_spill] sm:$0xff] %v8055_v52  ;;  %v8059_v6 = vpop.eup %5625  ;;  %5160 = vmatpush3.bf16.msra.mxu1 %v9036_v47  ;;  %3489 = vadd.xlane.f32.xlu0 %v3488_v21  ;;  %v3303_v18 = vmul.f32 1.442695, %v3069_v54  ;;  %v3071_v3 = vsub.f32 %v9037_v46, %v2935_v7  ;;  %v3740_v45 = vpack.c.bf16 %v3622_v59, %v3620_v31  ;;  %v2938_v17 = vpop.xlane.xlu0 %2937  ;;  %5651 = vpow2.f32 %v3299_v63  ;;  %v9041_v31 = vld [vmem:[#allocation75_spill] sm:$0xff] }
 0x4f9   : > { %9034 = vst [vmem:[#allocation61_spill] sm:$0xff] %v8059_v6  ;;  %v8064_v55 = vpop.eup %5627  ;;  %v3739_v8 = vpack.c.bf16 %v3621_v58, %v3619_v2  ;;  %v2941_v29 = vpop.xlane.xlu1 %2940  ;;  %v3305_v61 = vmul.f32 1.442695, %v3070_v36  ;;  %v3072_v27 = vsub.f32 %v9038_v0, %v2935_v7  ;;  %v3422_v37 = vadd.f32 %v7926_v1, %v7917_v38  ;;  %v9042_v59 = vld [vmem:[#allocation91_spill] sm:$0xff]  ;;  %v9044_v0 = vld [vmem:[#allocation92_spill] sm:$0xff] }
 0x4fa   : > { %v5630_v30 = vpop.eup %5629  ;;  %5653 = vpow2.f32 %v3301_v57  ;;  %3859 = vmatprep.mubr.bf16.mxu1 %v3740_v45  ;;  %v3491_v21 = vadd.f32 %v8059_v6, %v8055_v52  ;;  %v3217_v58 = vmul.f32 1.442695, %v3026_v35  ;;  %v3073_v2 = vsub.f32 %v9041_v31, %v2938_v17  ;;  %v9043_v45 = vld [vmem:[#allocation40_spill] sm:$0xff] }
 0x4fb   : > { %v8070_v62 = vpop.eup %5631  ;;  %5655 = vpow2.f32 %v3215_v4  ;;  %3860 = vmatmul.mubr.bf16.gmra.mxu1 %v3739_v8  ;;  %v3425_v7 = vadd.f32 %v7978_v26, %v7946_v50  ;;  %v3307_v36 = vmul.f32 1.442695, %v3071_v3  ;;  %v3074_v57 = vsub.f32 %v9042_v59, %v2938_v17  ;;  %v9046_v17 = vld [vmem:[#allocation87_spill] sm:$0xff]  ;;  %v9047_v59 = vld [vmem:[#allocation46_spill] sm:$0xff] }
 0x4fc   : > { %9039 = vst [vmem:[#allocation56_spill] sm:$0xff] %v8070_v62  ;;  %v8074_v54 = vpop.eup %5633  ;;  %3423 = vadd.xlane.f32.xlu0 %v3422_v37  ;;  %5657 = vpow2.f32 %v3303_v18  ;;  %3492 = vadd.xlane.f32.xlu1 %v3491_v21  ;;  %v2944_v9 = vpop.xlane.xlu0 %2943  ;;  %v3309_v46 = vmul.f32 1.442695, %v3072_v27  ;;  %v3075_v8 = vsub.f32 %v9043_v45, %v2941_v29  ;;  %v3076_v37 = vsub.f32 %v9044_v0, %v2941_v29  ;;  %v9045_v18 = vld [vmem:[#allocation49_spill] sm:$0xff]  ;;  %v9048_v26 = vld [vmem:[#allocation86_spill] sm:$0xff] }
 0x4fd   : > { %9040 = vst [vmem:[#allocation77_spill] sm:$0xff] %v8074_v54  ;;  %v5636_v63 = vpop.eup %5635  ;;  %v8080_v47 = vpop.xlane.xlu1 %2946  ;;  %v3494_v4 = vadd.f32 %v8074_v54, %v8070_v62  ;;  %5659 = vpow2.f32 %v3305_v61  ;;  %v3624_v3 = vmul.f32 %v5630_v30, %v9045_v18  ;;  %v3623_v50 = vmul.f32 %v5630_v30, %v9047_v59  ;;  %v9049_v61 = vld [vmem:[#allocation50_spill] sm:$0xff]  ;;  %v9050_v54 = vld [vmem:[#allocation93_spill] sm:$0xff] }
 0x4fe   : > { %v8084_v35 = vpop.eup %5637  ;;  %v3626_v21 = vmul.f32 %v5636_v63, %v9046_v17  ;;  %v3625_v52 = vmul.f32 %v5636_v63, %v9048_v26  ;;  %5661 = vpow2.f32 %v3217_v58  ;;  %v3311_v62 = vmul.f32 1.442695, %v3073_v2  ;;  %v9051_v26 = vld [vmem:[#allocation90_spill] sm:$0xff] }
 0x4ff   : > { %v8088_v31 = vpop.eup %5639  ;;  %v3077_v27 = vsub.f32 %v9049_v61, %v2944_v9  ;;  %v3313_v45 = vmul.f32 1.442695, %v3074_v57  ;;  %v3078_v29 = vsub.f32 %v9050_v54, %v2944_v9  ;;  %5663 = vpow2.f32 %v3307_v36  ;;  %v9052_v54 = vld [vmem:[#allocation97_spill] sm:$0xff]  ;;  %v9053_v9 = vld [vmem:[#allocation76_spill] sm:$0xff] }
 0x500   : > { %v8094_v6 = vpop.eup %5641  ;;  %3495 = vadd.xlane.f32.xlu0 %v3494_v4  ;;  %3426 = vadd.xlane.f32.xlu1 %v3425_v7  ;;  %v3742_v0 = vpack.c.bf16 %v3626_v21, %v3624_v3  ;;  %v3741_v38 = vpack.c.bf16 %v3625_v52, %v3623_v50  ;;  %v2950_v18 = vpop.xlane.xlu0 %2949  ;;  %v3315_v30 = vmul.f32 1.442695, %v3075_v8  ;;  %v3428_v58 = vadd.f32 %v8014_v44, %v7990_v40  ;;  %v9054_v21 = vld [vmem:[#allocation95_spill] sm:$0xff] }
 0x501   : > { %v2953_v1 = vpop.xlane.xlu1 %2952  ;;  %v8098_v17 = vpop.eup %5643  ;;  %5665 = vpow2.f32 %v3309_v46  ;;  %v3317_v57 = vmul.f32 1.442695, %v3076_v37  ;;  %v3497_v50 = vadd.f32 %v8094_v6, %v8088_v31  ;;  %v3319_v36 = vmul.f32 1.442695, %v3077_v27 }
 0x502   : > { %v3083_v63 = vsub.f32 %v9051_v26, %v2953_v1  ;;  %v8103_v2 = vpop.eup %5645  ;;  %3867 = vmatprep.mubr.bf16.mxu1 %v3742_v0  ;;  %v3084_v7 = vsub.f32 %v9052_v54, %v2953_v1  ;;  %5667 = vpow2.f32 %v3311_v62  ;;  %v3079_v4 = vsub.f32 %v9053_v9, %v8080_v47  ;;  %v9055_v62 = vld [vmem:[#allocation98_spill] sm:$0xff]  ;;  %v9058_v9 = vld [vmem:[#allocation96_spill] sm:$0xff] }
 0x503   : > { %v8108_v52 = vpop.eup %5647  ;;  %3868 = vmatmul.mubr.bf16.gmra.mxu1 %v3741_v38  ;;  %5669 = vpow2.f32 %v3313_v45  ;;  %v3321_v46 = vmul.f32 1.442695, %v3078_v29  ;;  %v9056_v38 = vld [vmem:[#allocation94_spill] sm:$0xff]  ;;  %v3431_v45 = vadd.f32 %v8051_v49, %v8028_v25 }
 0x504   : > { %3429 = vadd.xlane.f32.xlu0 %v3428_v58  ;;  %v8112_v8 = vpop.eup %5649  ;;  %3498 = vadd.xlane.f32.xlu1 %v3497_v50  ;;  %v2956_v37 = vpop.xlane.xlu0 %2955  ;;  %v3500_v1 = vadd.f32 %v8108_v52, %v8103_v2  ;;  %5671 = vpow2.f32 %v3315_v30  ;;  %v3331_v3 = vmul.f32 1.442695, %v3083_v63  ;;  %v3080_v0 = vsub.f32 %v9056_v38, %v8080_v47  ;;  %v9057_v63 = vld [vmem:[#allocation85_spill] sm:$0xff] }
 0x505   : > { %v3085_v59 = vsub.f32 %v9054_v21, %v2956_v37  ;;  %v3086_v61 = vsub.f32 %v9055_v62, %v2956_v37  ;;  %v8118_v27 = vpop.eup %5651  ;;  %5673 = vpow2.f32 %v3317_v57  ;;  %v3333_v26 = vmul.f32 1.442695, %v3084_v7 }
 0x506   : > { %5675 = vpow2.f32 %v3319_v36  ;;  %v3323_v58 = vmul.f32 1.442695, %v3079_v4  ;;  %v3081_v54 = vsub.f32 %v9057_v63, %v2950_v18  ;;  %v3082_v47 = vsub.f32 %v9058_v9, %v2950_v18 }
 0x507   : > { %v8124_v29 = vpop.eup %5653  ;;  %5677 = vpow2.f32 %v3321_v46  ;;  %v3335_v50 = vmul.f32 1.442695, %v3085_v59  ;;  %v3337_v7 = vmul.f32 1.442695, %v3086_v61  ;;  %v3434_v37 = vadd.f32 %v8084_v35, %v8064_v55 }
 0x508   : > { %3501 = vadd.xlane.f32.xlu0 %v3500_v1  ;;  %v8126_v30 = vpop.eup %5655  ;;  %3432 = vadd.xlane.f32.xlu1 %v3431_v45  ;;  %5679 = vpow2.f32 %v3331_v3  ;;  %v3325_v36 = vmul.f32 1.442695, %v3080_v0  ;;  %v3503_v4 = vadd.f32 %v8124_v29, %v8118_v27  ;;  %v3327_v1 = vmul.f32 1.442695, %v3081_v54 }
 0x509   : > { %v8129_v57 = vpop.eup %5657  ;;  %5681 = vpow2.f32 %v3333_v26  ;;  %v3329_v18 = vmul.f32 1.442695, %v3082_v47  ;;  %v3437_v62 = vadd.f32 %v8112_v8, %v8098_v17 }
 0x50a   : > { %v8134_v21 = vpop.eup %5659  ;;  %5683 = vpow2.f32 %v3323_v58 }
 0x50b   : > { %v8138_v46 = vpop.eup %5661  ;;  %5685 = vpow2.f32 %v3335_v50  ;;  %v3506_v3 = vadd.f32 %v8134_v21, %v8129_v57 }
 0x50c   : > { %3435 = vadd.xlane.f32.xlu0 %v3434_v37  ;;  %3504 = vadd.xlane.f32.xlu1 %v3503_v4  ;;  %5687 = vpow2.f32 %v3337_v7  ;;  %v8142_v59 = vpop.eup %5663  ;;  %v3440_v26 = vadd.f32 %v8138_v46, %v8126_v30 }
 0x50d   : > { %9059 = vst [vmem:[#allocation33_spill] sm:$0xff] %v8142_v59  ;;  %5689 = vpow2.f32 %v3325_v36 }
 0x50e   : > { %v8146_v61 = vpop.eup %5665  ;;  %5691 = vpow2.f32 %v3327_v1 }
 0x50f   : > { %v8148_v38 = vpop.eup %5667  ;;  %5693 = vpow2.f32 %v3329_v18  ;;  %v3509_v58 = vadd.f32 %v8146_v61, %v8142_v59 }
 0x510   : > { %3507 = vadd.xlane.f32.xlu0 %v3506_v3  ;;  %9060 = vst [vmem:[#allocation43_spill] sm:$0xff] %v8148_v38  ;;  %3438 = vadd.xlane.f32.xlu1 %v3437_v62  ;;  %v8150_v0 = vpop.eup %5669 }
 0x511   : > { %9061 = vst [vmem:[#allocation66_spill] sm:$0xff] %v8150_v0  ;;  %v8154_v45 = vpop.eup %5671  ;;  %v3512_v9 = vadd.f32 %v8150_v0, %v8148_v38  ;;  %v9088_v0 = vld [vmem:[#allocation83_spill] sm:$0xff] }
 0x512   : > { %9062 = vst [vmem:[#allocation44_spill] sm:$0xff] %v8154_v45  ;;  %v8158_v63 = vpop.eup %5673 }
 0x513   : > { %9063 = vst [vmem:[#allocation48_spill] sm:$0xff] %v8158_v63  ;;  %v8160_v54 = vpop.eup %5675  ;;  %v3515_v7 = vadd.f32 %v8158_v63, %v8154_v45 }
 0x514   : > { %3441 = vadd.xlane.f32.xlu0 %v3440_v26  ;;  %9064 = vst [vmem:[#allocation19_spill] sm:$0xff] %v8160_v54  ;;  %3510 = vadd.xlane.f32.xlu1 %v3509_v58  ;;  %v8162_v50 = vpop.eup %5677 }
 0x515   : > { %9065 = vst [vmem:[#allocation81_spill] sm:$0xff] %v8162_v50  ;;  %v8166_v47 = vpop.eup %5679  ;;  %v3518_v1 = vadd.f32 %v8162_v50, %v8160_v54 }
 0x516   : > { %9066 = vst [vmem:[#allocation9_spill] sm:$0xff] %v8166_v47  ;;  %v8170_v37 = vpop.eup %5681 }
 0x517   : > { %9067 = vst [vmem:[#allocation51_spill] sm:$0xff] %v8170_v37  ;;  %v8172_v36 = vpop.eup %5683  ;;  %v3527_v3 = vadd.f32 %v8170_v37, %v8166_v47 }
 0x518   : > { %3513 = vadd.xlane.f32.xlu0 %v3512_v9  ;;  %9068 = vst [vmem:[#allocation74_spill] sm:$0xff] %v8172_v36  ;;  %3516 = vadd.xlane.f32.xlu1 %v3515_v7  ;;  %v8174_v4 = vpop.eup %5685 }
 0x519   : > { %9069 = vst [vmem:[#allocation24_spill] sm:$0xff] %v8174_v4  ;;  %v8178_v18 = vpop.eup %5687 }
 0x51a   : > { %9070 = vst [vmem:[#allocation53_spill] sm:$0xff] %v8178_v18  ;;  %v8182_v62 = vpop.eup %5689  ;;  %v3530_v58 = vadd.f32 %v8178_v18, %v8174_v4 }
 0x51b   : > { %9071 = vst [vmem:[#allocation22_spill] sm:$0xff] %v8182_v62  ;;  %v8184_v26 = vpop.eup %5691  ;;  %v3521_v7 = vadd.f32 %v8182_v62, %v8172_v36 }
 0x51c   : > { %3519 = vadd.xlane.f32.xlu0 %v3518_v1  ;;  %3528 = vadd.xlane.f32.xlu1 %v3527_v3  ;;  %9072 = vst [vmem:[#allocation39_spill] sm:$0xff] %v8184_v26  ;;  %v8188_v9 = vpop.eup %5693 }
 0x51d   : > { %9073 = vst [vmem:[#allocation30_spill] sm:$0xff] %v8188_v9  ;;  %v3524_v45 = vadd.f32 %v8188_v9, %v8184_v26  ;;  %v9086_v9 = vld [vmem:[#allocation35_spill] sm:$0xff] }
 0x520   : > { %3531 = vadd.xlane.f32.xlu0 %v3530_v58  ;;  %3522 = vadd.xlane.f32.xlu1 %v3521_v7 }
 0x524   : > { %3525 = vadd.xlane.f32.xlu0 %v3524_v45 }
 0x52e   : > { %v3445_v37 = vpop.xlane.xlu1 %3444 }
 0x52f   : > { %5695 = vrcp.f32 %v3445_v37 }
 0x532   : > { %v3448_v1 = vpop.xlane.xlu0 %3447  ;;  %v2959_v3 = vpop.xlane.xlu1 %2958 }
 0x533   : > { %5697 = vrcp.f32 %v3448_v1  ;;  %v3087_v54 = vsub.f32 %v7718_v33, %v2959_v3  ;;  %v3088_v18 = vsub.f32 %v7738_v14, %v2959_v3 }
 0x535   : > { %v3339_v4 = vmul.f32 1.442695, %v3087_v54  ;;  %v3341_v47 = vmul.f32 1.442695, %v3088_v18 }
 0x536   : > { %v3451_v50 = vpop.xlane.xlu1 %3450  ;;  %v2962_v63 = vpop.xlane.xlu0 %2961 }
 0x537   : > { %5699 = vpow2.f32 %v3339_v4  ;;  %v3089_v58 = vsub.f32 %v7729_v43, %v2962_v63  ;;  %v3090_v7 = vsub.f32 %v7760_v60, %v2962_v63  ;;  %v9074_v4 = vld [vmem:[#allocation15_spill] sm:$0xff]  ;;  %v9075_v60 = vld [vmem:[#allocation32_spill] sm:$0xff] }
 0x538   : > { %5701 = vpow2.f32 %v3341_v47  ;;  %v9076_v47 = vld [vmem:[#allocation64_spill] sm:$0xff] }
 0x539   : > { %v3343_v45 = vmul.f32 1.442695, %v3089_v58  ;;  %v3345_v36 = vmul.f32 1.442695, %v3090_v7  ;;  %5703 = vrcp.f32 %v3451_v50 }
 0x53a   : > { %v3385_v37 = vpop.xlane.xlu1 %3384  ;;  %v3454_v26 = vpop.xlane.xlu0 %3453 }
 0x53b   : > { %5705 = vpow2.f32 %v3343_v45 }
 0x53c   : > { %5707 = vpow2.f32 %v3345_v36  ;;  %v5696_v33 = vpop.eup %5695 }
 0x53d   : > { %5709 = vrcp.f32 %v3385_v37  ;;  %v3667_v1 = vmul.f32 %v5696_v33, %v9074_v4  ;;  %v3668_v63 = vmul.f32 %v5696_v33, %v9075_v60 }
 0x53e   : > { %5711 = vrcp.f32 %v3454_v26  ;;  %v3388_v54 = vpop.xlane.xlu0 %3387 }
 0x53f   : > { %v3457_v14 = vpop.xlane.xlu1 %3456  ;;  %5713 = vrcp.f32 %v3388_v54 }
 0x540   : > { %v5698_v18 = vpop.eup %5697  ;;  %5715 = vrcp.f32 %v3457_v14 }
 0x541   : > { %v3669_v43 = vmul.f32 %v5698_v18, %v7749_v24  ;;  %v3670_v3 = vmul.f32 %v5698_v18, %v9076_v47  ;;  %v9081_v47 = vld [vmem:[#allocation34_spill] sm:$0xff] }
 0x542   : > { %v3460_v58 = vpop.xlane.xlu0 %3459 }
 0x543   : > { %v3391_v50 = vpop.xlane.xlu1 %3390  ;;  %v3763_v7 = vpack.c.bf16 %v3669_v43, %v3667_v1  ;;  %v3764_v36 = vpack.c.bf16 %v3670_v3, %v3668_v63  ;;  %5717 = vrcp.f32 %v3460_v58 }
 0x544   : > { %v8202_v45 = vpop.eup %5699  ;;  %5719 = vrcp.f32 %v3391_v50  ;;  %v9082_v50 = vld [vmem:[#allocation14_spill] sm:$0xff] }
 0x545   : > { %9077 = vst [vmem:[#allocation72_spill] sm:$0xff] %v8202_v45  ;;  %v8204_v26 = vpop.eup %5701  ;;  %3988 = vmatprep.mubr.bf16.mxu0 %v3764_v36 }
 0x546   : > { %9078 = vst [vmem:[#allocation41_spill] sm:$0xff] %v8204_v26  ;;  %v3394_v54 = vpop.xlane.xlu0 %3393  ;;  %3989 = vmatmul.mubr.bf16.vlgmr.msra.gmra.mxu0 %v3763_v7  ;;  %v3533_v24 = vadd.f32 %v8204_v26, %v8202_v45  ;;  %v5704_v33 = vpop.eup %5703  ;;  %v9083_v7 = vld [vmem:[#allocation20_spill] sm:$0xff]  ;;  %v9085_v26 = vld [vmem:[#allocation23_spill] sm:$0xff] }
 0x547   : > { %v3463_v37 = vpop.xlane.xlu1 %3462  ;;  %5721 = vrcp.f32 %v3394_v54  ;;  %v3672_v3 = vmul.f32 %v5704_v33, %v9081_v47  ;;  %v3671_v36 = vmul.f32 %v5704_v33, %v9083_v7  ;;  %v9084_v54 = vld [vmem:[#allocation62_spill] sm:$0xff] }
 0x548   : > { %v8208_v18 = vpop.eup %5705  ;;  %3534 = vadd.xlane.f32.xlu1 %v3533_v24  ;;  %5723 = vrcp.f32 %v3463_v37 }
 0x549   : > { %9079 = vst [vmem:[#allocation21_spill] sm:$0xff] %v8208_v18  ;;  %v8210_v14 = vpop.eup %5707 }
 0x54a   : > { %9080 = vst [vmem:[#allocation82_spill] sm:$0xff] %v8210_v14  ;;  %v5710_v4 = vpop.eup %5709  ;;  %v3466_v43 = vpop.xlane.xlu0 %3465  ;;  %v3536_v60 = vadd.f32 %v8210_v14, %v8208_v18  ;;  %v9087_v14 = vld [vmem:[#allocation36_spill] sm:$0xff] }
 0x54b   : > { %v3397_v1 = vpop.xlane.xlu1 %3396  ;;  %v5712_v63 = vpop.eup %5711  ;;  %v3628_v37 = vmul.f32 %v5710_v4, %v9085_v26  ;;  %v3627_v62 = vmul.f32 %v5710_v4, %v9086_v9  ;;  %v9090_v26 = vld [vmem:[#allocation58_spill] sm:$0xff]  ;;  %v9091_v9 = vld [vmem:[#allocation71_spill] sm:$0xff] }
 0x54c   : > { %5725 = vrcp.f32 %v3397_v1  ;;  %3537 = vadd.xlane.f32.xlu0 %v3536_v60  ;;  %v3674_v58 = vmul.f32 %v5712_v63, %v9082_v50  ;;  %v3673_v24 = vmul.f32 %v5712_v63, %v9084_v54  ;;  %v5714_v45 = vpop.eup %5713  ;;  %v9089_v63 = vld [vmem:[#allocation31_spill] sm:$0xff] }
 0x54d   : > { %5727 = vrcp.f32 %v3466_v43  ;;  %v3630_v1 = vmul.f32 %v5714_v45, %v9087_v14  ;;  %v3629_v47 = vmul.f32 %v5714_v45, %v9088_v0  ;;  %v5716_v43 = vpop.eup %5715 }
 0x54e   : > { %v3766_v38 = vpack.c.bf16 %v3674_v58, %v3672_v3  ;;  %v3400_v59 = vpop.xlane.xlu0 %3399  ;;  %v3765_v18 = vpack.c.bf16 %v3673_v24, %v3671_v36  ;;  %v3676_v7 = vmul.f32 %v5716_v43, %v9089_v63  ;;  %v9092_v58 = vld [vmem:[#allocation17_spill] sm:$0xff] }
 0x54f   : > { %5729 = vrcp.f32 %v3400_v59  ;;  %v3744_v60 = vpack.c.bf16 %v3630_v1, %v3628_v37  ;;  %v3743_v50 = vpack.c.bf16 %v3629_v47, %v3627_v62  ;;  %v3675_v14 = vmul.f32 %v5716_v43, %v9092_v58  ;;  %v9093_v59 = vld [vmem:[#allocation29_spill] sm:$0xff]  ;;  %v9094_v62 = vld [vmem:[#allocation11_spill] sm:$0xff]  ;;  %v9096_v1 = vld [vmem:[#allocation12_spill] sm:$0xff] }
 0x550   : > { %3996 = vmatprep.mubr.bf16.mxu0 %v3766_v38  ;;  %v5718_v33 = vpop.eup %5717  ;;  %v9097_v43 = vld [vmem:[#allocation68_spill] sm:$0xff] }
 0x551   : > { %3997 = vmatmul.mubr.bf16.gmra.mxu0 %v3765_v18  ;;  %3875 = vmatprep.mubr.bf16.mxu1 %v3744_v60  ;;  %v3678_v54 = vmul.f32 %v5718_v33, %v9090_v26  ;;  %v3677_v4 = vmul.f32 %v5718_v33, %v9091_v9  ;;  %v5720_v3 = vpop.eup %5719  ;;  %v9095_v18 = vld [vmem:[#allocation13_spill] sm:$0xff] }
 0x552   : > { %3876 = vmatmul.mubr.bf16.gmra.mxu1 %v3743_v50  ;;  %v3632_v38 = vmul.f32 %v5720_v3, %v9093_v59  ;;  %v3631_v37 = vmul.f32 %v5720_v3, %v9095_v18 }
 0x553   : > { %v3768_v36 = vpack.c.bf16 %v3678_v54, %v3676_v7  ;;  %v3767_v45 = vpack.c.bf16 %v3677_v4, %v3675_v14  ;;  %v9098_v7 = vld [vmem:[#allocation100_spill] sm:$0xff]  ;;  %v9099_v4 = vld [vmem:[#allocation70_spill] sm:$0xff] }
 0x554   : > { %v5722_v0 = vpop.eup %5721  ;;  %v9100_v14 = vld [vmem:[#allocation28_spill] sm:$0xff] }
 0x555   : > { %4004 = vmatprep.mubr.bf16.mxu0 %v3768_v36  ;;  %v3634_v24 = vmul.f32 %v5722_v0, %v9094_v62  ;;  %v3633_v47 = vmul.f32 %v5722_v0, %v9096_v1  ;;  %v5724_v60 = vpop.eup %5723  ;;  %v9101_v62 = vld [vmem:[#allocation99_spill] sm:$0xff]  ;;  %v9102_v1 = vld [vmem:[#allocation8_spill] sm:$0xff] }
 0x556   : > { %v3680_v50 = vmul.f32 %v5724_v60, %v9097_v43  ;;  %v3679_v36 = vmul.f32 %v5724_v60, %v9100_v14 }
 0x557   : > { %v3746_v26 = vpack.c.bf16 %v3634_v24, %v3632_v38  ;;  %v3745_v33 = vpack.c.bf16 %v3633_v47, %v3631_v37  ;;  %v9103_v24 = vld [vmem:[#allocation55_spill] sm:$0xff] }
 0x559   : > { %v5726_v63 = vpop.eup %5725  ;;  %4005 = vmatmul.mubr.bf16.gmra.mxu0 %v3767_v45  ;;  %3883 = vmatprep.mubr.bf16.mxu1 %v3746_v26  ;;  %v9104_v45 = vld [vmem:[#allocation10_spill] sm:$0xff] }
 0x55a   : > { %v5728_v9 = vpop.eup %5727  ;;  %3884 = vmatmul.mubr.bf16.gmra.mxu1 %v3745_v33  ;;  %v3636_v0 = vmul.f32 %v5726_v63, %v9101_v62  ;;  %v3635_v37 = vmul.f32 %v5726_v63, %v9103_v24 }
 0x55b   : > { %v3682_v54 = vmul.f32 %v5728_v9, %v9098_v7  ;;  %v3681_v58 = vmul.f32 %v5728_v9, %v9099_v4 }
 0x55c   : > { %v5730_v59 = vpop.eup %5729 }
 0x55d   : > { %v3770_v3 = vpack.c.bf16 %v3682_v54, %v3680_v50  ;;  %v3769_v18 = vpack.c.bf16 %v3681_v58, %v3679_v36  ;;  %v3638_v38 = vmul.f32 %v5730_v59, %v9102_v1  ;;  %v3637_v47 = vmul.f32 %v5730_v59, %v9104_v45  ;;  %v9106_v1 = vld [vmem:[#allocation54_spill] sm:$0xff] }
 0x55f   : > { %4012 = vmatprep.mubr.bf16.mxu0 %v3770_v3  ;;  %v3748_v26 = vpack.c.bf16 %v3638_v38, %v3636_v0  ;;  %v3747_v43 = vpack.c.bf16 %v3637_v47, %v3635_v37  ;;  %v9105_v0 = vld [vmem:[#allocation63_spill] sm:$0xff] }
 0x561   : > { %4013 = vmatmul.mubr.bf16.gmra.mxu0 %v3769_v18  ;;  %3891 = vmatprep.mubr.bf16.mxu1 %v3748_v26 }
 0x562   : > { %3892 = vmatmul.mubr.bf16.gmra.mxu1 %v3747_v43 }
 0x563   : > { %v3469_v9 = vpop.xlane.xlu1 %3468 }
 0x564   : > { %5731 = vrcp.f32 %v3469_v9  ;;  %v9107_v9 = vld [vmem:[#allocation52_spill] sm:$0xff] }
 0x567   : > { %v3403_v60 = vpop.xlane.xlu1 %3402 }
 0x568   : > { %v3472_v33 = vpop.xlane.xlu0 %3471 }
 0x569   : > { %5733 = vrcp.f32 %v3472_v33 }
 0x56a   : > { %5735 = vrcp.f32 %v3403_v60 }
 0x56c   : > { %v3475_v50 = vpop.xlane.xlu1 %3474 }
 0x56d   : > { %v3406_v7 = vpop.xlane.xlu0 %3405 }
 0x56e   : > { %5737 = vrcp.f32 %v3406_v7 }
 0x56f   : > { %5739 = vrcp.f32 %v3475_v50 }
 0x570   : > { %v3409_v54 = vpop.xlane.xlu1 %3408 }
 0x571   : > { %v3478_v63 = vpop.xlane.xlu0 %3477  ;;  %v5732_v58 = vpop.eup %5731 }
 0x572   : > { %5741 = vrcp.f32 %v3478_v63  ;;  %v3684_v3 = vmul.f32 %v5732_v58, %v7924_v34  ;;  %v3683_v18 = vmul.f32 %v5732_v58, %v9105_v0  ;;  %v9108_v34 = vld [vmem:[#allocation65_spill] sm:$0xff] }
 0x573   : > { %5743 = vrcp.f32 %v3409_v54 }
 0x574   : > { %v3481_v4 = vpop.xlane.xlu1 %3480 }
 0x575   : > { %v3412_v14 = vpop.xlane.xlu0 %3411 }
 0x576   : > { %5745 = vrcp.f32 %v3412_v14  ;;  %v5734_v36 = vpop.eup %5733 }
 0x577   : > { %5747 = vrcp.f32 %v3481_v4  ;;  %v3686_v62 = vmul.f32 %v5734_v36, %v7938_v11  ;;  %v3685_v38 = vmul.f32 %v5734_v36, %v9106_v1  ;;  %v5736_v24 = vpop.eup %5735 }
 0x578   : > { %v3415_v59 = vpop.xlane.xlu1 %3414  ;;  %v3640_v60 = vmul.f32 %v5736_v24, %v9107_v9  ;;  %v3639_v50 = vmul.f32 %v5736_v24, %v9108_v34 }
 0x579   : > { %v3484_v37 = vpop.xlane.xlu0 %3483  ;;  %v3772_v45 = vpack.c.bf16 %v3686_v62, %v3684_v3  ;;  %v3771_v47 = vpack.c.bf16 %v3685_v38, %v3683_v18  ;;  %v9109_v38 = vld [vmem:[#allocation101_spill] sm:$0xff] }
 0x57a   : > { %5749 = vrcp.f32 %v3484_v37 }
 0x57b   : > { %v5738_v26 = vpop.eup %5737  ;;  %5751 = vrcp.f32 %v3415_v59  ;;  %4020 = vmatprep.mubr.bf16.mxu0 %v3772_v45 }
 0x57c   : > { %v3487_v43 = vpop.xlane.xlu1 %3486  ;;  %v3642_v33 = vmul.f32 %v5738_v26, %v7882_v53  ;;  %v3641_v11 = vmul.f32 %v5738_v26, %v7880_v32  ;;  %v5740_v7 = vpop.eup %5739  ;;  %4021 = vmatmul.mubr.bf16.gmra.mxu0 %v3771_v47 }
 0x57d   : > { %v3418_v54 = vpop.xlane.xlu0 %3417  ;;  %v3688_v59 = vmul.f32 %v5740_v7, %v7955_v22  ;;  %v3687_v53 = vmul.f32 %v5740_v7, %v7950_v42  ;;  %v9110_v22 = vld [vmem:[#allocation67_spill] sm:$0xff] }
 0x57e   : > { %5753 = vrcp.f32 %v3418_v54  ;;  %v3750_v63 = vpack.c.bf16 %v3642_v33, %v3640_v60  ;;  %v3749_v4 = vpack.c.bf16 %v3641_v11, %v3639_v50 }
 0x57f   : > { %v5742_v58 = vpop.eup %5741  ;;  %5755 = vrcp.f32 %v3487_v43 }
 0x580   : > { %v5744_v14 = vpop.eup %5743  ;;  %3899 = vmatprep.mubr.bf16.mxu1 %v3750_v63  ;;  %v3421_v36 = vpop.xlane.xlu1 %3420  ;;  %v3690_v3 = vmul.f32 %v5742_v58, %v7969_v13  ;;  %v3689_v62 = vmul.f32 %v5742_v58, %v7963_v10 }
 0x581   : > { %3900 = vmatmul.mubr.bf16.gmra.mxu1 %v3749_v4  ;;  %v3490_v32 = vpop.xlane.xlu0 %3489  ;;  %v3644_v24 = vmul.f32 %v5744_v14, %v9109_v38  ;;  %v3643_v47 = vmul.f32 %v5744_v14, %v9110_v22  ;;  %v9115_v22 = vld [vmem:[#allocation78_spill] sm:$0xff] }
 0x582   : > { %5757 = vrcp.f32 %v3490_v32  ;;  %v3774_v0 = vpack.c.bf16 %v3690_v3, %v3688_v59  ;;  %v3773_v18 = vpack.c.bf16 %v3689_v62, %v3687_v53  ;;  %v9111_v62 = vld [vmem:[#allocation25_spill] sm:$0xff] }
 0x583   : > { %v5746_v1 = vpop.eup %5745  ;;  %5759 = vrcp.f32 %v3421_v36 }
 0x584   : > { %v5748_v37 = vpop.eup %5747  ;;  %4028 = vmatprep.mubr.bf16.mxu0 %v3774_v0  ;;  %v3646_v45 = vmul.f32 %v5746_v1, %v7893_v48  ;;  %v3645_v13 = vmul.f32 %v5746_v1, %v7891_v20 }
 0x585   : > { %v3424_v42 = vpop.xlane.xlu0 %3423  ;;  %4029 = vmatmul.mubr.bf16.gmra.mxu0 %v3773_v18  ;;  %v3493_v10 = vpop.xlane.xlu1 %3492  ;;  %v3692_v60 = vmul.f32 %v5748_v37, %v7987_v12  ;;  %v3691_v48 = vmul.f32 %v5748_v37, %v7983_v28 }
 0x586   : > { %5761 = vrcp.f32 %v3424_v42  ;;  %v3752_v26 = vpack.c.bf16 %v3646_v45, %v3644_v24  ;;  %v3751_v43 = vpack.c.bf16 %v3645_v13, %v3643_v47 }
 0x587   : > { %v5750_v9 = vpop.eup %5749  ;;  %5763 = vrcp.f32 %v3493_v10 }
 0x588   : > { %v5752_v33 = vpop.eup %5751  ;;  %3907 = vmatprep.mubr.bf16.mxu1 %v3752_v26  ;;  %v3694_v34 = vmul.f32 %v5750_v9, %v8005_v19  ;;  %v3693_v50 = vmul.f32 %v5750_v9, %v7999_v16 }
 0x589   : > { %3908 = vmatmul.mubr.bf16.gmra.mxu1 %v3751_v43  ;;  %v3496_v20 = vpop.xlane.xlu0 %3495  ;;  %v3427_v11 = vpop.xlane.xlu1 %3426  ;;  %v3648_v4 = vmul.f32 %v5752_v33, %v7898_v23  ;;  %v3647_v19 = vmul.f32 %v5752_v33, %v7895_v51 }
 0x58a   : > { %5765 = vrcp.f32 %v3496_v20  ;;  %v3776_v7 = vpack.c.bf16 %v3694_v34, %v3692_v60  ;;  %v3775_v54 = vpack.c.bf16 %v3693_v50, %v3691_v48  ;;  %v9116_v60 = vld [vmem:[#allocation61_spill] sm:$0xff]  ;;  %v9118_v50 = vld [vmem:[#allocation42_spill] sm:$0xff] }
 0x58b   : > { %v5754_v63 = vpop.eup %5753  ;;  %5767 = vrcp.f32 %v3427_v11  ;;  %v9117_v34 = vld [vmem:[#allocation77_spill] sm:$0xff]  ;;  %v9119_v11 = vld [vmem:[#allocation56_spill] sm:$0xff] }
 0x58c   : > { %v5756_v58 = vpop.eup %5755  ;;  %4036 = vmatprep.mubr.bf16.mxu0 %v3776_v7  ;;  %v3650_v12 = vmul.f32 %v5754_v63, %v7904_v15  ;;  %v3649_v28 = vmul.f32 %v5754_v63, %v7900_v56 }
 0x58d   : > { %v3430_v16 = vpop.xlane.xlu0 %3429  ;;  %4037 = vmatmul.mubr.bf16.gmra.mxu0 %v3775_v54  ;;  %v3499_v14 = vpop.xlane.xlu1 %3498  ;;  %v3696_v53 = vmul.f32 %v5756_v58, %v8025_v5  ;;  %v3695_v15 = vmul.f32 %v5756_v58, %v8019_v39  ;;  %v9112_v5 = vld [vmem:[#allocation59_spill] sm:$0xff]  ;;  %v9114_v39 = vld [vmem:[#allocation84_spill] sm:$0xff] }
 0x58e   : > { %5769 = vrcp.f32 %v3430_v16  ;;  %v3754_v36 = vpack.c.bf16 %v3650_v12, %v3648_v4  ;;  %v3753_v59 = vpack.c.bf16 %v3649_v28, %v3647_v19 }
 0x58f   : > { %v5758_v3 = vpop.eup %5757  ;;  %5771 = vrcp.f32 %v3499_v14  ;;  %v9120_v14 = vld [vmem:[#allocation5_spill] sm:$0xff] }
 0x590   : > { %3915 = vmatprep.mubr.bf16.mxu1 %v3754_v36  ;;  %v3698_v23 = vmul.f32 %v5758_v3, %v8041_v41  ;;  %v3697_v32 = vmul.f32 %v5758_v3, %v9111_v62  ;;  %v5760_v51 = vpop.eup %5759  ;;  %v9113_v41 = vld [vmem:[#allocation69_spill] sm:$0xff]  ;;  %v9121_v3 = vld [vmem:[#allocation7_spill] sm:$0xff] }
 0x591   : > { %3916 = vmatmul.mubr.bf16.gmra.mxu1 %v3753_v59  ;;  %v3502_v56 = vpop.xlane.xlu0 %3501  ;;  %v3433_v0 = vpop.xlane.xlu1 %3432  ;;  %v3652_v24 = vmul.f32 %v5760_v51, %v9112_v5  ;;  %v3651_v45 = vmul.f32 %v5760_v51, %v9114_v39 }
 0x592   : > { %5773 = vrcp.f32 %v3502_v56  ;;  %v3778_v18 = vpack.c.bf16 %v3698_v23, %v3696_v53  ;;  %v3777_v1 = vpack.c.bf16 %v3697_v32, %v3695_v15 }
 0x593   : > { %v5762_v38 = vpop.eup %5761  ;;  %5775 = vrcp.f32 %v3433_v0 }
 0x594   : > { %4044 = vmatprep.mubr.bf16.mxu0 %v3778_v18  ;;  %v3654_v37 = vmul.f32 %v5762_v38, %v9113_v41  ;;  %v3653_v47 = vmul.f32 %v5762_v38, %v9115_v22  ;;  %v5764_v13 = vpop.eup %5763 }
 0x595   : > { %v3436_v42 = vpop.xlane.xlu0 %3435  ;;  %4045 = vmatmul.mubr.bf16.gmra.mxu0 %v3777_v1  ;;  %v3505_v10 = vpop.xlane.xlu1 %3504  ;;  %v3700_v33 = vmul.f32 %v5764_v13, %v9116_v60  ;;  %v3699_v20 = vmul.f32 %v5764_v13, %v9118_v50 }
 0x596   : > { %5777 = vrcp.f32 %v3436_v42  ;;  %v3756_v26 = vpack.c.bf16 %v3654_v37, %v3652_v24  ;;  %v3755_v43 = vpack.c.bf16 %v3653_v47, %v3651_v45 }
 0x597   : > { %v5766_v9 = vpop.eup %5765  ;;  %5779 = vrcp.f32 %v3505_v10 }
 0x598   : > { %3923 = vmatprep.mubr.bf16.mxu1 %v3756_v26  ;;  %v3702_v48 = vmul.f32 %v5766_v9, %v9117_v34  ;;  %v3701_v7 = vmul.f32 %v5766_v9, %v9119_v11  ;;  %v5768_v54 = vpop.eup %5767 }
 0x599   : > { %3924 = vmatmul.mubr.bf16.gmra.mxu1 %v3755_v43  ;;  %v3508_v63 = vpop.xlane.xlu0 %3507  ;;  %v3439_v4 = vpop.xlane.xlu1 %3438  ;;  %v3656_v36 = vmul.f32 %v5768_v54, %v9120_v14  ;;  %v3655_v53 = vmul.f32 %v5768_v54, %v9121_v3 }
 0x59a   : > { %5781 = vrcp.f32 %v3508_v63  ;;  %v4937_v58 = vpop.f32.mrf.mxu1  ;;  %v3780_v12 = vpack.c.bf16 %v3702_v48, %v3700_v33  ;;  %v3779_v19 = vpack.c.bf16 %v3701_v7, %v3699_v20 }
 0x59b   : > { %v5770_v28 = vpop.eup %5769  ;;  %5783 = vrcp.f32 %v3439_v4 }
 0x59c   : > { %4052 = vmatprep.mubr.bf16.mxu0 %v3780_v12  ;;  %v4938_v16 = vpop.f32.mrf.mxu1  ;;  %v3658_v59 = vmul.f32 %v5770_v28, %v8014_v44  ;;  %v3657_v23 = vmul.f32 %v5770_v28, %v7990_v40  ;;  %v5772_v15 = vpop.eup %5771 }
 0x59d   : > { %v4939_v62 = vadd.f32 %v4938_v16, %v4937_v58  ;;  %v3442_v32 = vpop.xlane.xlu0 %3441  ;;  %4053 = vmatmul.mubr.bf16.gmra.mxu0 %v3779_v19  ;;  %v3511_v51 = vpop.xlane.xlu1 %3510  ;;  %v3704_v5 = vmul.f32 %v5772_v15, %v8094_v6  ;;  %v3703_v41 = vmul.f32 %v5772_v15, %v8088_v31 }
 0x59e   : > { %5785 = vrcp.f32 %v3442_v32  ;;  %v4940_v56 = vpop.f32.mrf.mxu1  ;;  %v3758_v0 = vpack.c.bf16 %v3658_v59, %v3656_v36  ;;  %v3757_v44 = vpack.c.bf16 %v3657_v23, %v3655_v53 }
 0x59f   : > { %v5774_v18 = vpop.eup %5773  ;;  %v4761_v1 = vpack.c.bf16 %v4939_v62, %v4939_v62  ;;  %5787 = vrcp.f32 %v3511_v51 }
 0x5a0   : > { %v5776_v40 = vpop.eup %5775  ;;  %3931 = vmatprep.mubr.bf16.mxu1 %v3758_v0  ;;  %v4941_v38 = vpop.f32.mrf.mxu1  ;;  %v3706_v24 = vmul.f32 %v5774_v18, %v8108_v52  ;;  %v3705_v37 = vmul.f32 %v5774_v18, %v8103_v2  ;;  %v9123_v0 = vld [vmem:[#allocation33_spill] sm:$0xff] }
 0x5a1   : > { %4374 = vst.msk [vmem:[%s8284_s9] sm:$0xf] %vm4373_vm1, %v4761_v1  ;;  %v4942_v39 = vadd.f32 %v4941_v38, %v4940_v56  ;;  %3932 = vmatmul.mubr.bf16.gmra.mxu1 %v3757_v44  ;;  %v3514_v45 = vpop.xlane.xlu0 %3513  ;;  %v3517_v22 = vpop.xlane.xlu1 %3516  ;;  %v3660_v6 = vmul.f32 %v5776_v40, %v8051_v49  ;;  %v3659_v2 = vmul.f32 %v5776_v40, %v8028_v25  ;;  %v9122_v56 = vld [vmem:[#allocation66_spill] sm:$0xff]  ;;  %v9124_v44 = vld [vmem:[#allocation43_spill] sm:$0xff] }
 0x5a2   : > { %5789 = vrcp.f32 %v3514_v45  ;;  %v3782_v47 = vpack.c.bf16 %v3706_v24, %v3704_v5  ;;  %v3781_v13 = vpack.c.bf16 %v3705_v37, %v3703_v41  ;;  %v4943_v26 = vpop.f32.mrf.mxu1  ;;  %v9125_v45 = vld [vmem:[#allocation48_spill] sm:$0xff] }
 0x5a3   : > { %v5778_v42 = vpop.eup %5777  ;;  %v4762_v10 = vpack.c.bf16 %v4942_v39, %v4942_v39  ;;  %5791 = vrcp.f32 %v3517_v22 }
 0x5a4   : > { %v5780_v52 = vpop.eup %5779  ;;  %4060 = vmatprep.mubr.bf16.mxu0 %v3782_v47  ;;  %v3662_v31 = vmul.f32 %v5778_v42, %v8084_v35  ;;  %v3661_v43 = vmul.f32 %v5778_v42, %v8064_v55  ;;  %v4944_v9 = vpop.f32.mrf.mxu1  ;;  %v9126_v47 = vld [vmem:[#allocation81_spill] sm:$0xff] }
 0x5a5   : > { %4375 = vst.msk [vmem:[%s8284_s9 + $0x4] sm:$0xf] %vm4373_vm1, %v4762_v10  ;;  %v3520_v60 = vpop.xlane.xlu0 %3519  ;;  %4061 = vmatmul.mubr.bf16.gmra.mxu0 %v3781_v13  ;;  %v4945_v33 = vadd.f32 %v4944_v9, %v4943_v26  ;;  %v3529_v34 = vpop.xlane.xlu1 %3528  ;;  %v3708_v35 = vmul.f32 %v5780_v52, %v8124_v29  ;;  %v3707_v7 = vmul.f32 %v5780_v52, %v8118_v27  ;;  %v9127_v52 = vld [vmem:[#allocation9_spill] sm:$0xff] }
 0x5a6   : > { %5793 = vrcp.f32 %v3520_v60  ;;  %v3760_v48 = vpack.c.bf16 %v3662_v31, %v3660_v6  ;;  %v3759_v49 = vpack.c.bf16 %v3661_v43, %v3659_v2  ;;  %v4946_v20 = vpop.f32.mrf.mxu1  ;;  %v9128_v43 = vld [vmem:[#allocation19_spill] sm:$0xff]  ;;  %v9129_v60 = vld [vmem:[#allocation24_spill] sm:$0xff] }
 0x5a7   : > { %v5782_v50 = vpop.eup %5781  ;;  %5795 = vrcp.f32 %v3529_v34  ;;  %v4763_v25 = vpack.c.bf16 %v4945_v33, %v4945_v33 }
 0x5a8   : > { %v5784_v11 = vpop.eup %5783  ;;  %3939 = vmatprep.mubr.bf16.mxu1 %v3760_v48  ;;  %v3710_v55 = vmul.f32 %v5782_v50, %v8134_v21  ;;  %v3709_v54 = vmul.f32 %v5782_v50, %v8129_v57  ;;  %v4947_v63 = vpop.f32.mrf.mxu1  ;;  %v9130_v48 = vld [vmem:[#allocation51_spill] sm:$0xff]  ;;  %v9131_v50 = vld [vmem:[#allocation53_spill] sm:$0xff] }
 0x5a9   : > { %3940 = vmatmul.mubr.bf16.gmra.mxu1 %v3759_v49  ;;  %v3532_v4 = vpop.xlane.xlu0 %3531  ;;  %4376 = vst.msk [vmem:[%s8284_s9 + $0x8] sm:$0xf] %vm4373_vm1, %v4763_v25  ;;  %v4948_v58 = vadd.f32 %v4947_v63, %v4946_v20  ;;  %v3523_v12 = vpop.xlane.xlu1 %3522  ;;  %v3664_v14 = vmul.f32 %v5784_v11, %v8112_v8  ;;  %v3663_v21 = vmul.f32 %v5784_v11, %v8098_v17  ;;  %v9132_v25 = vld [vmem:[#allocation44_spill] sm:$0xff] }
 0x5aa   : > { %5797 = vrcp.f32 %v3532_v4  ;;  %v3784_v19 = vpack.c.bf16 %v3710_v55, %v3708_v35  ;;  %v3783_v29 = vpack.c.bf16 %v3709_v54, %v3707_v7  ;;  %v4949_v16 = vpop.f32.mrf.mxu1 }
 0x5ab   : > { %v5786_v28 = vpop.eup %5785  ;;  %v4764_v36 = vpack.c.bf16 %v4948_v58, %v4948_v58  ;;  %5799 = vrcp.f32 %v3523_v12 }
 0x5ac   : > { %v5788_v27 = vpop.eup %5787  ;;  %4068 = vmatprep.mubr.bf16.mxu0 %v3784_v19  ;;  %v3666_v57 = vmul.f32 %v5786_v28, %v8138_v46  ;;  %v3665_v59 = vmul.f32 %v5786_v28, %v8126_v30  ;;  %v4950_v3 = vpop.f32.mrf.mxu1 }
 0x5ad   : > { %v3526_v53 = vpop.xlane.xlu0 %3525  ;;  %4069 = vmatmul.mubr.bf16.gmra.mxu0 %v3783_v29  ;;  %4377 = vst.msk [vmem:[%s8284_s9 + $0xc] sm:$0xf] %vm4373_vm1, %v4764_v36  ;;  %v4951_v23 = vadd.f32 %v4950_v3, %v4949_v16  ;;  %v3712_v32 = vmul.f32 %v5788_v27, %v8146_v61  ;;  %v3711_v30 = vmul.f32 %v5788_v27, %v9123_v0  ;;  %v9133_v29 = vld [vmem:[#allocation22_spill] sm:$0xff] }
 0x5ae   : > { %5801 = vrcp.f32 %v3526_v53  ;;  %v3762_v15 = vpack.c.bf16 %v3666_v57, %v3664_v14  ;;  %v3761_v8 = vpack.c.bf16 %v3665_v59, %v3663_v21  ;;  %v4952_v17 = vpop.f32.mrf.mxu1  ;;  %v9134_v16 = vld [vmem:[#allocation30_spill] sm:$0xff]  ;;  %v9135_v57 = vld [vmem:[#allocation39_spill] sm:$0xff] }
 0x5af   : > { %v5790_v62 = vpop.eup %5789  ;;  %v4765_v51 = vpack.c.bf16 %v4951_v23, %v4951_v23  ;;  %v9136_v23 = vld [vmem:[#allocation74_spill] sm:$0xff] }
 0x5b0   : > { %3947 = vmatprep.mubr.bf16.mxu1 %v3762_v15  ;;  %v3714_v46 = vmul.f32 %v5790_v62, %v9122_v56  ;;  %v3713_v18 = vmul.f32 %v5790_v62, %v9124_v44  ;;  %v5792_v1 = vpop.eup %5791  ;;  %v4953_v40 = vpop.f32.mrf.mxu1 }
 0x5b1   : > { %3948 = vmatmul.mubr.bf16.gmra.mxu1 %v3761_v8  ;;  %4378 = vst.msk [vmem:[%s8284_s9 + $0x10] sm:$0xf] %vm4373_vm1, %v4765_v51  ;;  %v4954_v38 = vadd.f32 %v4953_v40, %v4952_v17  ;;  %v3716_v22 = vmul.f32 %v5792_v1, %v9125_v45  ;;  %v3715_v55 = vmul.f32 %v5792_v1, %v9132_v25  ;;  %v9139_v45 = vld [vmem:[#allocation72_spill] sm:$0xff] }
 0x5b2   : > { %v3786_v5 = vpack.c.bf16 %v3714_v46, %v3712_v32  ;;  %v3785_v24 = vpack.c.bf16 %v3713_v18, %v3711_v30 }
 0x5b3   : > { %v5794_v41 = vpop.eup %5793  ;;  %v4955_v37 = vpop.f32.mrf.mxu1  ;;  %v4766_v39 = vpack.c.bf16 %v4954_v38, %v4954_v38 }
 0x5b4   : > { %v5796_v61 = vpop.eup %5795  ;;  %4076 = vmatprep.mubr.bf16.mxu0 %v3786_v5  ;;  %v3718_v13 = vmul.f32 %v5794_v41, %v9126_v47  ;;  %v3717_v9 = vmul.f32 %v5794_v41, %v9128_v43  ;;  %v9137_v41 = vld [vmem:[#allocation41_spill] sm:$0xff] }
 0x5b5   : > { %v4956_v42 = vpop.f32.mrf.mxu1  ;;  %4077 = vmatmul.mubr.bf16.gmra.mxu0 %v3785_v24  ;;  %4379 = vst.msk [vmem:[%s8284_s9 + $0x14] sm:$0xf] %vm4373_vm1, %v4766_v39  ;;  %v3723_v31 = vmul.f32 %v5796_v61, %v9127_v52  ;;  %v3724_v49 = vmul.f32 %v5796_v61, %v9130_v48  ;;  %v9138_v61 = vld [vmem:[#allocation82_spill] sm:$0xff]  ;;  %v9140_v47 = vld [vmem:[#allocation21_spill] sm:$0xff] }
 0x5b6   : > { %v4957_v10 = vadd.f32 %v4956_v42, %v4955_v37  ;;  %v3788_v26 = vpack.c.bf16 %v3718_v13, %v3716_v22  ;;  %v3787_v58 = vpack.c.bf16 %v3717_v9, %v3715_v55 }
 0x5b7   : > { %v5798_v6 = vpop.eup %5797  ;;  %v4958_v2 = vpop.f32.mrf.mxu1 }
 0x5b8   : > { %v3725_v33 = vmul.f32 %v5798_v6, %v9129_v60  ;;  %v4767_v34 = vpack.c.bf16 %v4957_v10, %v4957_v10  ;;  %4084 = vmatprep.mubr.bf16.mxu0 %v3788_v26  ;;  %v3726_v20 = vmul.f32 %v5798_v6, %v9131_v50  ;;  %v5800_v35 = vpop.eup %5799 }
 0x5b9   : > { %v4959_v11 = vpop.f32.mrf.mxu1  ;;  %v3720_v28 = vmul.f32 %v5800_v35, %v9133_v29  ;;  %v3719_v15 = vmul.f32 %v5800_v35, %v9136_v23 }
 0x5ba   : > { %v3791_v7 = vpack.c.bf16 %v3725_v33, %v3723_v31  ;;  %4380 = vst.msk [vmem:[%s8284_s9 + $0x18] sm:$0xf] %vm4373_vm1, %v4767_v34  ;;  %v4960_v54 = vadd.f32 %v4959_v11, %v4958_v2  ;;  %v3792_v63 = vpack.c.bf16 %v3726_v20, %v3724_v49 }
 0x5bb   : > { %v5802_v4 = vpop.eup %5801  ;;  %v4961_v19 = vpop.f32.mrf.mxu1 }
 0x5bc   : > { %v4768_v12 = vpack.c.bf16 %v4960_v54, %v4960_v54  ;;  %4100 = vmatprep.mubr.bf16.mxu1 %v3792_v63  ;;  %v3722_v14 = vmul.f32 %v5802_v4, %v9134_v16  ;;  %v3721_v59 = vmul.f32 %v5802_v4, %v9135_v57 }
 0x5bd   : > { %4085 = vmatmul.mubr.bf16.gmra.mxu0 %v3787_v58  ;;  %4101 = vmatmul.mubr.bf16.vlgmr.msra.gmra.mxu1 %v3791_v7  ;;  %v4962_v21 = vpop.f32.mrf.mxu1 }
 0x5be   : > { %4381 = vst.msk [vmem:[%s8284_s9 + $0x1c] sm:$0xf] %vm4373_vm1, %v4768_v12  ;;  %v3790_v27 = vpack.c.bf16 %v3722_v14, %v3720_v28  ;;  %v4963_v36 = vadd.f32 %v4962_v21, %v4961_v19  ;;  %v3789_v17 = vpack.c.bf16 %v3721_v59, %v3719_v15 }
 0x5bf   : > { %v4964_v3 = vpop.f32.mrf.mxu1 }
 0x5c0   : > { %4092 = vmatprep.mubr.bf16.mxu0 %v3790_v27  ;;  %v4769_v53 = vpack.c.bf16 %v4963_v36, %v4963_v36 }
 0x5c1   : > { %v4965_v8 = vpop.f32.mrf.mxu1 }
 0x5c2   : > { %4382 = vst.msk [vmem:[%s8284_s9 + $0x20] sm:$0xf] %vm4373_vm1, %v4769_v53  ;;  %v4966_v62 = vadd.f32 %v4965_v8, %v4964_v3 }
 0x5c3   : > { %v4967_v32 = vpop.f32.mrf.mxu1 }
 0x5c4   : > { %v4770_v51 = vpack.c.bf16 %v4966_v62, %v4966_v62 }
 0x5c5   : > { %4093 = vmatmul.mubr.bf16.gmra.mxu0 %v3789_v17  ;;  %v4968_v56 = vpop.f32.mrf.mxu1 }
 0x5c6   : > { %4383 = vst.msk [vmem:[%s8284_s9 + $0x24] sm:$0xf] %vm4373_vm1, %v4770_v51  ;;  %v4969_v46 = vadd.f32 %v4968_v56, %v4967_v32 }
 0x5c7   : > { %v4970_v0 = vpop.f32.mrf.mxu1 }
 0x5c8   : > { %v4771_v30 = vpack.c.bf16 %v4969_v46, %v4969_v46 }
 0x5c9   : > { %v4971_v44 = vpop.f32.mrf.mxu1 }
 0x5ca   : > { %4384 = vst.msk [vmem:[%s8284_s9 + $0x28] sm:$0xf] %vm4373_vm1, %v4771_v30  ;;  %v4972_v18 = vadd.f32 %v4971_v44, %v4970_v0 }
 0x5cc   : > { %v4772_v1 = vpack.c.bf16 %v4972_v18, %v4972_v18 }
 0x5ce   : > { %4385 = vst.msk [vmem:[%s8284_s9 + $0x2c] sm:$0xf] %vm4373_vm1, %v4772_v1 }
 0x5d1   : > { %v3535_v40 = vpop.xlane.xlu1 %3534 }
 0x5d2   : > { %5803 = vrcp.f32 %v3535_v40 }
 0x5d5   : > { %v3538_v38 = vpop.xlane.xlu0 %3537 }
 0x5d6   : > { %5805 = vrcp.f32 %v3538_v38 }
 0x5df   : > { %v5804_v5 = vpop.eup %5803 }
 0x5e0   : > { %v3728_v37 = vmul.f32 %v5804_v5, %v9137_v41  ;;  %v3727_v22 = vmul.f32 %v5804_v5, %v9139_v45 }
 0x5e3   : > { %v5806_v24 = vpop.eup %5805 }
 0x5e4   : > { %v3730_v39 = vmul.f32 %v5806_v24, %v9138_v61  ;;  %v3729_v13 = vmul.f32 %v5806_v24, %v9140_v47 }
 0x5e6   : > { %v3794_v42 = vpack.c.bf16 %v3730_v39, %v3728_v37  ;;  %v3793_v10 = vpack.c.bf16 %v3729_v13, %v3727_v22 }
 0x5e8   : > { %4108 = vmatprep.mubr.bf16.mxu1 %v3794_v42 }
 0x5e9   : > { %4109 = vmatmul.mubr.bf16.gmra.mxu1 %v3793_v10 }
 0x606   : > { %v5049_v26 = vpop.f32.mrf.mxu0 }
 0x608   : > { %v5050_v6 = vpop.f32.mrf.mxu0 }
 0x609   : > { %v5051_v52 = vadd.f32 %v5050_v6, %v5049_v26 }
 0x60a   : > { %v5052_v31 = vpop.f32.mrf.mxu0 }
 0x60b   : > { %v4793_v2 = vpack.c.bf16 %v5051_v52, %v5051_v52 }
 0x60c   : > { %v5053_v43 = vpop.f32.mrf.mxu0 }
 0x60d   : > { %4406 = vst.msk [vmem:[%s8284_s9 + $0x80] sm:$0xf] %vm4373_vm1, %v4793_v2  ;;  %v5054_v9 = vadd.f32 %v5053_v43, %v5052_v31 }
 0x60f   : > { %v4794_v60 = vpack.c.bf16 %v5054_v9, %v5054_v9 }
 0x611   : > { %4407 = vst.msk [vmem:[%s8284_s9 + $0x84] sm:$0xf] %vm4373_vm1, %v4794_v60  ;;  %v5055_v33 = vpop.f32.mrf.mxu0 }
 0x612   : > { %v4973_v48 = vpop.f32.mrf.mxu1 }
 0x613   : > { %v5056_v34 = vpop.f32.mrf.mxu0 }
 0x614   : > { %v5057_v49 = vadd.f32 %v5056_v34, %v5055_v33  ;;  %v4974_v20 = vpop.f32.mrf.mxu1 }
 0x615   : > { %v5058_v50 = vpop.f32.mrf.mxu0  ;;  %v4975_v11 = vadd.f32 %v4974_v20, %v4973_v48 }
 0x616   : > { %v4795_v35 = vpack.c.bf16 %v5057_v49, %v5057_v49  ;;  %v4976_v55 = vpop.f32.mrf.mxu1 }
 0x617   : > { %v5059_v25 = vpop.f32.mrf.mxu0  ;;  %v4773_v7 = vpack.c.bf16 %v4975_v11, %v4975_v11 }
 0x618   : > { %4408 = vst.msk [vmem:[%s8284_s9 + $0x88] sm:$0xf] %vm4373_vm1, %v4795_v35  ;;  %v5060_v54 = vadd.f32 %v5059_v25, %v5058_v50  ;;  %v4977_v4 = vpop.f32.mrf.mxu1 }
 0x619   : > { %v5061_v63 = vpop.f32.mrf.mxu0  ;;  %4386 = vst.msk [vmem:[%s8284_s9 + $0x30] sm:$0xf] %vm4373_vm1, %v4773_v7  ;;  %v4978_v12 = vadd.f32 %v4977_v4, %v4976_v55 }
 0x61a   : > { %v4796_v58 = vpack.c.bf16 %v5060_v54, %v5060_v54  ;;  %v4979_v29 = vpop.f32.mrf.mxu1 }
 0x61b   : > { %v5062_v19 = vpop.f32.mrf.mxu0  ;;  %v4774_v28 = vpack.c.bf16 %v4978_v12, %v4978_v12 }
 0x61c   : > { %4409 = vst.msk [vmem:[%s8284_s9 + $0x8c] sm:$0xf] %vm4373_vm1, %v4796_v58  ;;  %v5063_v16 = vadd.f32 %v5062_v19, %v5061_v63  ;;  %v4980_v21 = vpop.f32.mrf.mxu1 }
 0x61d   : > { %v5064_v14 = vpop.f32.mrf.mxu0  ;;  %4387 = vst.msk [vmem:[%s8284_s9 + $0x34] sm:$0xf] %vm4373_vm1, %v4774_v28  ;;  %v4981_v36 = vadd.f32 %v4980_v21, %v4979_v29 }
 0x61e   : > { %v4797_v27 = vpack.c.bf16 %v5063_v16, %v5063_v16  ;;  %v4982_v59 = vpop.f32.mrf.mxu1 }
 0x61f   : > { %v5065_v57 = vpop.f32.mrf.mxu0  ;;  %v4775_v3 = vpack.c.bf16 %v4981_v36, %v4981_v36 }
 0x620   : > { %4410 = vst.msk [vmem:[%s8284_s9 + $0x90] sm:$0xf] %vm4373_vm1, %v4797_v27  ;;  %v5066_v53 = vadd.f32 %v5065_v57, %v5064_v14  ;;  %v4983_v15 = vpop.f32.mrf.mxu1 }
 0x621   : > { %v5067_v23 = vpop.f32.mrf.mxu0  ;;  %4388 = vst.msk [vmem:[%s8284_s9 + $0x38] sm:$0xf] %vm4373_vm1, %v4775_v3  ;;  %v4984_v62 = vadd.f32 %v4983_v15, %v4982_v59 }
 0x622   : > { %v4798_v8 = vpack.c.bf16 %v5066_v53, %v5066_v53  ;;  %v4985_v32 = vpop.f32.mrf.mxu1 }
 0x623   : > { %v5068_v17 = vpop.f32.mrf.mxu0  ;;  %v4776_v51 = vpack.c.bf16 %v4984_v62, %v4984_v62 }
 0x624   : > { %4411 = vst.msk [vmem:[%s8284_s9 + $0x94] sm:$0xf] %vm4373_vm1, %v4798_v8  ;;  %v5069_v56 = vadd.f32 %v5068_v17, %v5067_v23  ;;  %v4986_v0 = vpop.f32.mrf.mxu1 }
 0x625   : > { %v5070_v46 = vpop.f32.mrf.mxu0  ;;  %4389 = vst.msk [vmem:[%s8284_s9 + $0x3c] sm:$0xf] %vm4373_vm1, %v4776_v51  ;;  %v4987_v44 = vadd.f32 %v4986_v0, %v4985_v32 }
 0x626   : > { %v4799_v30 = vpack.c.bf16 %v5069_v56, %v5069_v56  ;;  %v4988_v1 = vpop.f32.mrf.mxu1 }
 0x627   : > { %v5071_v18 = vpop.f32.mrf.mxu0  ;;  %v4777_v40 = vpack.c.bf16 %v4987_v44, %v4987_v44 }
 0x628   : > { %4412 = vst.msk [vmem:[%s8284_s9 + $0x98] sm:$0xf] %vm4373_vm1, %v4799_v30  ;;  %v5072_v38 = vadd.f32 %v5071_v18, %v5070_v46  ;;  %v4989_v5 = vpop.f32.mrf.mxu1 }
 0x629   : > { %4390 = vst.msk [vmem:[%s8284_s9 + $0x40] sm:$0xf] %vm4373_vm1, %v4777_v40  ;;  %v4990_v41 = vadd.f32 %v4989_v5, %v4988_v1 }
 0x62a   : > { %v4800_v24 = vpack.c.bf16 %v5072_v38, %v5072_v38 }
 0x62b   : > { %v4778_v37 = vpack.c.bf16 %v4990_v41, %v4990_v41 }
 0x62c   : > { %4413 = vst.msk [vmem:[%s8284_s9 + $0x9c] sm:$0xf] %vm4373_vm1, %v4800_v24 }
 0x62d   : > { %4391 = vst.msk [vmem:[%s8284_s9 + $0x44] sm:$0xf] %vm4373_vm1, %v4778_v37 }
 0x63c   : > { %v5073_v61 = vpop.f32.mrf.mxu0 }
 0x63e   : > { %v5074_v39 = vpop.f32.mrf.mxu0 }
 0x63f   : > { %v5075_v45 = vadd.f32 %v5074_v39, %v5073_v61 }
 0x640   : > { %v5076_v47 = vpop.f32.mrf.mxu0 }
 0x641   : > { %v4991_v22 = vpop.f32.mrf.mxu1  ;;  %v4801_v13 = vpack.c.bf16 %v5075_v45, %v5075_v45 }
 0x642   : > { %v5077_v10 = vpop.f32.mrf.mxu0 }
 0x643   : > { %v4992_v42 = vpop.f32.mrf.mxu1  ;;  %4414 = vst.msk [vmem:[%s8284_s9 + $0xa0] sm:$0xf] %vm4373_vm1, %v4801_v13  ;;  %v5078_v6 = vadd.f32 %v5077_v10, %v5076_v47 }
 0x644   : > { %v4993_v26 = vadd.f32 %v4992_v42, %v4991_v22 }
 0x645   : > { %v4994_v52 = vpop.f32.mrf.mxu1  ;;  %v5079_v31 = vpop.f32.mrf.mxu0  ;;  %v4802_v43 = vpack.c.bf16 %v5078_v6, %v5078_v6 }
 0x646   : > { %v4779_v2 = vpack.c.bf16 %v4993_v26, %v4993_v26 }
 0x647   : > { %v4995_v9 = vpop.f32.mrf.mxu1  ;;  %v5080_v60 = vpop.f32.mrf.mxu0  ;;  %4415 = vst.msk [vmem:[%s8284_s9 + $0xa4] sm:$0xf] %vm4373_vm1, %v4802_v43 }
 0x648   : > { %4392 = vst.msk [vmem:[%s8284_s9 + $0x48] sm:$0xf] %vm4373_vm1, %v4779_v2  ;;  %v4996_v33 = vadd.f32 %v4995_v9, %v4994_v52  ;;  %v5081_v34 = vadd.f32 %v5080_v60, %v5079_v31 }
 0x649   : > { %v4997_v48 = vpop.f32.mrf.mxu1  ;;  %v5082_v49 = vpop.f32.mrf.mxu0 }
 0x64a   : > { %v4780_v50 = vpack.c.bf16 %v4996_v33, %v4996_v33  ;;  %v4803_v20 = vpack.c.bf16 %v5081_v34, %v5081_v34 }
 0x64b   : > { %v4998_v35 = vpop.f32.mrf.mxu1  ;;  %v5083_v11 = vpop.f32.mrf.mxu0 }
 0x64c   : > { %4393 = vst.msk [vmem:[%s8284_s9 + $0x4c] sm:$0xf] %vm4373_vm1, %v4780_v50  ;;  %4416 = vst.msk [vmem:[%s8284_s9 + $0xa8] sm:$0xf] %vm4373_vm1, %v4803_v20  ;;  %v4999_v25 = vadd.f32 %v4998_v35, %v4997_v48  ;;  %v5084_v55 = vadd.f32 %v5083_v11, %v5082_v49 }
 0x64d   : > { %v5000_v7 = vpop.f32.mrf.mxu1  ;;  %v5085_v54 = vpop.f32.mrf.mxu0 }
 0x64e   : > { %v4781_v63 = vpack.c.bf16 %v4999_v25, %v4999_v25  ;;  %v4804_v4 = vpack.c.bf16 %v5084_v55, %v5084_v55 }
 0x64f   : > { %v5001_v58 = vpop.f32.mrf.mxu1  ;;  %v5086_v12 = vpop.f32.mrf.mxu0 }
 0x650   : > { %4394 = vst.msk [vmem:[%s8284_s9 + $0x50] sm:$0xf] %vm4373_vm1, %v4781_v63  ;;  %4417 = vst.msk [vmem:[%s8284_s9 + $0xac] sm:$0xf] %vm4373_vm1, %v4804_v4  ;;  %v5002_v19 = vadd.f32 %v5001_v58, %v5000_v7  ;;  %v5087_v29 = vadd.f32 %v5086_v12, %v5085_v54 }
 0x651   : > { %v5003_v28 = vpop.f32.mrf.mxu1  ;;  %v5088_v16 = vpop.f32.mrf.mxu0 }
 0x652   : > { %v4782_v14 = vpack.c.bf16 %v5002_v19, %v5002_v19  ;;  %v4805_v21 = vpack.c.bf16 %v5087_v29, %v5087_v29 }
 0x653   : > { %v5004_v27 = vpop.f32.mrf.mxu1  ;;  %v5089_v36 = vpop.f32.mrf.mxu0 }
 0x654   : > { %4395 = vst.msk [vmem:[%s8284_s9 + $0x54] sm:$0xf] %vm4373_vm1, %v4782_v14  ;;  %4418 = vst.msk [vmem:[%s8284_s9 + $0xb0] sm:$0xf] %vm4373_vm1, %v4805_v21  ;;  %v5005_v57 = vadd.f32 %v5004_v27, %v5003_v28  ;;  %v5090_v59 = vadd.f32 %v5089_v36, %v5088_v16 }
 0x655   : > { %v5006_v3 = vpop.f32.mrf.mxu1  ;;  %v5091_v53 = vpop.f32.mrf.mxu0 }
 0x656   : > { %v4783_v23 = vpack.c.bf16 %v5005_v57, %v5005_v57  ;;  %v4806_v15 = vpack.c.bf16 %v5090_v59, %v5090_v59 }
 0x657   : > { %v5007_v8 = vpop.f32.mrf.mxu1  ;;  %v5092_v62 = vpop.f32.mrf.mxu0 }
 0x658   : > { %4396 = vst.msk [vmem:[%s8284_s9 + $0x58] sm:$0xf] %vm4373_vm1, %v4783_v23  ;;  %4419 = vst.msk [vmem:[%s8284_s9 + $0xb4] sm:$0xf] %vm4373_vm1, %v4806_v15  ;;  %v5008_v17 = vadd.f32 %v5007_v8, %v5006_v3  ;;  %v5093_v32 = vadd.f32 %v5092_v62, %v5091_v53 }
 0x659   : > { %v5009_v51 = vpop.f32.mrf.mxu1  ;;  %v5094_v56 = vpop.f32.mrf.mxu0 }
 0x65a   : > { %v4784_v46 = vpack.c.bf16 %v5008_v17, %v5008_v17  ;;  %v4807_v0 = vpack.c.bf16 %v5093_v32, %v5093_v32 }
 0x65b   : > { %v5010_v30 = vpop.f32.mrf.mxu1  ;;  %v5095_v44 = vpop.f32.mrf.mxu0 }
 0x65c   : > { %4397 = vst.msk [vmem:[%s8284_s9 + $0x5c] sm:$0xf] %vm4373_vm1, %v4784_v46  ;;  %4420 = vst.msk [vmem:[%s8284_s9 + $0xb8] sm:$0xf] %vm4373_vm1, %v4807_v0  ;;  %v5011_v18 = vadd.f32 %v5010_v30, %v5009_v51  ;;  %v5096_v1 = vadd.f32 %v5095_v44, %v5094_v56 }
 0x65d   : > { %v5012_v40 = vpop.f32.mrf.mxu1  ;;  %v5097_v38 = vpop.f32.mrf.mxu0 }
 0x65e   : > { %v4785_v5 = vpack.c.bf16 %v5011_v18, %v5011_v18  ;;  %v4808_v24 = vpack.c.bf16 %v5096_v1, %v5096_v1 }
 0x65f   : > { %v5013_v41 = vpop.f32.mrf.mxu1  ;;  %v5098_v37 = vpop.f32.mrf.mxu0 }
 0x660   : > { %4398 = vst.msk [vmem:[%s8284_s9 + $0x60] sm:$0xf] %vm4373_vm1, %v4785_v5  ;;  %4421 = vst.msk [vmem:[%s8284_s9 + $0xbc] sm:$0xf] %vm4373_vm1, %v4808_v24  ;;  %v5014_v61 = vadd.f32 %v5013_v41, %v5012_v40  ;;  %v5099_v39 = vadd.f32 %v5098_v37, %v5097_v38 }
 0x661   : > { %v5015_v45 = vpop.f32.mrf.mxu1  ;;  %v5100_v22 = vpop.f32.mrf.mxu0 }
 0x662   : > { %v4786_v47 = vpack.c.bf16 %v5014_v61, %v5014_v61  ;;  %v4809_v13 = vpack.c.bf16 %v5099_v39, %v5099_v39 }
 0x663   : > { %v5016_v42 = vpop.f32.mrf.mxu1  ;;  %v5101_v10 = vpop.f32.mrf.mxu0 }
 0x664   : > { %4399 = vst.msk [vmem:[%s8284_s9 + $0x64] sm:$0xf] %vm4373_vm1, %v4786_v47  ;;  %4422 = vst.msk [vmem:[%s8284_s9 + $0xc0] sm:$0xf] %vm4373_vm1, %v4809_v13  ;;  %v5017_v26 = vadd.f32 %v5016_v42, %v5015_v45  ;;  %v5102_v6 = vadd.f32 %v5101_v10, %v5100_v22 }
 0x665   : > { %v5018_v52 = vpop.f32.mrf.mxu1  ;;  %v5103_v31 = vpop.f32.mrf.mxu0 }
 0x666   : > { %v4787_v2 = vpack.c.bf16 %v5017_v26, %v5017_v26  ;;  %v4810_v43 = vpack.c.bf16 %v5102_v6, %v5102_v6 }
 0x667   : > { %v5019_v9 = vpop.f32.mrf.mxu1  ;;  %v5104_v60 = vpop.f32.mrf.mxu0 }
 0x668   : > { %4400 = vst.msk [vmem:[%s8284_s9 + $0x68] sm:$0xf] %vm4373_vm1, %v4787_v2  ;;  %4423 = vst.msk [vmem:[%s8284_s9 + $0xc4] sm:$0xf] %vm4373_vm1, %v4810_v43  ;;  %v5020_v33 = vadd.f32 %v5019_v9, %v5018_v52  ;;  %v5105_v34 = vadd.f32 %v5104_v60, %v5103_v31 }
 0x669   : > { %v5021_v48 = vpop.f32.mrf.mxu1  ;;  %v5106_v49 = vpop.f32.mrf.mxu0 }
 0x66a   : > { %v4788_v50 = vpack.c.bf16 %v5020_v33, %v5020_v33  ;;  %v4811_v20 = vpack.c.bf16 %v5105_v34, %v5105_v34 }
 0x66b   : > { %v5022_v35 = vpop.f32.mrf.mxu1  ;;  %v5107_v11 = vpop.f32.mrf.mxu0 }
 0x66c   : > { %4401 = vst.msk [vmem:[%s8284_s9 + $0x6c] sm:$0xf] %vm4373_vm1, %v4788_v50  ;;  %4424 = vst.msk [vmem:[%s8284_s9 + $0xc8] sm:$0xf] %vm4373_vm1, %v4811_v20  ;;  %v5023_v25 = vadd.f32 %v5022_v35, %v5021_v48  ;;  %v5108_v55 = vadd.f32 %v5107_v11, %v5106_v49 }
 0x66d   : > { %v5024_v7 = vpop.f32.mrf.mxu1  ;;  %v5109_v54 = vpop.f32.mrf.mxu0 }
 0x66e   : > { %v4789_v63 = vpack.c.bf16 %v5023_v25, %v5023_v25  ;;  %v4812_v4 = vpack.c.bf16 %v5108_v55, %v5108_v55 }
 0x66f   : > { %v5025_v58 = vpop.f32.mrf.mxu1  ;;  %v5110_v12 = vpop.f32.mrf.mxu0 }
 0x670   : > { %4402 = vst.msk [vmem:[%s8284_s9 + $0x70] sm:$0xf] %vm4373_vm1, %v4789_v63  ;;  %4425 = vst.msk [vmem:[%s8284_s9 + $0xcc] sm:$0xf] %vm4373_vm1, %v4812_v4  ;;  %v5026_v19 = vadd.f32 %v5025_v58, %v5024_v7  ;;  %v5111_v29 = vadd.f32 %v5110_v12, %v5109_v54 }
 0x671   : > { %v5027_v28 = vpop.f32.mrf.mxu1  ;;  %v5112_v16 = vpop.f32.mrf.mxu0 }
 0x672   : > { %v4790_v14 = vpack.c.bf16 %v5026_v19, %v5026_v19  ;;  %v4813_v21 = vpack.c.bf16 %v5111_v29, %v5111_v29 }
 0x673   : > { %v5028_v27 = vpop.f32.mrf.mxu1  ;;  %v5113_v36 = vpop.f32.mrf.mxu0 }
 0x674   : > { %4403 = vst.msk [vmem:[%s8284_s9 + $0x74] sm:$0xf] %vm4373_vm1, %v4790_v14  ;;  %4426 = vst.msk [vmem:[%s8284_s9 + $0xd0] sm:$0xf] %vm4373_vm1, %v4813_v21  ;;  %v5029_v57 = vadd.f32 %v5028_v27, %v5027_v28  ;;  %v5114_v59 = vadd.f32 %v5113_v36, %v5112_v16 }
 0x675   : > { %v5030_v3 = vpop.f32.mrf.mxu1  ;;  %v5115_v53 = vpop.f32.mrf.mxu0 }
 0x676   : > { %v4791_v23 = vpack.c.bf16 %v5029_v57, %v5029_v57  ;;  %v4814_v15 = vpack.c.bf16 %v5114_v59, %v5114_v59 }
 0x677   : > { %v5031_v8 = vpop.f32.mrf.mxu1  ;;  %v5116_v62 = vpop.f32.mrf.mxu0 }
 0x678   : > { %4404 = vst.msk [vmem:[%s8284_s9 + $0x78] sm:$0xf] %vm4373_vm1, %v4791_v23  ;;  %4427 = vst.msk [vmem:[%s8284_s9 + $0xd4] sm:$0xf] %vm4373_vm1, %v4814_v15  ;;  %v5032_v17 = vadd.f32 %v5031_v8, %v5030_v3  ;;  %v5117_v32 = vadd.f32 %v5116_v62, %v5115_v53 }
 0x679   : > { %v5118_v51 = vpop.f32.mrf.mxu0 }
 0x67a   : > { %v4792_v56 = vpack.c.bf16 %v5032_v17, %v5032_v17  ;;  %v4815_v46 = vpack.c.bf16 %v5117_v32, %v5117_v32 }
 0x67b   : > { %v5119_v0 = vpop.f32.mrf.mxu0 }
 0x67c   : > { %4405 = vst.msk [vmem:[%s8284_s9 + $0x7c] sm:$0xf] %vm4373_vm1, %v4792_v56  ;;  %4428 = vst.msk [vmem:[%s8284_s9 + $0xd8] sm:$0xf] %vm4373_vm1, %v4815_v46  ;;  %v5120_v30 = vadd.f32 %v5119_v0, %v5118_v51 }
 0x67d   : > { %v5121_v44 = vpop.f32.mrf.mxu0  ;;  %v5133_v18 = vpop.f32.mrf.mxu1 }
 0x67e   : > { %v4816_v1 = vpack.c.bf16 %v5120_v30, %v5120_v30 }
 0x67f   : > { %v5122_v40 = vpop.f32.mrf.mxu0  ;;  %v5134_v38 = vpop.f32.mrf.mxu1 }
 0x680   : > { %4429 = vst.msk [vmem:[%s8284_s9 + $0xdc] sm:$0xf] %vm4373_vm1, %v4816_v1  ;;  %v5123_v5 = vadd.f32 %v5122_v40, %v5121_v44  ;;  %v5135_v24 = vadd.f32 %v5134_v38, %v5133_v18 }
 0x681   : > { %v5124_v41 = vpop.f32.mrf.mxu0  ;;  %v5136_v37 = vpop.f32.mrf.mxu1 }
 0x682   : > { %v4817_v61 = vpack.c.bf16 %v5123_v5, %v5123_v5  ;;  %v4821_v39 = vpack.c.bf16 %v5135_v24, %v5135_v24 }
 0x683   : > { %v5125_v45 = vpop.f32.mrf.mxu0  ;;  %v5137_v22 = vpop.f32.mrf.mxu1 }
 0x684   : > { %4430 = vst.msk [vmem:[%s8284_s9 + $0xe0] sm:$0xf] %vm4373_vm1, %v4817_v61  ;;  %4434 = vst.msk [vmem:[%s8284_s9 + $0xf0] sm:$0xf] %vm4373_vm1, %v4821_v39  ;;  %v5126_v47 = vadd.f32 %v5125_v45, %v5124_v41  ;;  %v5138_v13 = vadd.f32 %v5137_v22, %v5136_v37 }
 0x685   : > { %v5127_v42 = vpop.f32.mrf.mxu0 }
 0x686   : > { %v4818_v10 = vpack.c.bf16 %v5126_v47, %v5126_v47  ;;  %v4822_v26 = vpack.c.bf16 %v5138_v13, %v5138_v13 }
 0x687   : > { %v5128_v6 = vpop.f32.mrf.mxu0 }
 0x688   : > { %4431 = vst.msk [vmem:[%s8284_s9 + $0xe4] sm:$0xf] %vm4373_vm1, %v4818_v10  ;;  %4435 = vst.msk [vmem:[%s8284_s9 + $0xf4] sm:$0xf] %vm4373_vm1, %v4822_v26  ;;  %v5129_v52 = vadd.f32 %v5128_v6, %v5127_v42 }
 0x689   : > { %v5130_v31 = vpop.f32.mrf.mxu0 }
 0x68a   : > { %v4819_v2 = vpack.c.bf16 %v5129_v52, %v5129_v52 }
 0x68b   : > { %v5131_v43 = vpop.f32.mrf.mxu0 }
 0x68c   : > { %4432 = vst.msk [vmem:[%s8284_s9 + $0xe8] sm:$0xf] %vm4373_vm1, %v4819_v2  ;;  %v5132_v9 = vadd.f32 %v5131_v43, %v5130_v31 }
 0x68e   : > { %v4820_v60 = vpack.c.bf16 %v5132_v9, %v5132_v9 }
 0x690   : > { %4433 = vst.msk [vmem:[%s8284_s9 + $0xec] sm:$0xf] %vm4373_vm1, %v4820_v60 }
 0x6a9   : > { %v5139_v33 = vpop.f32.mrf.mxu1 }
 0x6ab   : > { %v5140_v34 = vpop.f32.mrf.mxu1 }
 0x6ac   : > { %v5141_v48 = vadd.f32 %v5140_v34, %v5139_v33 }
 0x6ad   : > { %v5142_v49 = vpop.f32.mrf.mxu1 }
 0x6ae   : > { %v4823_v50 = vpack.c.bf16 %v5141_v48, %v5141_v48 }
 0x6af   : > { %v5143_v20 = vpop.f32.mrf.mxu1 }
 0x6b0   : > { %4436 = vst.msk [vmem:[%s8284_s9 + $0xf8] sm:$0xf] %vm4373_vm1, %v4823_v50  ;;  %v5144_v35 = vadd.f32 %v5143_v20, %v5142_v49 }
 0x6b2   : > { %v4824_v11 = vpack.c.bf16 %v5144_v35, %v5144_v35 }
 0x6b4   : > { %4437 = vst.msk [vmem:[%s8284_s9 + $0xfc] sm:$0xf] %vm4373_vm1, %v4824_v11 }
 0x6b5 PF: > { %p12_p9 = scmp.ge.s32.totalorder %s5911_s14, 4   ;;  %s9141_s9 = smov %s5861_s10 }
 0x6b6   : > { %s9142_s10 = smov %s5865_s11  ;;  %s9143_s11 = smov %s5921_s17 }
 0x6b7   : > { %s9144_s12 = smov %s5911_s14  ;;  %14 = sbr.rel (!%p12_p9) target bundleno = 3 (0x3), region = 68 }
 0x6bc   :  { %4462 = vsyncpa [#allocation3], 1 }
 0x6bd   :  { %4464 = vsyncpa [#allocation3 + $0x1], 1 }

</bundles_post_ra>
